<compile_context>
chip_gen: v6e
topology: v6e:2x2x1
jax: 0.10.0
libtpu: 0.0.40
codegen_flags: <defaults>
</compile_context>

<pallas_src>
import functools

import jax
import jax.numpy as jnp
from jax.experimental import pallas as pl
from jax.experimental.pallas import tpu as pltpu

HIDDEN = 512
IMG_PIXELS = 28 * 28          # 784
OUT_PADDED = 7 * 128          # 896 — lane-dense output width
NUM_HIDDEN_BLOCKS = 6         # LinearGeneratorBlock x 6
NUM_LAYERS = NUM_HIDDEN_BLOCKS + 1


def _leaky_relu(x, slope=0.2):
    # max(x, slope*x) == LeakyReLU(slope) for 0 < slope < 1 (no mask vreg).
    return jnp.maximum(x, slope * x)


def generator_kernel(noise_ref, *refs):
    """Fused 7-layer MLP generator for one batch tile.

    refs = (w1, b1, w2, b2, ..., w7, b7, out_ref)
    Weights are bf16 (resident in VMEM across batch tiles), biases f32.
    """
    out_ref = refs[-1]
    p = refs[:-1]

    h = noise_ref[...]  # (tb, noise_dim) f32

    # Hidden blocks: Linear + LeakyReLU(0.2)
    for layer in range(NUM_HIDDEN_BLOCKS):
        w = p[2 * layer][...]            # bf16 (in, 512)
        b = p[2 * layer + 1][...]        # f32  (1, 512)
        h = jnp.dot(h.astype(jnp.bfloat16), w,
                    preferred_element_type=jnp.float32) + b
        h = _leaky_relu(h)

    # Final Linear(512 -> 896 padded) + Sigmoid
    w_out = p[2 * NUM_HIDDEN_BLOCKS][...]        # bf16 (512, 896)
    b_out = p[2 * NUM_HIDDEN_BLOCKS + 1][...]    # f32  (1, 896)
    logits = jnp.dot(h.astype(jnp.bfloat16), w_out,
                     preferred_element_type=jnp.float32) + b_out
    out_ref[...] = jax.nn.sigmoid(logits)


@functools.partial(jax.jit, static_argnames=("batch_tile",))
def generator_forward(noise, prep_params, *, batch_tile=256):
    """noise: (B, noise_dim) f32; prep_params: output of prepare_params()."""
    batch, noise_dim = noise.shape

    # Batch tile: multiple of 8 (sublane), capped at `batch_tile`.
    tb = min(batch_tile, pl.cdiv(batch, 8) * 8)
    b_pad = pl.cdiv(batch, tb) * tb
    if b_pad != batch:
        noise = jnp.pad(noise, ((0, b_pad - batch), (0, 0)))

    noise_spec = pl.BlockSpec((tb, noise_dim), lambda i: (i, 0))
    # Weights/biases: full-array blocks, constant block index -> fetched once,
    # resident across all batch tiles.
    param_specs = [pl.BlockSpec(p.shape, lambda i: (0, 0)) for p in prep_params]
    out_spec = pl.BlockSpec((tb, OUT_PADDED), lambda i: (i, 0))

    flat_out = pl.pallas_call(
        generator_kernel,
        out_shape=jax.ShapeDtypeStruct((b_pad, OUT_PADDED), jnp.float32),
        grid=(b_pad // tb,),
        in_specs=[noise_spec] + param_specs,
        out_specs=out_spec,
        compiler_params=pltpu.CompilerParams(
            dimension_semantics=("parallel",),
            vmem_limit_bytes=32 << 20,
        ),
    )(noise, *prep_params)

    # Strip batch/feature padding, then View(-1, 1, 28, 28) -> NCHW.
    images = flat_out[:batch, :IMG_PIXELS].reshape(batch, 1, 28, 28)
    return images


def init_params(key, noise_dim):
    """Deterministic synthetic f32 parameter init (Kaiming-ish normal)."""
    dims = [noise_dim] + [HIDDEN] * NUM_HIDDEN_BLOCKS + [IMG_PIXELS]
    params = []
    for i in range(len(dims) - 1):
        key, kw, kb = jax.random.split(key, 3)
        fan_in = dims[i]
        w = jax.random.normal(kw, (dims[i], dims[i + 1]), jnp.float32) * (
            1.0 / jnp.sqrt(fan_in)
        )
        b = jax.random.normal(kb, (1, dims[i + 1]), jnp.float32) * 0.01
        params.append(w)
        params.append(b)
    return params


def prepare_params(params):
    """Cast weights to bf16 and zero-pad the final layer 784 -> 896 lanes."""
    prepared = []
    for layer in range(NUM_LAYERS):
        w = params[2 * layer].astype(jnp.bfloat16)
        b = params[2 * layer + 1].astype(jnp.float32)
        if layer == NUM_LAYERS - 1:
            pad = OUT_PADDED - IMG_PIXELS
            w = jnp.pad(w, ((0, 0), (0, pad)))
            b = jnp.pad(b, ((0, 0), (0, pad)))
        prepared.append(w)
        prepared.append(b)
    return prepared


def reference_forward(noise, prep_params):
    """Pure-JAX reference using the same bf16 weights / f32 accumulation."""
    h = noise
    for layer in range(NUM_HIDDEN_BLOCKS):
        w = prep_params[2 * layer]
        b = prep_params[2 * layer + 1]
        h = jnp.dot(h.astype(jnp.bfloat16), w,
                    preferred_element_type=jnp.float32) + b
        h = _leaky_relu(h)
    w_out = prep_params[2 * NUM_HIDDEN_BLOCKS]
    b_out = prep_params[2 * NUM_HIDDEN_BLOCKS + 1]
    logits = jnp.dot(h.astype(jnp.bfloat16), w_out,
                     preferred_element_type=jnp.float32) + b_out
    out = jax.nn.sigmoid(logits)[:, :IMG_PIXELS]
    return out.reshape(noise.shape[0], 1, 28, 28)


if __name__ == "__main__":
    noise_dim = 64
    batch = 8

    key = jax.random.PRNGKey(0)
    key_noise, key_noise2, key_params = jax.random.split(key, 3)

    params = init_params(key_params, noise_dim)
    prep = prepare_params(params)

    # Small-batch path (single batch tile).
    noise = jax.random.normal(key_noise, (batch, noise_dim), jnp.float32)
    images = jax.block_until_ready(generator_forward(noise, prep))
    assert images.shape == (batch, 1, 28, 28), images.shape
    assert images.shape[1] == 1 and images.shape[2] == 28 and images.shape[3] == 28

    ref = jax.block_until_ready(reference_forward(noise, prep))
    err = float(jnp.max(jnp.abs(images - ref)))
    assert err < 2e-3, f"max abs error vs reference (B={batch}): {err}"

    # Multi-tile path: exercises the batch grid, resident weights and
    # batch padding (100 rows, tile 32 -> grid of 4, padded to 128).
    batch2 = 100
    noise2 = jax.random.normal(key_noise2, (batch2, noise_dim), jnp.float32)
    images2 = jax.block_until_ready(
        generator_forward(noise2, prep, batch_tile=32))
    assert images2.shape == (batch2, 1, 28, 28), images2.shape
    ref2 = jax.block_until_ready(reference_forward(noise2, prep))
    err2 = float(jnp.max(jnp.abs(images2 - ref2)))
    assert err2 < 2e-3, f"max abs error vs reference (B={batch2}): {err2}"

    print("KERNEL_OK")
</pallas_src>

<mosaic_0001>
module attributes {stable_mosaic.version = 11 : i64} {
  func.func @generator_kernel(%arg0: i32, %arg1: memref<8x64xf32, #tpu.memory_space<vmem>>, %arg2: memref<64x512xbf16, #tpu.memory_space<vmem>>, %arg3: memref<1x512xf32, #tpu.memory_space<vmem>>, %arg4: memref<512x512xbf16, #tpu.memory_space<vmem>>, %arg5: memref<1x512xf32, #tpu.memory_space<vmem>>, %arg6: memref<512x512xbf16, #tpu.memory_space<vmem>>, %arg7: memref<1x512xf32, #tpu.memory_space<vmem>>, %arg8: memref<512x512xbf16, #tpu.memory_space<vmem>>, %arg9: memref<1x512xf32, #tpu.memory_space<vmem>>, %arg10: memref<512x512xbf16, #tpu.memory_space<vmem>>, %arg11: memref<1x512xf32, #tpu.memory_space<vmem>>, %arg12: memref<512x512xbf16, #tpu.memory_space<vmem>>, %arg13: memref<1x512xf32, #tpu.memory_space<vmem>>, %arg14: memref<512x896xbf16, #tpu.memory_space<vmem>>, %arg15: memref<1x896xf32, #tpu.memory_space<vmem>>, %arg16: memref<8x896xf32, #tpu.memory_space<vmem>>) attributes {dimension_semantics = [#tpu.dimension_semantics<parallel>], iteration_bounds = array<i64: 1>, scalar_prefetch = 0 : i64, scratch_operands = 0 : i64, tpu.core_type = #tpu.core_type<tc>, window_params = [{transform_indices = @transform_0, window_bounds = array<i64: 8, 64>}, {pipeline_mode = #tpu.pipeline_mode<synchronous>, transform_indices = @transform_1, window_bounds = array<i64: 64, 512>}, {pipeline_mode = #tpu.pipeline_mode<synchronous>, transform_indices = @transform_2, window_bounds = array<i64: 1, 512>}, {pipeline_mode = #tpu.pipeline_mode<synchronous>, transform_indices = @transform_3, window_bounds = array<i64: 512, 512>}, {pipeline_mode = #tpu.pipeline_mode<synchronous>, transform_indices = @transform_4, window_bounds = array<i64: 1, 512>}, {pipeline_mode = #tpu.pipeline_mode<synchronous>, transform_indices = @transform_5, window_bounds = array<i64: 512, 512>}, {pipeline_mode = #tpu.pipeline_mode<synchronous>, transform_indices = @transform_6, window_bounds = array<i64: 1, 512>}, {pipeline_mode = #tpu.pipeline_mode<synchronous>, transform_indices = @transform_7, window_bounds = array<i64: 512, 512>}, {pipeline_mode = #tpu.pipeline_mode<synchronous>, transform_indices = @transform_8, window_bounds = array<i64: 1, 512>}, {pipeline_mode = #tpu.pipeline_mode<synchronous>, transform_indices = @transform_9, window_bounds = array<i64: 512, 512>}, {pipeline_mode = #tpu.pipeline_mode<synchronous>, transform_indices = @transform_10, window_bounds = array<i64: 1, 512>}, {pipeline_mode = #tpu.pipeline_mode<synchronous>, transform_indices = @transform_11, window_bounds = array<i64: 512, 512>}, {pipeline_mode = #tpu.pipeline_mode<synchronous>, transform_indices = @transform_12, window_bounds = array<i64: 1, 512>}, {pipeline_mode = #tpu.pipeline_mode<synchronous>, transform_indices = @transform_13, window_bounds = array<i64: 512, 896>}, {pipeline_mode = #tpu.pipeline_mode<synchronous>, transform_indices = @transform_14, window_bounds = array<i64: 1, 896>}, {transform_indices = @transform_15, window_bounds = array<i64: 8, 896>}]} {
    %c0 = arith.constant 0 : index
    %c0_0 = arith.constant 0 : index
    %0 = vector.load %arg1[%c0, %c0_0] : memref<8x64xf32, #tpu.memory_space<vmem>>, vector<8x64xf32>
    %c0_1 = arith.constant 0 : index
    %c0_2 = arith.constant 0 : index
    %1 = vector.load %arg2[%c0_1, %c0_2] : memref<64x512xbf16, #tpu.memory_space<vmem>>, vector<64x512xbf16>
    %c0_3 = arith.constant 0 : index
    %c0_4 = arith.constant 0 : index
    %2 = vector.load %arg3[%c0_3, %c0_4] : memref<1x512xf32, #tpu.memory_space<vmem>>, vector<1x512xf32>
    %3 = arith.truncf %0 : vector<8x64xf32> to vector<8x64xbf16>
    %cst = arith.constant dense<0.000000e+00> : vector<8x512xf32>
    %4 = tpu.matmul %3, %1, %cst {dimension_numbers = #tpu.dot_dimension_numbers<[1], [0], [0], [1], [0, 0, 1, 1], [], []>} : vector<8x64xbf16>, vector<64x512xbf16>, vector<8x512xf32> -> vector<8x512xf32>
    %5 = vector.broadcast %2 : vector<1x512xf32> to vector<8x512xf32>
    %6 = arith.addf %4, %5 : vector<8x512xf32>
    %cst_5 = arith.constant 2.000000e-01 : f32
    %7 = vector.broadcast %cst_5 : f32 to vector<8x512xf32>
    %8 = arith.mulf %7, %6 : vector<8x512xf32>
    %9 = arith.maximumf %6, %8 : vector<8x512xf32>
    %c0_6 = arith.constant 0 : index
    %c0_7 = arith.constant 0 : index
    %10 = vector.load %arg4[%c0_6, %c0_7] : memref<512x512xbf16, #tpu.memory_space<vmem>>, vector<512x512xbf16>
    %c0_8 = arith.constant 0 : index
    %c0_9 = arith.constant 0 : index
    %11 = vector.load %arg5[%c0_8, %c0_9] : memref<1x512xf32, #tpu.memory_space<vmem>>, vector<1x512xf32>
    %12 = arith.truncf %9 : vector<8x512xf32> to vector<8x512xbf16>
    %cst_10 = arith.constant dense<0.000000e+00> : vector<8x512xf32>
    %13 = tpu.matmul %12, %10, %cst_10 {dimension_numbers = #tpu.dot_dimension_numbers<[1], [0], [0], [1], [0, 0, 1, 1], [], []>} : vector<8x512xbf16>, vector<512x512xbf16>, vector<8x512xf32> -> vector<8x512xf32>
    %14 = vector.broadcast %11 : vector<1x512xf32> to vector<8x512xf32>
    %15 = arith.addf %13, %14 : vector<8x512xf32>
    %cst_11 = arith.constant 2.000000e-01 : f32
    %16 = vector.broadcast %cst_11 : f32 to vector<8x512xf32>
    %17 = arith.mulf %16, %15 : vector<8x512xf32>
    %18 = arith.maximumf %15, %17 : vector<8x512xf32>
    %c0_12 = arith.constant 0 : index
    %c0_13 = arith.constant 0 : index
    %19 = vector.load %arg6[%c0_12, %c0_13] : memref<512x512xbf16, #tpu.memory_space<vmem>>, vector<512x512xbf16>
    %c0_14 = arith.constant 0 : index
    %c0_15 = arith.constant 0 : index
    %20 = vector.load %arg7[%c0_14, %c0_15] : memref<1x512xf32, #tpu.memory_space<vmem>>, vector<1x512xf32>
    %21 = arith.truncf %18 : vector<8x512xf32> to vector<8x512xbf16>
    %cst_16 = arith.constant dense<0.000000e+00> : vector<8x512xf32>
    %22 = tpu.matmul %21, %19, %cst_16 {dimension_numbers = #tpu.dot_dimension_numbers<[1], [0], [0], [1], [0, 0, 1, 1], [], []>} : vector<8x512xbf16>, vector<512x512xbf16>, vector<8x512xf32> -> vector<8x512xf32>
    %23 = vector.broadcast %20 : vector<1x512xf32> to vector<8x512xf32>
    %24 = arith.addf %22, %23 : vector<8x512xf32>
    %cst_17 = arith.constant 2.000000e-01 : f32
    %25 = vector.broadcast %cst_17 : f32 to vector<8x512xf32>
    %26 = arith.mulf %25, %24 : vector<8x512xf32>
    %27 = arith.maximumf %24, %26 : vector<8x512xf32>
    %c0_18 = arith.constant 0 : index
    %c0_19 = arith.constant 0 : index
    %28 = vector.load %arg8[%c0_18, %c0_19] : memref<512x512xbf16, #tpu.memory_space<vmem>>, vector<512x512xbf16>
    %c0_20 = arith.constant 0 : index
    %c0_21 = arith.constant 0 : index
    %29 = vector.load %arg9[%c0_20, %c0_21] : memref<1x512xf32, #tpu.memory_space<vmem>>, vector<1x512xf32>
    %30 = arith.truncf %27 : vector<8x512xf32> to vector<8x512xbf16>
    %cst_22 = arith.constant dense<0.000000e+00> : vector<8x512xf32>
    %31 = tpu.matmul %30, %28, %cst_22 {dimension_numbers = #tpu.dot_dimension_numbers<[1], [0], [0], [1], [0, 0, 1, 1], [], []>} : vector<8x512xbf16>, vector<512x512xbf16>, vector<8x512xf32> -> vector<8x512xf32>
    %32 = vector.broadcast %29 : vector<1x512xf32> to vector<8x512xf32>
    %33 = arith.addf %31, %32 : vector<8x512xf32>
    %cst_23 = arith.constant 2.000000e-01 : f32
    %34 = vector.broadcast %cst_23 : f32 to vector<8x512xf32>
    %35 = arith.mulf %34, %33 : vector<8x512xf32>
    %36 = arith.maximumf %33, %35 : vector<8x512xf32>
    %c0_24 = arith.constant 0 : index
    %c0_25 = arith.constant 0 : index
    %37 = vector.load %arg10[%c0_24, %c0_25] : memref<512x512xbf16, #tpu.memory_space<vmem>>, vector<512x512xbf16>
    %c0_26 = arith.constant 0 : index
    %c0_27 = arith.constant 0 : index
    %38 = vector.load %arg11[%c0_26, %c0_27] : memref<1x512xf32, #tpu.memory_space<vmem>>, vector<1x512xf32>
    %39 = arith.truncf %36 : vector<8x512xf32> to vector<8x512xbf16>
    %cst_28 = arith.constant dense<0.000000e+00> : vector<8x512xf32>
    %40 = tpu.matmul %39, %37, %cst_28 {dimension_numbers = #tpu.dot_dimension_numbers<[1], [0], [0], [1], [0, 0, 1, 1], [], []>} : vector<8x512xbf16>, vector<512x512xbf16>, vector<8x512xf32> -> vector<8x512xf32>
    %41 = vector.broadcast %38 : vector<1x512xf32> to vector<8x512xf32>
    %42 = arith.addf %40, %41 : vector<8x512xf32>
    %cst_29 = arith.constant 2.000000e-01 : f32
    %43 = vector.broadcast %cst_29 : f32 to vector<8x512xf32>
    %44 = arith.mulf %43, %42 : vector<8x512xf32>
    %45 = arith.maximumf %42, %44 : vector<8x512xf32>
    %c0_30 = arith.constant 0 : index
    %c0_31 = arith.constant 0 : index
    %46 = vector.load %arg12[%c0_30, %c0_31] : memref<512x512xbf16, #tpu.memory_space<vmem>>, vector<512x512xbf16>
    %c0_32 = arith.constant 0 : index
    %c0_33 = arith.constant 0 : index
    %47 = vector.load %arg13[%c0_32, %c0_33] : memref<1x512xf32, #tpu.memory_space<vmem>>, vector<1x512xf32>
    %48 = arith.truncf %45 : vector<8x512xf32> to vector<8x512xbf16>
    %cst_34 = arith.constant dense<0.000000e+00> : vector<8x512xf32>
    %49 = tpu.matmul %48, %46, %cst_34 {dimension_numbers = #tpu.dot_dimension_numbers<[1], [0], [0], [1], [0, 0, 1, 1], [], []>} : vector<8x512xbf16>, vector<512x512xbf16>, vector<8x512xf32> -> vector<8x512xf32>
    %50 = vector.broadcast %47 : vector<1x512xf32> to vector<8x512xf32>
    %51 = arith.addf %49, %50 : vector<8x512xf32>
    %cst_35 = arith.constant 2.000000e-01 : f32
    %52 = vector.broadcast %cst_35 : f32 to vector<8x512xf32>
    %53 = arith.mulf %52, %51 : vector<8x512xf32>
    %54 = arith.maximumf %51, %53 : vector<8x512xf32>
    %c0_36 = arith.constant 0 : index
    %c0_37 = arith.constant 0 : index
    %55 = vector.load %arg14[%c0_36, %c0_37] : memref<512x896xbf16, #tpu.memory_space<vmem>>, vector<512x896xbf16>
    %c0_38 = arith.constant 0 : index
    %c0_39 = arith.constant 0 : index
    %56 = vector.load %arg15[%c0_38, %c0_39] : memref<1x896xf32, #tpu.memory_space<vmem>>, vector<1x896xf32>
    %57 = arith.truncf %54 : vector<8x512xf32> to vector<8x512xbf16>
    %cst_40 = arith.constant dense<0.000000e+00> : vector<8x896xf32>
    %58 = tpu.matmul %57, %55, %cst_40 {dimension_numbers = #tpu.dot_dimension_numbers<[1], [0], [0], [1], [0, 0, 1, 1], [], []>} : vector<8x512xbf16>, vector<512x896xbf16>, vector<8x896xf32> -> vector<8x896xf32>
    %59 = vector.broadcast %56 : vector<1x896xf32> to vector<8x896xf32>
    %60 = arith.addf %58, %59 : vector<8x896xf32>
    %61 = arith.negf %60 : vector<8x896xf32>
    %62 = math.exp %61 : vector<8x896xf32>
    %cst_41 = arith.constant 1.000000e+00 : f32
    %63 = vector.broadcast %cst_41 : f32 to vector<8x896xf32>
    %64 = arith.addf %63, %62 : vector<8x896xf32>
    %65 = arith.divf %63, %64 : vector<8x896xf32>
    %c0_42 = arith.constant 0 : index
    %c0_43 = arith.constant 0 : index
    %66 = vector.load %arg16[%c0_42, %c0_43] : memref<8x896xf32, #tpu.memory_space<vmem>>, vector<8x896xf32>
    tpu.vector_store %arg16[%c0_42, %c0_43], %65 {strides = array<i32>} : memref<8x896xf32, #tpu.memory_space<vmem>>, vector<8x896xf32>,
    return
  }
  func.func @transform_0(%arg0: i32) -> (i32, i32) {
    %c0_i32 = arith.constant 0 : i32
    %c0_i32_0 = arith.constant 0 : i32
    return %arg0, %c0_i32 : i32, i32
  }
  func.func @transform_1(%arg0: i32) -> (i32, i32) {
    %c0_i32 = arith.constant 0 : i32
    %c0_i32_0 = arith.constant 0 : i32
    %c0_i32_1 = arith.constant 0 : i32
    return %c0_i32, %c0_i32_0 : i32, i32
  }
  func.func @transform_2(%arg0: i32) -> (i32, i32) {
    %c0_i32 = arith.constant 0 : i32
    %c0_i32_0 = arith.constant 0 : i32
    %c0_i32_1 = arith.constant 0 : i32
    return %c0_i32, %c0_i32_0 : i32, i32
  }
  func.func @transform_3(%arg0: i32) -> (i32, i32) {
    %c0_i32 = arith.constant 0 : i32
    %c0_i32_0 = arith.constant 0 : i32
    %c0_i32_1 = arith.constant 0 : i32
    return %c0_i32, %c0_i32_0 : i32, i32
  }
  func.func @transform_4(%arg0: i32) -> (i32, i32) {
    %c0_i32 = arith.constant 0 : i32
    %c0_i32_0 = arith.constant 0 : i32
    %c0_i32_1 = arith.constant 0 : i32
    return %c0_i32, %c0_i32_0 : i32, i32
  }
  func.func @transform_5(%arg0: i32) -> (i32, i32) {
    %c0_i32 = arith.constant 0 : i32
    %c0_i32_0 = arith.constant 0 : i32
    %c0_i32_1 = arith.constant 0 : i32
    return %c0_i32, %c0_i32_0 : i32, i32
  }
  func.func @transform_6(%arg0: i32) -> (i32, i32) {
    %c0_i32 = arith.constant 0 : i32
    %c0_i32_0 = arith.constant 0 : i32
    %c0_i32_1 = arith.constant 0 : i32
    return %c0_i32, %c0_i32_0 : i32, i32
  }
  func.func @transform_7(%arg0: i32) -> (i32, i32) {
    %c0_i32 = arith.constant 0 : i32
    %c0_i32_0 = arith.constant 0 : i32
    %c0_i32_1 = arith.constant 0 : i32
    return %c0_i32, %c0_i32_0 : i32, i32
  }
  func.func @transform_8(%arg0: i32) -> (i32, i32) {
    %c0_i32 = arith.constant 0 : i32
    %c0_i32_0 = arith.constant 0 : i32
    %c0_i32_1 = arith.constant 0 : i32
    return %c0_i32, %c0_i32_0 : i32, i32
  }
  func.func @transform_9(%arg0: i32) -> (i32, i32) {
    %c0_i32 = arith.constant 0 : i32
    %c0_i32_0 = arith.constant 0 : i32
    %c0_i32_1 = arith.constant 0 : i32
    return %c0_i32, %c0_i32_0 : i32, i32
  }
  func.func @transform_10(%arg0: i32) -> (i32, i32) {
    %c0_i32 = arith.constant 0 : i32
    %c0_i32_0 = arith.constant 0 : i32
    %c0_i32_1 = arith.constant 0 : i32
    return %c0_i32, %c0_i32_0 : i32, i32
  }
  func.func @transform_11(%arg0: i32) -> (i32, i32) {
    %c0_i32 = arith.constant 0 : i32
    %c0_i32_0 = arith.constant 0 : i32
    %c0_i32_1 = arith.constant 0 : i32
    return %c0_i32, %c0_i32_0 : i32, i32
  }
  func.func @transform_12(%arg0: i32) -> (i32, i32) {
    %c0_i32 = arith.constant 0 : i32
    %c0_i32_0 = arith.constant 0 : i32
    %c0_i32_1 = arith.constant 0 : i32
    return %c0_i32, %c0_i32_0 : i32, i32
  }
  func.func @transform_13(%arg0: i32) -> (i32, i32) {
    %c0_i32 = arith.constant 0 : i32
    %c0_i32_0 = arith.constant 0 : i32
    %c0_i32_1 = arith.constant 0 : i32
    return %c0_i32, %c0_i32_0 : i32, i32
  }
  func.func @transform_14(%arg0: i32) -> (i32, i32) {
    %c0_i32 = arith.constant 0 : i32
    %c0_i32_0 = arith.constant 0 : i32
    %c0_i32_1 = arith.constant 0 : i32
    return %c0_i32, %c0_i32_0 : i32, i32
  }
  func.func @transform_15(%arg0: i32) -> (i32, i32) {
    %c0_i32 = arith.constant 0 : i32
    %c0_i32_0 = arith.constant 0 : i32
    return %arg0, %c0_i32 : i32, i32
  }
}

</mosaic_0001>

<bundles_post_ra>
// kernel: generator_forward.1
= control target key start
LH: loop header
LB: loop body
LE: loop exit
PB: predicated region body
PF: predicated region fallthrough
CT: control target
= control target key end

     0   :  { %20 = vsyncpa [#allocation3], 0  ;;  %s9935_s0 = inlined_call_operand.hbm [shape: f32[8,64], index: 0, kind: input, shape index: {}]   ;;  %s9936_s1 = inlined_call_operand.hbm [shape: bf16[64,512], index: 1, kind: input, shape index: {}]   ;;  %s9937_s2 = inlined_call_operand.hbm [shape: f32[1,512], index: 2, kind: input, shape index: {}]   ;;  %s9938_s3 = inlined_call_operand.hbm [shape: bf16[512,512], index: 3, kind: input, shape index: {}]   ;;  %s9939_s4 = inlined_call_operand.vmem [shape: f32[1,512], index: 4, kind: input, shape index: {}]   ;;  %s9940_s5 = inlined_call_operand.hbm [shape: bf16[512,512], index: 5, kind: input, shape index: {}]   ;;  %s9941_s6 = inlined_call_operand.hbm [shape: f32[1,512], index: 6, kind: input, shape index: {}]   ;;  %s9942_s7 = inlined_call_operand.hbm [shape: bf16[512,512], index: 7, kind: input, shape index: {}]   ;;  %s9943_s8 = inlined_call_operand.hbm [shape: f32[1,512], index: 8, kind: input, shape index: {}]   ;;  %s9944_s9 = inlined_call_operand.hbm [shape: bf16[512,512], index: 9, kind: input, shape index: {}]   ;;  %s9945_s10 = inlined_call_operand.vmem [shape: f32[1,512], index: 10, kind: input, shape index: {}]   ;;  %s9946_s11 = inlined_call_operand.hbm [shape: bf16[512,512], index: 11, kind: input, shape index: {}]   ;;  %s9947_s12 = inlined_call_operand.vmem [shape: f32[1,512], index: 12, kind: input, shape index: {}]   ;;  %s9948_s13 = inlined_call_operand.hbm [shape: bf16[512,896], index: 13, kind: input, shape index: {}]   ;;  %s9949_s14 = inlined_call_operand.vmem [shape: f32[1,896], index: 14, kind: input, shape index: {}]   ;;  %s9950_s15 = inlined_call_operand.vmem [shape: f32[8,896], index: 15, kind: output, shape index: {}]  }
   0x1   :  { %21 = vsyncpa [#allocation5], 0 }
   0x2   :  { %22 = vsyncpa [#allocation8], 0 }
   0x3   :  { %23 = vsyncpa [#allocation11], 0 }
   0x4   :  { %24 = vsyncpa [#allocation14], 0 }
   0x5   :  { %25 = vsyncpa [#allocation17], 0  ;;  %s9583_s18 = smov [#allocation4]  }
   0x6   :  { %s41_s19 = sshll.u32 %s9583_s18, 4  ;;  %s42_s19 = int_to_ptr.vmem [resolvable:$true] %s41_s19 }
   0x7   :  { %s9359_s20 = scalar_lea.vmem %s42_s19, 2048  ;;  %p9364_p1 = scmp.lt.s32.totalorder %s42_s19, %s42_s19 }
   0x8   :  { %p9360_p0 = scmp.ne.s32.totalorder %s42_s19, %s9359_s20  ;;  %p9365_p2 = scmp.lt.s32.totalorder %s9359_s20, %s9359_s20 }
   0xa   :  { %p9366_p3 = por %p9365_p2, %p9364_p1 }
   0xc   :  { %p9367_p4 = pnand %p9366_p3, %p9360_p0 }
   0xe   :  { %9370 = shalt.err (!%p9367_p4)
}
   0xf   :  { %s9584_s21 = smov 256   ;;  %s9585_s22 = smov 16  }
  0x10   :  { %47 = dma.hbm_to_vmem [thread:$0]  %s9936_s1, 2048, %s42_s19, [#allocation5], %s9584_s21, %s9584_s21, %s9585_s22  }
  0x11   :  { %s9586_s25 = smov [#allocation7]   ;;  %s9587_s27 = smov [#allocation10]  }
  0x12   :  { %s63_s26 = sshll.u32 %s9586_s25, 4  ;;  %s90_s28 = sshll.u32 %s9587_s27, 4  ;;  %s64_s26 = int_to_ptr.vmem [resolvable:$true] %s63_s26  ;;  %s91_s28 = int_to_ptr.vmem [resolvable:$true] %s90_s28 }
  0x13   :  { %s9379_s29 = scalar_lea.vmem %s64_s26, 16384  ;;  %p9384_p6 = scmp.lt.s32.totalorder %s64_s26, %s64_s26 }
  0x14   :  { %p9380_p5 = scmp.ne.s32.totalorder %s64_s26, %s9379_s29  ;;  %p9385_p7 = scmp.lt.s32.totalorder %s9379_s29, %s9379_s29 }
  0x16   :  { %p9386_p8 = por %p9385_p7, %p9384_p6 }
  0x18   :  { %p9387_p9 = pnand %p9386_p8, %p9380_p5 }
  0x1a   :  { %9390 = shalt.err (!%p9387_p9)
}
  0x1b   :  { %69 = dma.hbm_to_vmem [thread:$0]  %s9938_s3, 16384, %s64_s26, [#allocation8], %s9584_s21, %s9584_s21, %s9585_s22  }
  0x1c   :  { %s9399_s1 = scalar_lea.vmem %s91_s28, 64  ;;  %p9404_p11 = scmp.lt.s32.totalorder %s91_s28, %s91_s28 }
  0x1d   :  { %p9400_p10 = scmp.ne.s32.totalorder %s91_s28, %s9399_s1  ;;  %p9405_p12 = scmp.lt.s32.totalorder %s9399_s1, %s9399_s1 }
  0x1f   :  { %p9406_p13 = por %p9405_p12, %p9404_p11 }
  0x21   :  { %p9407_p0 = pnand %p9406_p13, %p9400_p10 }
  0x23   :  { %9410 = shalt.err (!%p9407_p0)
}
  0x24   :  { %93 = dma.hbm_to_vmem [thread:$0]  %s9941_s6, 64, %s91_s28, [#allocation11]  }
  0x25   :  { %s9588_s19 = smov [#allocation13]   ;;  %s9589_s23 = smov [#allocation16]  }
  0x26   :  { %s112_s20 = sshll.u32 %s9588_s19, 4  ;;  %s135_s24 = sshll.u32 %s9589_s23, 4  ;;  %s113_s20 = int_to_ptr.vmem [resolvable:$true] %s112_s20  ;;  %s136_s24 = int_to_ptr.vmem [resolvable:$true] %s135_s24 }
  0x27   :  { %s9419_s25 = scalar_lea.vmem %s113_s20, 64  ;;  %p9424_p2 = scmp.lt.s32.totalorder %s113_s20, %s113_s20 }
  0x28   :  { %p9420_p1 = scmp.ne.s32.totalorder %s113_s20, %s9419_s25  ;;  %p9425_p3 = scmp.lt.s32.totalorder %s9419_s25, %s9419_s25 }
  0x2a   :  { %p9426_p4 = por %p9425_p3, %p9424_p2 }
  0x2c   :  { %p9427_p5 = pnand %p9426_p4, %p9420_p1 }
  0x2e   :  { %9430 = shalt.err (!%p9427_p5)
}
  0x2f   :  { %115 = dma.hbm_to_vmem [thread:$0]  %s9943_s8, 64, %s113_s20, [#allocation14]  }
  0x30   :  { %s9439_s27 = scalar_lea.vmem %s136_s24, 16384  ;;  %p9444_p7 = scmp.lt.s32.totalorder %s136_s24, %s136_s24 }
  0x31   :  { %p9440_p6 = scmp.ne.s32.totalorder %s136_s24, %s9439_s27  ;;  %p9445_p8 = scmp.lt.s32.totalorder %s9439_s27, %s9439_s27 }
  0x33   :  { %p9446_p9 = por %p9445_p8, %p9444_p7 }
  0x35   :  { %p9447_p10 = pnand %p9446_p9, %p9440_p6 }
  0x37   :  { %9450 = shalt.err (!%p9447_p10)
}
  0x38   :  { %141 = dma.hbm_to_vmem [thread:$0]  %s9946_s11, 16384, %s136_s24, [#allocation17], %s9584_s21, %s9584_s21, %s9585_s22  }
  0x39   :  { %s9590_s29 = smov [#allocation2]   ;;  %s9591_s16 = smov [#allocation6]  }
  0x3a   :  { %s32_s30 = sshll.u32 %s9590_s29, 4  ;;  %s54_s8 = sshll.u32 %s9591_s16, 4  ;;  %s33_s30 = int_to_ptr.vmem [resolvable:$true] %s32_s30  ;;  %s55_s8 = int_to_ptr.vmem [resolvable:$true] %s54_s8 }
  0x3b   :  { %s9459_s1 = scalar_lea.vmem %s33_s30, 128  ;;  %p9464_p12 = scmp.lt.s32.totalorder %s33_s30, %s33_s30 }
  0x3c   :  { %p9460_p11 = scmp.ne.s32.totalorder %s33_s30, %s9459_s1  ;;  %p9465_p13 = scmp.lt.s32.totalorder %s9459_s1, %s9459_s1 }
  0x3e   :  { %p9466_p0 = por %p9465_p13, %p9464_p12 }
  0x40   :  { %p9467_p1 = pnand %p9466_p0, %p9460_p11 }
  0x42   :  { %9470 = shalt.err (!%p9467_p1)
}
  0x43   :  { %35 = dma.hbm_to_vmem [thread:$0]  %s9935_s0, 128, %s33_s30, [#allocation3]  }
  0x44   :  { %s9479_s19 = scalar_lea.vmem %s55_s8, 64  ;;  %p9484_p3 = scmp.lt.s32.totalorder %s55_s8, %s55_s8 }
  0x45   :  { %p9480_p2 = scmp.ne.s32.totalorder %s55_s8, %s9479_s19  ;;  %p9485_p4 = scmp.lt.s32.totalorder %s9479_s19, %s9479_s19 }
  0x47   :  { %p9486_p5 = por %p9485_p4, %p9484_p3 }
  0x49   :  { %p9487_p6 = pnand %p9486_p5, %p9480_p2 }
  0x4b   :  { %9490 = shalt.err (!%p9487_p6)
}
  0x4c   :  { %57 = dma.hbm_to_vmem [thread:$0]  %s9937_s2, 64, %s55_s8, [#allocation5]  }
  0x4d   :  { %s9592_s23 = smov [#allocation9]   ;;  %s9593_s25 = smov [#allocation12]  }
  0x4e   :  { %s77_s24 = sshll.u32 %s9592_s23, 4  ;;  %s99_s3 = sshll.u32 %s9593_s25, 4  ;;  %s78_s24 = int_to_ptr.vmem [resolvable:$true] %s77_s24  ;;  %s100_s3 = int_to_ptr.vmem [resolvable:$true] %s99_s3 }
  0x4f   :  { %s9499_s26 = scalar_lea.vmem %s78_s24, 16384  ;;  %p9504_p8 = scmp.lt.s32.totalorder %s78_s24, %s78_s24 }
  0x50   :  { %p9500_p7 = scmp.ne.s32.totalorder %s78_s24, %s9499_s26  ;;  %p9505_p9 = scmp.lt.s32.totalorder %s9499_s26, %s9499_s26 }
  0x52   :  { %p9506_p10 = por %p9505_p9, %p9504_p8 }
  0x54   :  { %p9507_p11 = pnand %p9506_p10, %p9500_p7 }
  0x56   :  { %9510 = shalt.err (!%p9507_p11)
}
  0x57   :  { %83 = dma.hbm_to_vmem [thread:$0]  %s9940_s5, 16384, %s78_s24, [#allocation8], %s9584_s21, %s9584_s21, %s9585_s22  }
  0x58   :  { %s9519_s2 = scalar_lea.vmem %s100_s3, 16384  ;;  %p9524_p13 = scmp.lt.s32.totalorder %s100_s3, %s100_s3 }
  0x59   :  { %p9520_p12 = scmp.ne.s32.totalorder %s100_s3, %s9519_s2  ;;  %p9525_p0 = scmp.lt.s32.totalorder %s9519_s2, %s9519_s2 }
  0x5b   :  { %p9526_p1 = por %p9525_p0, %p9524_p13 }
  0x5d   :  { %p9527_p2 = pnand %p9526_p1, %p9520_p12 }
  0x5f   :  { %9530 = shalt.err (!%p9527_p2)
}
  0x60   :  { %105 = dma.hbm_to_vmem [thread:$0]  %s9942_s7, 16384, %s100_s3, [#allocation11], %s9584_s21, %s9584_s21, %s9585_s22  }
  0x61   :  { %s9594_s29 = smov [#allocation15]   ;;  %s9595_s16 = smov [#allocation18]  }
  0x62   :  { %s121_s30 = sshll.u32 %s9594_s29, 4  ;;  %s149_s5 = sshll.u32 %s9595_s16, 4  ;;  %s122_s30 = int_to_ptr.vmem [resolvable:$true] %s121_s30  ;;  %s150_s5 = int_to_ptr.vmem [resolvable:$true] %s149_s5 }
  0x63   :  { %s9539_s8 = scalar_lea.vmem %s122_s30, 16384  ;;  %p9544_p4 = scmp.lt.s32.totalorder %s122_s30, %s122_s30 }
  0x64   :  { %p9540_p3 = scmp.ne.s32.totalorder %s122_s30, %s9539_s8  ;;  %p9545_p5 = scmp.lt.s32.totalorder %s9539_s8, %s9539_s8 }
  0x66   :  { %p9546_p6 = por %p9545_p5, %p9544_p4 }
  0x68   :  { %p9547_p7 = pnand %p9546_p6, %p9540_p3 }
  0x6a   :  { %9550 = shalt.err (!%p9547_p7)
}
  0x6b   :  { %127 = dma.hbm_to_vmem [thread:$0]  %s9944_s9, 16384, %s122_s30, [#allocation14], %s9584_s21, %s9584_s21, %s9585_s22  }
  0x6c   :  { %s9559_s7 = scalar_lea.vmem %s150_s5, 28672  ;;  %p9564_p9 = scmp.lt.s32.totalorder %s150_s5, %s150_s5 }
  0x6d   :  { %p9560_p8 = scmp.ne.s32.totalorder %s150_s5, %s9559_s7  ;;  %p9565_p10 = scmp.lt.s32.totalorder %s9559_s7, %s9559_s7 }
  0x6f   :  { %p9566_p11 = por %p9565_p10, %p9564_p9 }
  0x71   :  { %p9567_p12 = pnand %p9566_p11, %p9560_p8 }
  0x73   :  { %9570 = shalt.err (!%p9567_p12)
}
  0x74   :  { %s9596_s18 = smov 448   ;;  %s9597_s19 = smov 28  }
  0x75   :  { %155 = dma.hbm_to_vmem [thread:$0]  %s9948_s13, 28672, %s150_s5, [#allocation17], %s9596_s18, %s9596_s18, %s9597_s19  }
  0x76   :  { %9571 = dma.done.wait [#allocation3], 128  }
  0x77   :  { %9572 = vsyncadd [#allocation3], 4294967168 }
  0x78   :  { %9573 = dma.done.wait [#allocation5], 2112  }
  0x79   :  { %9574 = vsyncadd [#allocation5], 4294965184 }
  0x7a   :  { %9575 = dma.done.wait [#allocation8], 32768  }
  0x7b   :  { %9576 = vsyncadd [#allocation8], 4294934528 }
  0x7c   :  { %9577 = dma.done.wait [#allocation11], 16448  }
  0x7d   :  { %9578 = vsyncadd [#allocation11], 4294950848 }
  0x7e   :  { %9579 = dma.done.wait [#allocation14], 16448  }
  0x7f   :  { %9580 = vsyncadd [#allocation14], 4294950848 }
  0x80   :  { %9581 = dma.done.wait [#allocation17], 45056  }
  0x81   :  { %9582 = vsyncadd [#allocation17], 4294922240  ;;  %v9598_v0 = vmov 0   ;;  %v8019_v1 = vld [vmem:[#allocation4 + $0x64] ss:$16 sps:$4 sm:$0xff]   ;;  %v192_v17 = vld [vmem:[#allocation2] sm:$0xff] }
  0x82   :  { %348 = vmatprep.mubr.bf16.mxu0 %v9598_v0  ;;  %389 = vmatprep.mubr.bf16.mxu1 %v9598_v0  ;;  %v8021_v2 = vld [vmem:[#allocation4 + $0x6c] ss:$16 sps:$4 sm:$0xff]   ;;  %v8023_v3 = vld [vmem:[#allocation4 + $0x60] ss:$16 sps:$4 sm:$0xff]   ;;  %v8024_v4 = vld [vmem:[#allocation4 + $0x68] ss:$16 sps:$4 sm:$0xff]   ;;  %v210_v20 = vpack.c.bf16 %v192_v17, %v192_v17 }
  0x83   :  { %324 = vmatprep.subr.bf16.mxu0 %v8019_v1  ;;  %365 = vmatprep.subr.bf16.mxu1 %v8021_v2  ;;  %v8025_v5 = vld [vmem:[#allocation4 + $0x44] ss:$16 sps:$4 sm:$0xff]   ;;  %v8027_v6 = vld [vmem:[#allocation4 + $0x4c] ss:$16 sps:$4 sm:$0xff]   ;;  %v8029_v7 = vld [vmem:[#allocation4 + $0x40] ss:$16 sps:$4 sm:$0xff]  }
  0x84   :  { %325 = vmatpush1.bf16.msra.mxu0 %v8023_v3  ;;  %366 = vmatpush1.bf16.msra.mxu1 %v8024_v4  ;;  %v8030_v8 = vld [vmem:[#allocation4 + $0x48] ss:$16 sps:$4 sm:$0xff]   ;;  %v8031_v9 = vld [vmem:[#allocation4 + $0x24] ss:$16 sps:$4 sm:$0xff]   ;;  %v8033_v10 = vld [vmem:[#allocation4 + $0x2c] ss:$16 sps:$4 sm:$0xff]  }
  0x85   :  { %326 = vmatprep.subr.bf16.mxu0 %v8025_v5  ;;  %367 = vmatprep.subr.bf16.mxu1 %v8027_v6  ;;  %v8035_v11 = vld [vmem:[#allocation4 + $0x20] ss:$16 sps:$4 sm:$0xff]   ;;  %v8036_v12 = vld [vmem:[#allocation4 + $0x28] ss:$16 sps:$4 sm:$0xff]   ;;  %v8037_v13 = vld [vmem:[#allocation4 + $0x4] ss:$16 sps:$4 sm:$0xff]  }
  0x86   :  { %v8039_v14 = vld [vmem:[#allocation4 + $0xc] ss:$16 sps:$4 sm:$0xff]   ;;  %v8041_v15 = vld [vmem:[#allocation4] ss:$16 sps:$4 sm:$0xff]   ;;  %v8042_v16 = vld [vmem:[#allocation4 + $0x8] ss:$16 sps:$4 sm:$0xff]  }
  0x87   :  { %v8045_v18 = vld [vmem:[#allocation7 + $0xe4] ss:$16 sps:$4 sm:$0xff]   ;;  %v8043_v21 = vld [vmem:[#allocation7 + $0xe0] ss:$16 sps:$4 sm:$0xff]   ;;  %vm312_vm0 = vcmask 523264  }
  0x88   :  { %327 = vmatpush1.bf16.msra.mxu0 %v8029_v7  ;;  %368 = vmatpush1.bf16.msra.mxu1 %v8030_v8  ;;  %v8048_v19 = vld [vmem:[#allocation7 + $0x2e4] ss:$16 sps:$4 sm:$0xff]   ;;  %v8046_v22 = vld [vmem:[#allocation7 + $0x2e0] ss:$16 sps:$4 sm:$0xff]  }
  0x89   :  { %328 = vmatprep.subr.bf16.mxu0 %v8031_v9  ;;  %369 = vmatprep.subr.bf16.mxu1 %v8033_v10  ;;  %v8051_v23 = vld [vmem:[#allocation7 + $0xc4] ss:$16 sps:$4 sm:$0xff]   ;;  %v8049_v25 = vld [vmem:[#allocation7 + $0xc0] ss:$16 sps:$4 sm:$0xff]  }
  0x8a   :  { %v8054_v24 = vld [vmem:[#allocation7 + $0x2c4] ss:$16 sps:$4 sm:$0xff]   ;;  %v8052_v26 = vld [vmem:[#allocation7 + $0x2c0] ss:$16 sps:$4 sm:$0xff]  }
  0x8b   :  { %v8057_v27 = vld [vmem:[#allocation7 + $0xa4] ss:$16 sps:$4 sm:$0xff]   ;;  %v8055_v29 = vld [vmem:[#allocation7 + $0xa0] ss:$16 sps:$4 sm:$0xff]  }
  0x8c   :  { %329 = vmatpush1.bf16.msra.mxu0 %v8035_v11  ;;  %370 = vmatpush1.bf16.msra.mxu1 %v8036_v12  ;;  %v8060_v28 = vld [vmem:[#allocation7 + $0x2a4] ss:$16 sps:$4 sm:$0xff]   ;;  %v8058_v30 = vld [vmem:[#allocation7 + $0x2a0] ss:$16 sps:$4 sm:$0xff]  }
  0x8d   :  { %330 = vmatprep.subr.bf16.mxu0 %v8037_v13  ;;  %371 = vmatprep.subr.bf16.mxu1 %v8039_v14  ;;  %v8063_v31 = vld [vmem:[#allocation7 + $0x84] ss:$16 sps:$4 sm:$0xff]   ;;  %v8061_v33 = vld [vmem:[#allocation7 + $0x80] ss:$16 sps:$4 sm:$0xff]  }
  0x8e   :  { %v8066_v32 = vld [vmem:[#allocation7 + $0x284] ss:$16 sps:$4 sm:$0xff]   ;;  %v8064_v34 = vld [vmem:[#allocation7 + $0x280] ss:$16 sps:$4 sm:$0xff]  }
  0x8f   :  { %v8069_v35 = vld [vmem:[#allocation7 + $0x64] ss:$16 sps:$4 sm:$0xff]   ;;  %v8067_v37 = vld [vmem:[#allocation7 + $0x60] ss:$16 sps:$4 sm:$0xff]  }
  0x90   :  { %331 = vmatpush1.bf16.msra.mxu0 %v8041_v15  ;;  %372 = vmatpush1.bf16.msra.mxu1 %v8042_v16  ;;  %v8072_v36 = vld [vmem:[#allocation7 + $0x264] ss:$16 sps:$4 sm:$0xff]   ;;  %v8070_v38 = vld [vmem:[#allocation7 + $0x260] ss:$16 sps:$4 sm:$0xff]  }
  0x91   :  { %1200 = vmatprep.subr.bf16.mxu0 %v8045_v18  ;;  %1241 = vmatprep.subr.bf16.mxu1 %v8048_v19  ;;  %v8075_v39 = vld [vmem:[#allocation7 + $0x44] ss:$16 sps:$4 sm:$0xff]   ;;  %v8073_v41 = vld [vmem:[#allocation7 + $0x40] ss:$16 sps:$4 sm:$0xff]   ;;  %v8141_v19 = vld [vmem:[#allocation7 + $0xec] ss:$16 sps:$4 sm:$0xff]  }
  0x92   :  { %v8078_v40 = vld [vmem:[#allocation7 + $0x244] ss:$16 sps:$4 sm:$0xff]   ;;  %v8076_v42 = vld [vmem:[#allocation7 + $0x240] ss:$16 sps:$4 sm:$0xff]  }
  0x93   :  { %7086 = vmatmul.mubr.msk.bf16.vlgmr.msra.gmra.mxu0 %vm312_vm0, %v210_v20  ;;  %7087 = vmatmul.mubr.msk.bf16.vlgmr.msra.gmra.mxu1 %vm312_vm0, %v210_v20  ;;  %v8081_v43 = vld [vmem:[#allocation7 + $0x24] ss:$16 sps:$4 sm:$0xff]   ;;  %v8079_v45 = vld [vmem:[#allocation7 + $0x20] ss:$16 sps:$4 sm:$0xff]   ;;  %v8144_v20 = vld [vmem:[#allocation7 + $0x2ec] ss:$16 sps:$4 sm:$0xff]  }
  0x94   :  { %1201 = vmatpush1.bf16.msra.mxu0 %v8043_v21  ;;  %1242 = vmatpush1.bf16.msra.mxu1 %v8046_v22  ;;  %v8084_v44 = vld [vmem:[#allocation7 + $0x224] ss:$16 sps:$4 sm:$0xff]   ;;  %v8082_v46 = vld [vmem:[#allocation7 + $0x220] ss:$16 sps:$4 sm:$0xff]   ;;  %v212_v21 = vlaneseq }
  0x95   :  { %1202 = vmatprep.subr.bf16.mxu0 %v8051_v23  ;;  %1243 = vmatprep.subr.bf16.mxu1 %v8054_v24  ;;  %v8087_v47 = vld [vmem:[#allocation7 + $0x4] ss:$16 sps:$4 sm:$0xff]   ;;  %v8085_v49 = vld [vmem:[#allocation7] ss:$16 sps:$4 sm:$0xff]   ;;  %v209_v23 = vld [vmem:[#allocation6] sm:$0xf] }
  0x96   :  { %v8090_v48 = vld [vmem:[#allocation7 + $0x204] ss:$16 sps:$4 sm:$0xff]   ;;  %v8088_v50 = vld [vmem:[#allocation7 + $0x200] ss:$16 sps:$4 sm:$0xff]   ;;  %v9730_v22 = vshrl.u32 %v212_v21, 7 }
  0x97   :  { %v8093_v51 = vld [vmem:[#allocation7 + $0x1e4] ss:$16 sps:$4 sm:$0xff]   ;;  %v8091_v53 = vld [vmem:[#allocation7 + $0x1e0] ss:$16 sps:$4 sm:$0xff]   ;;  %v8184_v21 = vld [vmem:[#allocation7 + $0x208] ss:$16 sps:$4 sm:$0xff]  }
  0x98   :  { %1203 = vmatpush1.bf16.msra.mxu0 %v8049_v25  ;;  %1244 = vmatpush1.bf16.msra.mxu1 %v8052_v26  ;;  %v8096_v52 = vld [vmem:[#allocation7 + $0x3e4] ss:$16 sps:$4 sm:$0xff]   ;;  %v8094_v54 = vld [vmem:[#allocation7 + $0x3e0] ss:$16 sps:$4 sm:$0xff]   ;;  %v9733_v24 = vsub.s32 0, %v9730_v22  ;;  %v9736_v25 = vsub.s32 2, %v9730_v22 }
  0x99   :  { %1204 = vmatprep.subr.bf16.mxu0 %v8057_v27  ;;  %1245 = vmatprep.subr.bf16.mxu1 %v8060_v28  ;;  %v8099_v55 = vld [vmem:[#allocation7 + $0x1c4] ss:$16 sps:$4 sm:$0xff]   ;;  %v8097_v57 = vld [vmem:[#allocation7 + $0x1c0] ss:$16 sps:$4 sm:$0xff]   ;;  %v9739_v26 = vsub.s32 1, %v9730_v22  ;;  %v9742_v27 = vsub.s32 3, %v9730_v22 }
  0x9a   :  { %v8102_v56 = vld [vmem:[#allocation7 + $0x3c4] ss:$16 sps:$4 sm:$0xff]   ;;  %v8100_v58 = vld [vmem:[#allocation7 + $0x3c0] ss:$16 sps:$4 sm:$0xff]   ;;  %v215_v28 = vrot.slane %v209_v23, %v9733_v24 }
  0x9b   :  { %v8105_v59 = vld [vmem:[#allocation7 + $0x1a4] ss:$16 sps:$4 sm:$0xff]   ;;  %v8103_v61 = vld [vmem:[#allocation7 + $0x1a0] ss:$16 sps:$4 sm:$0xff]  }
  0x9c   :  { %1205 = vmatpush1.bf16.msra.mxu0 %v8055_v29  ;;  %1246 = vmatpush1.bf16.msra.mxu1 %v8058_v30  ;;  %v8108_v60 = vld [vmem:[#allocation7 + $0x3a4] ss:$16 sps:$4 sm:$0xff]   ;;  %v8106_v62 = vld [vmem:[#allocation7 + $0x3a0] ss:$16 sps:$4 sm:$0xff]   ;;  %v223_v29 = vrot.slane %v209_v23, %v9736_v25  ;;  %v219_v30 = vrot.slane %v209_v23, %v9739_v26 }
  0x9d   :  { %1206 = vmatprep.subr.bf16.mxu0 %v8063_v31  ;;  %1247 = vmatprep.subr.bf16.mxu1 %v8066_v32  ;;  %v8111_v63 = vld [vmem:[#allocation7 + $0x184] ss:$16 sps:$4 sm:$0xff]   ;;  %v8109_v1 = vld [vmem:[#allocation7 + $0x180] ss:$16 sps:$4 sm:$0xff]   ;;  %v227_v31 = vrot.slane %v209_v23, %v9742_v27  ;;  %v8189_v23 = vld [vmem:[#allocation7 + $0x1ec] ss:$16 sps:$4 sm:$0xff]  }
  0x9e   :  { %v8114_v0 = vld [vmem:[#allocation7 + $0x384] ss:$16 sps:$4 sm:$0xff]   ;;  %v8112_v2 = vld [vmem:[#allocation7 + $0x380] ss:$16 sps:$4 sm:$0xff]  }
  0x9f   :  { %v8117_v3 = vld [vmem:[#allocation7 + $0x164] ss:$16 sps:$4 sm:$0xff]   ;;  %v8115_v5 = vld [vmem:[#allocation7 + $0x160] ss:$16 sps:$4 sm:$0xff]  }
  0xa0   :  { %1207 = vmatpush1.bf16.msra.mxu0 %v8061_v33  ;;  %1248 = vmatpush1.bf16.msra.mxu1 %v8064_v34  ;;  %v8120_v4 = vld [vmem:[#allocation7 + $0x364] ss:$16 sps:$4 sm:$0xff]   ;;  %v8118_v6 = vld [vmem:[#allocation7 + $0x360] ss:$16 sps:$4 sm:$0xff]  }
  0xa1   :  { %1208 = vmatprep.subr.bf16.mxu0 %v8069_v35  ;;  %1249 = vmatprep.subr.bf16.mxu1 %v8072_v36  ;;  %v8123_v7 = vld [vmem:[#allocation7 + $0x144] ss:$16 sps:$4 sm:$0xff]   ;;  %v8121_v9 = vld [vmem:[#allocation7 + $0x140] ss:$16 sps:$4 sm:$0xff]  }
  0xa2   :  { %v8126_v8 = vld [vmem:[#allocation7 + $0x344] ss:$16 sps:$4 sm:$0xff]   ;;  %v8124_v10 = vld [vmem:[#allocation7 + $0x340] ss:$16 sps:$4 sm:$0xff]  }
  0xa3   :  { %v8129_v11 = vld [vmem:[#allocation7 + $0x124] ss:$16 sps:$4 sm:$0xff]   ;;  %v8127_v13 = vld [vmem:[#allocation7 + $0x120] ss:$16 sps:$4 sm:$0xff]  }
  0xa4   :  { %1209 = vmatpush1.bf16.msra.mxu0 %v8067_v37  ;;  %1250 = vmatpush1.bf16.msra.mxu1 %v8070_v38  ;;  %v8132_v12 = vld [vmem:[#allocation7 + $0x324] ss:$16 sps:$4 sm:$0xff]   ;;  %v8130_v14 = vld [vmem:[#allocation7 + $0x320] ss:$16 sps:$4 sm:$0xff]  }
  0xa5   :  { %1210 = vmatprep.subr.bf16.mxu0 %v8075_v39  ;;  %1251 = vmatprep.subr.bf16.mxu1 %v8078_v40  ;;  %v8135_v15 = vld [vmem:[#allocation7 + $0x104] ss:$16 sps:$4 sm:$0xff]   ;;  %v8133_v17 = vld [vmem:[#allocation7 + $0x100] ss:$16 sps:$4 sm:$0xff]  }
  0xa6   :  { %v8138_v16 = vld [vmem:[#allocation7 + $0x304] ss:$16 sps:$4 sm:$0xff]   ;;  %v8136_v18 = vld [vmem:[#allocation7 + $0x300] ss:$16 sps:$4 sm:$0xff]  }
  0xa8   :  { %1211 = vmatpush1.bf16.msra.mxu0 %v8073_v41  ;;  %1252 = vmatpush1.bf16.msra.mxu1 %v8076_v42 }
  0xa9   :  { %1212 = vmatprep.subr.bf16.mxu0 %v8081_v43  ;;  %1253 = vmatprep.subr.bf16.mxu1 %v8084_v44 }
  0xac   :  { %1213 = vmatpush1.bf16.msra.mxu0 %v8079_v45  ;;  %1254 = vmatpush1.bf16.msra.mxu1 %v8082_v46 }
  0xad   :  { %1214 = vmatprep.subr.bf16.mxu0 %v8087_v47  ;;  %1255 = vmatprep.subr.bf16.mxu1 %v8090_v48 }
  0xb0   :  { %1215 = vmatpush1.bf16.msra.mxu0 %v8085_v49  ;;  %1256 = vmatpush1.bf16.msra.mxu1 %v8088_v50 }
  0xb1   :  { %1216 = vmatprep.subr.bf16.mxu0 %v8093_v51  ;;  %1257 = vmatprep.subr.bf16.mxu1 %v8096_v52  ;;  %v8139_v52 = vld [vmem:[#allocation7 + $0xe8] ss:$16 sps:$4 sm:$0xff]  }
  0xb4   :  { %1217 = vmatpush2.bf16.msra.mxu0 %v8091_v53  ;;  %1258 = vmatpush2.bf16.msra.mxu1 %v8094_v54  ;;  %v8142_v53 = vld [vmem:[#allocation7 + $0x2e8] ss:$16 sps:$4 sm:$0xff]  }
  0xb5   :  { %1218 = vmatprep.subr.bf16.mxu0 %v8099_v55  ;;  %1259 = vmatprep.subr.bf16.mxu1 %v8102_v56  ;;  %v8147_v56 = vld [vmem:[#allocation7 + $0xcc] ss:$16 sps:$4 sm:$0xff]  }
  0xb8   :  { %1219 = vmatpush2.bf16.msra.mxu0 %v8097_v57  ;;  %1260 = vmatpush2.bf16.msra.mxu1 %v8100_v58  ;;  %v8150_v57 = vld [vmem:[#allocation7 + $0x2cc] ss:$16 sps:$4 sm:$0xff]  }
  0xb9   :  { %1220 = vmatprep.subr.bf16.mxu0 %v8105_v59  ;;  %1261 = vmatprep.subr.bf16.mxu1 %v8108_v60  ;;  %v8145_v60 = vld [vmem:[#allocation7 + $0xc8] ss:$16 sps:$4 sm:$0xff]  }
  0xbc   :  { %1221 = vmatpush2.bf16.msra.mxu0 %v8103_v61  ;;  %1262 = vmatpush2.bf16.msra.mxu1 %v8106_v62  ;;  %v8148_v61 = vld [vmem:[#allocation7 + $0x2c8] ss:$16 sps:$4 sm:$0xff]   ;;  %v8153_v62 = vld [vmem:[#allocation7 + $0xac] ss:$16 sps:$4 sm:$0xff]  }
  0xbd   :  { %1222 = vmatprep.subr.bf16.mxu0 %v8111_v63  ;;  %1263 = vmatprep.subr.bf16.mxu1 %v8114_v0  ;;  %v8156_v63 = vld [vmem:[#allocation7 + $0x2ac] ss:$16 sps:$4 sm:$0xff]   ;;  %v8151_v0 = vld [vmem:[#allocation7 + $0xa8] ss:$16 sps:$4 sm:$0xff]  }
  0xc0   :  { %1223 = vmatpush2.bf16.msra.mxu0 %v8109_v1  ;;  %1264 = vmatpush2.bf16.msra.mxu1 %v8112_v2  ;;  %v8154_v1 = vld [vmem:[#allocation7 + $0x2a8] ss:$16 sps:$4 sm:$0xff]   ;;  %v8159_v2 = vld [vmem:[#allocation7 + $0x8c] ss:$16 sps:$4 sm:$0xff]  }
  0xc1   :  { %1224 = vmatprep.subr.bf16.mxu0 %v8117_v3  ;;  %1265 = vmatprep.subr.bf16.mxu1 %v8120_v4  ;;  %v8162_v3 = vld [vmem:[#allocation7 + $0x28c] ss:$16 sps:$4 sm:$0xff]   ;;  %v8157_v4 = vld [vmem:[#allocation7 + $0x88] ss:$16 sps:$4 sm:$0xff]  }
  0xc4   :  { %1225 = vmatpush2.bf16.msra.mxu0 %v8115_v5  ;;  %1266 = vmatpush2.bf16.msra.mxu1 %v8118_v6  ;;  %v8160_v5 = vld [vmem:[#allocation7 + $0x288] ss:$16 sps:$4 sm:$0xff]   ;;  %v8165_v6 = vld [vmem:[#allocation7 + $0x6c] ss:$16 sps:$4 sm:$0xff]  }
  0xc5   :  { %1226 = vmatprep.subr.bf16.mxu0 %v8123_v7  ;;  %1267 = vmatprep.subr.bf16.mxu1 %v8126_v8  ;;  %v8168_v7 = vld [vmem:[#allocation7 + $0x26c] ss:$16 sps:$4 sm:$0xff]   ;;  %v8163_v8 = vld [vmem:[#allocation7 + $0x68] ss:$16 sps:$4 sm:$0xff]  }
  0xc8   :  { %1227 = vmatpush2.bf16.msra.mxu0 %v8121_v9  ;;  %1268 = vmatpush2.bf16.msra.mxu1 %v8124_v10  ;;  %v8166_v9 = vld [vmem:[#allocation7 + $0x268] ss:$16 sps:$4 sm:$0xff]   ;;  %v8171_v10 = vld [vmem:[#allocation7 + $0x4c] ss:$16 sps:$4 sm:$0xff]  }
  0xc9   :  { %1228 = vmatprep.subr.bf16.mxu0 %v8129_v11  ;;  %1269 = vmatprep.subr.bf16.mxu1 %v8132_v12  ;;  %v8174_v11 = vld [vmem:[#allocation7 + $0x24c] ss:$16 sps:$4 sm:$0xff]   ;;  %v8169_v12 = vld [vmem:[#allocation7 + $0x48] ss:$16 sps:$4 sm:$0xff]  }
  0xcc   :  { %1229 = vmatpush2.bf16.msra.mxu0 %v8127_v13  ;;  %1270 = vmatpush2.bf16.msra.mxu1 %v8130_v14  ;;  %v8172_v13 = vld [vmem:[#allocation7 + $0x248] ss:$16 sps:$4 sm:$0xff]   ;;  %v8177_v14 = vld [vmem:[#allocation7 + $0x2c] ss:$16 sps:$4 sm:$0xff]  }
  0xcd   :  { %1230 = vmatprep.subr.bf16.mxu0 %v8135_v15  ;;  %1271 = vmatprep.subr.bf16.mxu1 %v8138_v16  ;;  %v8180_v15 = vld [vmem:[#allocation7 + $0x22c] ss:$16 sps:$4 sm:$0xff]   ;;  %v8175_v16 = vld [vmem:[#allocation7 + $0x28] ss:$16 sps:$4 sm:$0xff]  }
  0xd0   :  { %1231 = vmatpush2.bf16.msra.mxu0 %v8133_v17  ;;  %1272 = vmatpush2.bf16.msra.mxu1 %v8136_v18  ;;  %v8178_v17 = vld [vmem:[#allocation7 + $0x228] ss:$16 sps:$4 sm:$0xff]   ;;  %v8183_v18 = vld [vmem:[#allocation7 + $0xc] ss:$16 sps:$4 sm:$0xff]  }
  0xd1   :  { %1282 = vmatprep.subr.bf16.mxu0 %v8141_v19  ;;  %1323 = vmatprep.subr.bf16.mxu1 %v8144_v20  ;;  %v8186_v19 = vld [vmem:[#allocation7 + $0x20c] ss:$16 sps:$4 sm:$0xff]   ;;  %v8181_v20 = vld [vmem:[#allocation7 + $0x8] ss:$16 sps:$4 sm:$0xff]  }
 0x153   :  { %v350_v32 = vpop.f32.mrf.mxu0  ;;  %v391_v33 = vpop.f32.mrf.mxu1 }
 0x154   :  { %v351_v34 = vadd.f32 %v350_v32, %v215_v28  ;;  %v392_v35 = vadd.f32 %v391_v33, %v223_v29  ;;  %v8192_v28 = vld [vmem:[#allocation7 + $0x3ec] ss:$16 sps:$4 sm:$0xff]   ;;  %v8187_v29 = vld [vmem:[#allocation7 + $0x1e8] ss:$16 sps:$4 sm:$0xff]  }
 0x155   :  { %v352_v36 = vpop.f32.mrf.mxu0  ;;  %v393_v37 = vpop.f32.mrf.mxu1  ;;  %v8198_v32 = vld [vmem:[#allocation7 + $0x3cc] ss:$16 sps:$4 sm:$0xff]   ;;  %v8193_v33 = vld [vmem:[#allocation7 + $0x1c8] ss:$16 sps:$4 sm:$0xff]  }
 0x156   :  { %v398_v38 = vmul.f32 0.2, %v351_v34  ;;  %v400_v39 = vmul.f32 0.2, %v392_v35  ;;  %v353_v40 = vadd.f32 %v352_v36, %v219_v30  ;;  %v394_v41 = vadd.f32 %v393_v37, %v227_v31  ;;  %v8190_v30 = vld [vmem:[#allocation7 + $0x3e8] ss:$16 sps:$4 sm:$0xff]  }
 0x157   :  { %v354_v42 = vpop.f32.mrf.mxu0  ;;  %v395_v43 = vpop.f32.mrf.mxu1  ;;  %v8195_v31 = vld [vmem:[#allocation7 + $0x1cc] ss:$16 sps:$4 sm:$0xff]   ;;  %v8199_v37 = vld [vmem:[#allocation7 + $0x1a8] ss:$16 sps:$4 sm:$0xff]  }
 0x158   :  { %v399_v44 = vmul.f32 0.2, %v353_v40  ;;  %v401_v45 = vmul.f32 0.2, %v394_v41  ;;  %v402_v46 = vmax.f32 %v351_v34, %v398_v38  ;;  %v404_v47 = vmax.f32 %v392_v35, %v400_v39  ;;  %v8196_v34 = vld [vmem:[#allocation7 + $0x3c8] ss:$16 sps:$4 sm:$0xff]  }
 0x159   :  { %v355_v48 = vpop.f32.mrf.mxu0  ;;  %v396_v49 = vpop.f32.mrf.mxu1  ;;  %v8201_v35 = vld [vmem:[#allocation7 + $0x1ac] ss:$16 sps:$4 sm:$0xff]   ;;  %v8202_v38 = vld [vmem:[#allocation7 + $0x3a8] ss:$16 sps:$4 sm:$0xff]  }
 0x15a   :  { %v403_v50 = vmax.f32 %v353_v40, %v399_v44  ;;  %v405_v51 = vmax.f32 %v394_v41, %v401_v45  ;;  %v9748_v58 = vpack.c.bf16 %v402_v46, %v402_v46  ;;  %v9750_v59 = vpack.c.bf16 %v404_v47, %v404_v47  ;;  %v8204_v36 = vld [vmem:[#allocation7 + $0x3ac] ss:$16 sps:$4 sm:$0xff]   ;;  %v8205_v41 = vld [vmem:[#allocation7 + $0x188] ss:$16 sps:$4 sm:$0xff]  }
 0x15b   :  { %v8207_v39 = vld [vmem:[#allocation7 + $0x18c] ss:$16 sps:$4 sm:$0xff]   ;;  %v8208_v42 = vld [vmem:[#allocation7 + $0x388] ss:$16 sps:$4 sm:$0xff]  }
 0x15c   :  { %v536_v54 = vpack.c.bf16 %v403_v50, %v403_v50  ;;  %v538_v55 = vpack.c.bf16 %v405_v51, %v405_v51  ;;  %v8210_v40 = vld [vmem:[#allocation7 + $0x38c] ss:$16 sps:$4 sm:$0xff]   ;;  %v8211_v45 = vld [vmem:[#allocation7 + $0x168] ss:$16 sps:$4 sm:$0xff]  }
 0x15d   :  { %v8213_v43 = vld [vmem:[#allocation7 + $0x16c] ss:$16 sps:$4 sm:$0xff]   ;;  %v8214_v46 = vld [vmem:[#allocation7 + $0x368] ss:$16 sps:$4 sm:$0xff]  }
 0x15e   :  { %1232 = vmatprep.mubr.bf16.mxu0 %v536_v54  ;;  %1273 = vmatprep.mubr.bf16.mxu1 %v538_v55  ;;  %v8216_v44 = vld [vmem:[#allocation7 + $0x36c] ss:$16 sps:$4 sm:$0xff]   ;;  %v8217_v49 = vld [vmem:[#allocation7 + $0x148] ss:$16 sps:$4 sm:$0xff]  }
 0x15f   :  { %1233 = vmatmul.mubr.bf16.vlgmr.msra.gmra.mxu0 %v9748_v58  ;;  %1274 = vmatmul.mubr.bf16.vlgmr.msra.gmra.mxu1 %v9750_v59  ;;  %v8219_v47 = vld [vmem:[#allocation7 + $0x14c] ss:$16 sps:$4 sm:$0xff]   ;;  %v8220_v50 = vld [vmem:[#allocation7 + $0x348] ss:$16 sps:$4 sm:$0xff]  }
 0x160   :  { %1283 = vmatpush1.bf16.msra.mxu0 %v8139_v52  ;;  %1324 = vmatpush1.bf16.msra.mxu1 %v8142_v53  ;;  %v8222_v48 = vld [vmem:[#allocation7 + $0x34c] ss:$16 sps:$4 sm:$0xff]   ;;  %v8223_v53 = vld [vmem:[#allocation7 + $0x128] ss:$16 sps:$4 sm:$0xff]  }
 0x161   :  { %1314 = vmatprep.mubr.bf16.mxu0 %v536_v54  ;;  %1355 = vmatprep.mubr.bf16.mxu1 %v538_v55  ;;  %v8225_v51 = vld [vmem:[#allocation7 + $0x12c] ss:$16 sps:$4 sm:$0xff]   ;;  %v8226_v54 = vld [vmem:[#allocation7 + $0x328] ss:$16 sps:$4 sm:$0xff]  }
 0x162   :  { %1284 = vmatprep.subr.bf16.mxu0 %v8147_v56  ;;  %1325 = vmatprep.subr.bf16.mxu1 %v8150_v57  ;;  %v8228_v52 = vld [vmem:[#allocation7 + $0x32c] ss:$16 sps:$4 sm:$0xff]   ;;  %v8229_v57 = vld [vmem:[#allocation7 + $0x108] ss:$16 sps:$4 sm:$0xff]  }
 0x163   :  { %v8231_v55 = vld [vmem:[#allocation7 + $0x10c] ss:$16 sps:$4 sm:$0xff]  }
 0x164   :  { %1285 = vmatpush1.bf16.msra.mxu0 %v8145_v60  ;;  %1326 = vmatpush1.bf16.msra.mxu1 %v8148_v61  ;;  %v8234_v56 = vld [vmem:[#allocation7 + $0x30c] ss:$16 sps:$4 sm:$0xff]   ;;  %v8232_v60 = vld [vmem:[#allocation7 + $0x308] ss:$16 sps:$4 sm:$0xff]   ;;  %v8237_v61 = vld [vmem:[#allocation9 + $0xe4] ss:$16 sps:$4 sm:$0xff]  }
 0x165   :  { %1286 = vmatprep.subr.bf16.mxu0 %v8153_v62  ;;  %1327 = vmatprep.subr.bf16.mxu1 %v8156_v63  ;;  %v8235_v62 = vld [vmem:[#allocation9 + $0xe0] ss:$16 sps:$4 sm:$0xff]   ;;  %v8240_v63 = vld [vmem:[#allocation9 + $0xc4] ss:$16 sps:$4 sm:$0xff]  }
 0x168   :  { %1287 = vmatpush1.bf16.msra.mxu0 %v8151_v0  ;;  %1328 = vmatpush1.bf16.msra.mxu1 %v8154_v1  ;;  %v8238_v0 = vld [vmem:[#allocation9 + $0xc0] ss:$16 sps:$4 sm:$0xff]   ;;  %v8243_v1 = vld [vmem:[#allocation9 + $0xa4] ss:$16 sps:$4 sm:$0xff]  }
 0x169   :  { %1288 = vmatprep.subr.bf16.mxu0 %v8159_v2  ;;  %1329 = vmatprep.subr.bf16.mxu1 %v8162_v3  ;;  %v8241_v2 = vld [vmem:[#allocation9 + $0xa0] ss:$16 sps:$4 sm:$0xff]   ;;  %v8246_v3 = vld [vmem:[#allocation9 + $0x84] ss:$16 sps:$4 sm:$0xff]  }
 0x16c   :  { %1289 = vmatpush1.bf16.msra.mxu0 %v8157_v4  ;;  %1330 = vmatpush1.bf16.msra.mxu1 %v8160_v5  ;;  %v8244_v4 = vld [vmem:[#allocation9 + $0x80] ss:$16 sps:$4 sm:$0xff]   ;;  %v8249_v5 = vld [vmem:[#allocation9 + $0x64] ss:$16 sps:$4 sm:$0xff]  }
 0x16d   :  { %1290 = vmatprep.subr.bf16.mxu0 %v8165_v6  ;;  %1331 = vmatprep.subr.bf16.mxu1 %v8168_v7  ;;  %v8283_v6 = vld [vmem:[#allocation9 + $0x2e0] ss:$16 sps:$4 sm:$0xff]   ;;  %v8285_v7 = vld [vmem:[#allocation9 + $0x2e4] ss:$16 sps:$4 sm:$0xff]  }
 0x170   :  { %1291 = vmatpush1.bf16.msra.mxu0 %v8163_v8  ;;  %1332 = vmatpush1.bf16.msra.mxu1 %v8166_v9  ;;  %v8247_v8 = vld [vmem:[#allocation9 + $0x60] ss:$16 sps:$4 sm:$0xff]   ;;  %v8252_v9 = vld [vmem:[#allocation9 + $0x44] ss:$16 sps:$4 sm:$0xff]  }
 0x171   :  { %1292 = vmatprep.subr.bf16.mxu0 %v8171_v10  ;;  %1333 = vmatprep.subr.bf16.mxu1 %v8174_v11  ;;  %v8291_v10 = vld [vmem:[#allocation9 + $0x2c4] ss:$16 sps:$4 sm:$0xff]  }
 0x172   :  { %v8255_v11 = vld [vmem:[#allocation9 + $0x24] ss:$16 sps:$4 sm:$0xff]  }
 0x174   :  { %1293 = vmatpush1.bf16.msra.mxu0 %v8169_v12  ;;  %1334 = vmatpush1.bf16.msra.mxu1 %v8172_v13  ;;  %v8253_v12 = vld [vmem:[#allocation9 + $0x20] ss:$16 sps:$4 sm:$0xff]  }
 0x175   :  { %1294 = vmatprep.subr.bf16.mxu0 %v8177_v14  ;;  %1335 = vmatprep.subr.bf16.mxu1 %v8180_v15  ;;  %v8295_v13 = vld [vmem:[#allocation9 + $0x2a0] ss:$16 sps:$4 sm:$0xff]   ;;  %v8297_v14 = vld [vmem:[#allocation9 + $0x2a4] ss:$16 sps:$4 sm:$0xff]  }
 0x176   :  { %v8258_v15 = vld [vmem:[#allocation9 + $0x4] ss:$16 sps:$4 sm:$0xff]  }
 0x178   :  { %1295 = vmatpush1.bf16.msra.mxu0 %v8175_v16  ;;  %1336 = vmatpush1.bf16.msra.mxu1 %v8178_v17  ;;  %v8256_v16 = vld [vmem:[#allocation9] ss:$16 sps:$4 sm:$0xff]  }
 0x179   :  { %1296 = vmatprep.subr.bf16.mxu0 %v8183_v18  ;;  %1337 = vmatprep.subr.bf16.mxu1 %v8186_v19  ;;  %v8301_v17 = vld [vmem:[#allocation9 + $0x280] ss:$16 sps:$4 sm:$0xff]   ;;  %v8303_v18 = vld [vmem:[#allocation9 + $0x284] ss:$16 sps:$4 sm:$0xff]  }
 0x17a   :  { %v8261_v19 = vld [vmem:[#allocation9 + $0x1e4] ss:$16 sps:$4 sm:$0xff]  }
 0x17c   :  { %1297 = vmatpush1.bf16.msra.mxu0 %v8181_v20  ;;  %1338 = vmatpush1.bf16.msra.mxu1 %v8184_v21  ;;  %v8259_v20 = vld [vmem:[#allocation9 + $0x1e0] ss:$16 sps:$4 sm:$0xff]  }
 0x17d   :  { %1298 = vmatprep.subr.bf16.mxu0 %v8189_v23  ;;  %1339 = vmatprep.subr.bf16.mxu1 %v8192_v28  ;;  %v8307_v21 = vld [vmem:[#allocation9 + $0x260] ss:$16 sps:$4 sm:$0xff]   ;;  %v8309_v23 = vld [vmem:[#allocation9 + $0x264] ss:$16 sps:$4 sm:$0xff]  }
 0x17e   :  { %v8264_v28 = vld [vmem:[#allocation9 + $0x1c4] ss:$16 sps:$4 sm:$0xff]  }
 0x180   :  { %1299 = vmatpush2.bf16.msra.mxu0 %v8187_v29  ;;  %1340 = vmatpush2.bf16.msra.mxu1 %v8190_v30  ;;  %v8262_v29 = vld [vmem:[#allocation9 + $0x1c0] ss:$16 sps:$4 sm:$0xff]  }
 0x181   :  { %1300 = vmatprep.subr.bf16.mxu0 %v8195_v31  ;;  %1341 = vmatprep.subr.bf16.mxu1 %v8198_v32  ;;  %v8313_v30 = vld [vmem:[#allocation9 + $0x240] ss:$16 sps:$4 sm:$0xff]   ;;  %v8315_v31 = vld [vmem:[#allocation9 + $0x244] ss:$16 sps:$4 sm:$0xff]  }
 0x182   :  { %v8267_v32 = vld [vmem:[#allocation9 + $0x1a4] ss:$16 sps:$4 sm:$0xff]  }
 0x184   :  { %1301 = vmatpush2.bf16.msra.mxu0 %v8193_v33  ;;  %1342 = vmatpush2.bf16.msra.mxu1 %v8196_v34  ;;  %v8265_v33 = vld [vmem:[#allocation9 + $0x1a0] ss:$16 sps:$4 sm:$0xff]  }
 0x185   :  { %1302 = vmatprep.subr.bf16.mxu0 %v8201_v35  ;;  %1343 = vmatprep.subr.bf16.mxu1 %v8204_v36  ;;  %v8319_v34 = vld [vmem:[#allocation9 + $0x220] ss:$16 sps:$4 sm:$0xff]   ;;  %v8321_v35 = vld [vmem:[#allocation9 + $0x224] ss:$16 sps:$4 sm:$0xff]  }
 0x186   :  { %v8270_v36 = vld [vmem:[#allocation9 + $0x184] ss:$16 sps:$4 sm:$0xff]  }
 0x188   :  { %1303 = vmatpush2.bf16.msra.mxu0 %v8199_v37  ;;  %1344 = vmatpush2.bf16.msra.mxu1 %v8202_v38  ;;  %v8268_v37 = vld [vmem:[#allocation9 + $0x180] ss:$16 sps:$4 sm:$0xff]  }
 0x189   :  { %1304 = vmatprep.subr.bf16.mxu0 %v8207_v39  ;;  %1345 = vmatprep.subr.bf16.mxu1 %v8210_v40  ;;  %v8325_v38 = vld [vmem:[#allocation9 + $0x200] ss:$16 sps:$4 sm:$0xff]   ;;  %v8327_v39 = vld [vmem:[#allocation9 + $0x204] ss:$16 sps:$4 sm:$0xff]  }
 0x18a   :  { %v8273_v40 = vld [vmem:[#allocation9 + $0x164] ss:$16 sps:$4 sm:$0xff]  }
 0x18c   :  { %1305 = vmatpush2.bf16.msra.mxu0 %v8205_v41  ;;  %1346 = vmatpush2.bf16.msra.mxu1 %v8208_v42  ;;  %v8271_v41 = vld [vmem:[#allocation9 + $0x160] ss:$16 sps:$4 sm:$0xff]  }
 0x18d   :  { %1306 = vmatprep.subr.bf16.mxu0 %v8213_v43  ;;  %1347 = vmatprep.subr.bf16.mxu1 %v8216_v44  ;;  %v8331_v42 = vld [vmem:[#allocation9 + $0x3e0] ss:$16 sps:$4 sm:$0xff]   ;;  %v8333_v43 = vld [vmem:[#allocation9 + $0x3e4] ss:$16 sps:$4 sm:$0xff]  }
 0x18e   :  { %v8276_v44 = vld [vmem:[#allocation9 + $0x144] ss:$16 sps:$4 sm:$0xff]  }
 0x190   :  { %1307 = vmatpush2.bf16.msra.mxu0 %v8211_v45  ;;  %1348 = vmatpush2.bf16.msra.mxu1 %v8214_v46  ;;  %v8274_v45 = vld [vmem:[#allocation9 + $0x140] ss:$16 sps:$4 sm:$0xff]  }
 0x191   :  { %1308 = vmatprep.subr.bf16.mxu0 %v8219_v47  ;;  %1349 = vmatprep.subr.bf16.mxu1 %v8222_v48  ;;  %v8337_v46 = vld [vmem:[#allocation9 + $0x3c0] ss:$16 sps:$4 sm:$0xff]   ;;  %v8339_v47 = vld [vmem:[#allocation9 + $0x3c4] ss:$16 sps:$4 sm:$0xff]  }
 0x192   :  { %v8279_v48 = vld [vmem:[#allocation9 + $0x124] ss:$16 sps:$4 sm:$0xff]  }
 0x194   :  { %1309 = vmatpush2.bf16.msra.mxu0 %v8217_v49  ;;  %1350 = vmatpush2.bf16.msra.mxu1 %v8220_v50  ;;  %v8277_v49 = vld [vmem:[#allocation9 + $0x120] ss:$16 sps:$4 sm:$0xff]  }
 0x195   :  { %1310 = vmatprep.subr.bf16.mxu0 %v8225_v51  ;;  %1351 = vmatprep.subr.bf16.mxu1 %v8228_v52  ;;  %v8343_v50 = vld [vmem:[#allocation9 + $0x3a0] ss:$16 sps:$4 sm:$0xff]   ;;  %v8345_v51 = vld [vmem:[#allocation9 + $0x3a4] ss:$16 sps:$4 sm:$0xff]  }
 0x196   :  { %v8282_v52 = vld [vmem:[#allocation9 + $0x104] ss:$16 sps:$4 sm:$0xff]  }
 0x198   :  { %1311 = vmatpush2.bf16.msra.mxu0 %v8223_v53  ;;  %1352 = vmatpush2.bf16.msra.mxu1 %v8226_v54  ;;  %v8280_v53 = vld [vmem:[#allocation9 + $0x100] ss:$16 sps:$4 sm:$0xff]  }
 0x199   :  { %1312 = vmatprep.subr.bf16.mxu0 %v8231_v55  ;;  %1353 = vmatprep.subr.bf16.mxu1 %v8234_v56  ;;  %v8349_v54 = vld [vmem:[#allocation9 + $0x380] ss:$16 sps:$4 sm:$0xff]   ;;  %v8351_v55 = vld [vmem:[#allocation9 + $0x384] ss:$16 sps:$4 sm:$0xff]   ;;  %v8288_v56 = vld [vmem:[#allocation9 + $0xec] ss:$16 sps:$4 sm:$0xff]  }
 0x19c   :  { %1313 = vmatpush2.bf16.msra.mxu0 %v8229_v57  ;;  %1354 = vmatpush2.bf16.msra.mxu1 %v8232_v60  ;;  %v8355_v57 = vld [vmem:[#allocation9 + $0x360] ss:$16 sps:$4 sm:$0xff]   ;;  %v8357_v60 = vld [vmem:[#allocation9 + $0x364] ss:$16 sps:$4 sm:$0xff]  }
 0x19d   :  { %2166 = vmatprep.subr.bf16.mxu0 %v8237_v61  ;;  %2207 = vmatprep.subr.bf16.mxu1 %v8285_v7  ;;  %v8363_v61 = vld [vmem:[#allocation9 + $0x344] ss:$16 sps:$4 sm:$0xff]  }
 0x19f   :  { %1315 = vmatmul.mubr.bf16.vlgmr.msra.gmra.mxu0 %v9748_v58  ;;  %1356 = vmatmul.mubr.bf16.vlgmr.msra.gmra.mxu1 %v9750_v59  ;;  %v8250_v58 = vld [vmem:[#allocation9 + $0x40] ss:$16 sps:$4 sm:$0xff]  }
 0x1a0   :  { %2167 = vmatpush1.bf16.msra.mxu0 %v8235_v62  ;;  %2208 = vmatpush1.bf16.msra.mxu1 %v8283_v6  ;;  %v8289_v59 = vld [vmem:[#allocation9 + $0x2c0] ss:$16 sps:$4 sm:$0xff]  }
 0x1a1   :  { %2168 = vmatprep.subr.bf16.mxu0 %v8240_v63  ;;  %2209 = vmatprep.subr.bf16.mxu1 %v8291_v10  ;;  %v8361_v62 = vld [vmem:[#allocation9 + $0x340] ss:$16 sps:$4 sm:$0xff]   ;;  %v8369_v63 = vld [vmem:[#allocation9 + $0x324] ss:$16 sps:$4 sm:$0xff]  }
 0x1a4   :  { %2169 = vmatpush1.bf16.msra.mxu0 %v8238_v0  ;;  %2210 = vmatpush1.bf16.msra.mxu1 %v8289_v59  ;;  %v8367_v0 = vld [vmem:[#allocation9 + $0x320] ss:$16 sps:$4 sm:$0xff]  }
 0x1a5   :  { %2170 = vmatprep.subr.bf16.mxu0 %v8243_v1  ;;  %2211 = vmatprep.subr.bf16.mxu1 %v8297_v14  ;;  %v8375_v1 = vld [vmem:[#allocation9 + $0x304] ss:$16 sps:$4 sm:$0xff]  }
 0x1a8   :  { %2171 = vmatpush1.bf16.msra.mxu0 %v8241_v2  ;;  %2212 = vmatpush1.bf16.msra.mxu1 %v8295_v13  ;;  %v8373_v2 = vld [vmem:[#allocation9 + $0x300] ss:$16 sps:$4 sm:$0xff]  }
 0x1a9   :  { %2172 = vmatprep.subr.bf16.mxu0 %v8246_v3  ;;  %2213 = vmatprep.subr.bf16.mxu1 %v8303_v18  ;;  %v8381_v3 = vld [vmem:[#allocation9 + $0x2ec] ss:$16 sps:$4 sm:$0xff]  }
 0x1ac   :  { %2173 = vmatpush1.bf16.msra.mxu0 %v8244_v4  ;;  %2214 = vmatpush1.bf16.msra.mxu1 %v8301_v17  ;;  %v9759_v4 = vld [vmem:[%s9939_s4] sm:$0xf] }
 0x1ad   :  { %2174 = vmatprep.subr.bf16.mxu0 %v8249_v5  ;;  %2215 = vmatprep.subr.bf16.mxu1 %v8309_v23  ;;  %v543_v5 = vrot.slane %v9759_v4, %v9733_v24  ;;  %v547_v6 = vrot.slane %v9759_v4, %v9739_v26  ;;  %v8286_v23 = vld [vmem:[#allocation9 + $0xe8] ss:$16 sps:$4 sm:$0xff]  }
 0x1b0   :  { %2175 = vmatpush1.bf16.msra.mxu0 %v8247_v8  ;;  %2216 = vmatpush1.bf16.msra.mxu1 %v8307_v21 }
 0x1b1   :  { %2176 = vmatprep.subr.bf16.mxu0 %v8252_v9  ;;  %2217 = vmatprep.subr.bf16.mxu1 %v8315_v31  ;;  %v8300_v31 = vld [vmem:[#allocation9 + $0xac] ss:$16 sps:$4 sm:$0xff]  }
 0x1b4   :  { %2177 = vmatpush1.bf16.msra.mxu0 %v8250_v58  ;;  %2218 = vmatpush1.bf16.msra.mxu1 %v8313_v30  ;;  %v8292_v30 = vld [vmem:[#allocation9 + $0xc8] ss:$16 sps:$4 sm:$0xff]  }
 0x1b5   :  { %2178 = vmatprep.subr.bf16.mxu0 %v8255_v11  ;;  %2219 = vmatprep.subr.bf16.mxu1 %v8321_v35  ;;  %v8312_v35 = vld [vmem:[#allocation9 + $0x6c] ss:$16 sps:$4 sm:$0xff]  }
 0x1b8   :  { %2179 = vmatpush1.bf16.msra.mxu0 %v8253_v12  ;;  %2220 = vmatpush1.bf16.msra.mxu1 %v8319_v34  ;;  %v8304_v34 = vld [vmem:[#allocation9 + $0x88] ss:$16 sps:$4 sm:$0xff]  }
 0x1b9   :  { %2180 = vmatprep.subr.bf16.mxu0 %v8258_v15  ;;  %2221 = vmatprep.subr.bf16.mxu1 %v8327_v39  ;;  %v8324_v39 = vld [vmem:[#allocation9 + $0x2c] ss:$16 sps:$4 sm:$0xff]  }
 0x1bc   :  { %2181 = vmatpush1.bf16.msra.mxu0 %v8256_v16  ;;  %2222 = vmatpush1.bf16.msra.mxu1 %v8325_v38  ;;  %v8316_v38 = vld [vmem:[#allocation9 + $0x48] ss:$16 sps:$4 sm:$0xff]  }
 0x1bd   :  { %2182 = vmatprep.subr.bf16.mxu0 %v8261_v19  ;;  %2223 = vmatprep.subr.bf16.mxu1 %v8333_v43  ;;  %v8336_v43 = vld [vmem:[#allocation9 + $0x1ec] ss:$16 sps:$4 sm:$0xff]  }
 0x1c0   :  { %2183 = vmatpush2.bf16.msra.mxu0 %v8259_v20  ;;  %2224 = vmatpush2.bf16.msra.mxu1 %v8331_v42  ;;  %v8328_v42 = vld [vmem:[#allocation9 + $0x8] ss:$16 sps:$4 sm:$0xff]  }
 0x1c1   :  { %2184 = vmatprep.subr.bf16.mxu0 %v8264_v28  ;;  %2225 = vmatprep.subr.bf16.mxu1 %v8339_v47  ;;  %v8348_v47 = vld [vmem:[#allocation9 + $0x1ac] ss:$16 sps:$4 sm:$0xff]  }
 0x1c4   :  { %2185 = vmatpush2.bf16.msra.mxu0 %v8262_v29  ;;  %2226 = vmatpush2.bf16.msra.mxu1 %v8337_v46  ;;  %v8294_v29 = vld [vmem:[#allocation9 + $0xcc] ss:$16 sps:$4 sm:$0xff]   ;;  %v8340_v46 = vld [vmem:[#allocation9 + $0x1c8] ss:$16 sps:$4 sm:$0xff]  }
 0x1c5   :  { %2186 = vmatprep.subr.bf16.mxu0 %v8267_v32  ;;  %2227 = vmatprep.subr.bf16.mxu1 %v8345_v51  ;;  %v8298_v32 = vld [vmem:[#allocation9 + $0xa8] ss:$16 sps:$4 sm:$0xff]   ;;  %v8360_v51 = vld [vmem:[#allocation9 + $0x16c] ss:$16 sps:$4 sm:$0xff]  }
 0x1c8   :  { %2187 = vmatpush2.bf16.msra.mxu0 %v8265_v33  ;;  %2228 = vmatpush2.bf16.msra.mxu1 %v8343_v50  ;;  %v8306_v33 = vld [vmem:[#allocation9 + $0x8c] ss:$16 sps:$4 sm:$0xff]   ;;  %v8352_v50 = vld [vmem:[#allocation9 + $0x188] ss:$16 sps:$4 sm:$0xff]  }
 0x1c9   :  { %2188 = vmatprep.subr.bf16.mxu0 %v8270_v36  ;;  %2229 = vmatprep.subr.bf16.mxu1 %v8351_v55  ;;  %v8310_v36 = vld [vmem:[#allocation9 + $0x68] ss:$16 sps:$4 sm:$0xff]   ;;  %v555_v55 = vrot.slane %v9759_v4, %v9742_v27 }
 0x1cc   :  { %2189 = vmatpush2.bf16.msra.mxu0 %v8268_v37  ;;  %2230 = vmatpush2.bf16.msra.mxu1 %v8349_v54  ;;  %v8318_v37 = vld [vmem:[#allocation9 + $0x4c] ss:$16 sps:$4 sm:$0xff]   ;;  %v551_v54 = vrot.slane %v9759_v4, %v9736_v25 }
 0x1cd   :  { %2190 = vmatprep.subr.bf16.mxu0 %v8273_v40  ;;  %2231 = vmatprep.subr.bf16.mxu1 %v8357_v60  ;;  %v8322_v40 = vld [vmem:[#allocation9 + $0x28] ss:$16 sps:$4 sm:$0xff]  }
 0x1d0   :  { %2191 = vmatpush2.bf16.msra.mxu0 %v8271_v41  ;;  %2232 = vmatpush2.bf16.msra.mxu1 %v8355_v57  ;;  %v8330_v41 = vld [vmem:[#allocation9 + $0xc] ss:$16 sps:$4 sm:$0xff]  }
 0x1d1   :  { %2192 = vmatprep.subr.bf16.mxu0 %v8276_v44  ;;  %2233 = vmatprep.subr.bf16.mxu1 %v8363_v61  ;;  %v8334_v44 = vld [vmem:[#allocation9 + $0x1e8] ss:$16 sps:$4 sm:$0xff]   ;;  %v8372_v61 = vld [vmem:[#allocation9 + $0x12c] ss:$16 sps:$4 sm:$0xff]  }
 0x1d4   :  { %2193 = vmatpush2.bf16.msra.mxu0 %v8274_v45  ;;  %2234 = vmatpush2.bf16.msra.mxu1 %v8361_v62  ;;  %v8342_v45 = vld [vmem:[#allocation9 + $0x1cc] ss:$16 sps:$4 sm:$0xff]  }
 0x1d5   :  { %2194 = vmatprep.subr.bf16.mxu0 %v8279_v48  ;;  %2235 = vmatprep.subr.bf16.mxu1 %v8369_v63  ;;  %v8346_v48 = vld [vmem:[#allocation9 + $0x1a8] ss:$16 sps:$4 sm:$0xff]  }
 0x1d8   :  { %2195 = vmatpush2.bf16.msra.mxu0 %v8277_v49  ;;  %2236 = vmatpush2.bf16.msra.mxu1 %v8367_v0  ;;  %v8354_v49 = vld [vmem:[#allocation9 + $0x18c] ss:$16 sps:$4 sm:$0xff]  }
 0x1d9   :  { %2196 = vmatprep.subr.bf16.mxu0 %v8282_v52  ;;  %2237 = vmatprep.subr.bf16.mxu1 %v8375_v1  ;;  %v8358_v52 = vld [vmem:[#allocation9 + $0x168] ss:$16 sps:$4 sm:$0xff]  }
 0x1dc   :  { %2197 = vmatpush2.bf16.msra.mxu0 %v8280_v53  ;;  %2238 = vmatpush2.bf16.msra.mxu1 %v8373_v2  ;;  %v8366_v53 = vld [vmem:[#allocation9 + $0x14c] ss:$16 sps:$4 sm:$0xff]  }
 0x1dd   :  { %2248 = vmatprep.subr.bf16.mxu0 %v8288_v56  ;;  %2289 = vmatprep.subr.bf16.mxu1 %v8381_v3  ;;  %v8364_v56 = vld [vmem:[#allocation9 + $0x148] ss:$16 sps:$4 sm:$0xff]  }
 0x1de   :  { %v8370_v3 = vld [vmem:[#allocation9 + $0x128] ss:$16 sps:$4 sm:$0xff]  }
 0x21f   :  { %v1234_v7 = vpop.f32.mrf.mxu0  ;;  %v1275_v8 = vpop.f32.mrf.mxu1 }
 0x220   :  { %v1235_v9 = vadd.f32 %v1234_v7, %v543_v5  ;;  %v8378_v7 = vld [vmem:[#allocation9 + $0x10c] ss:$16 sps:$4 sm:$0xff]  }
 0x221   :  { %v1236_v58 = vpop.f32.mrf.mxu0  ;;  %v1277_v59 = vpop.f32.mrf.mxu1 }
 0x222   :  { %v1276_v10 = vadd.f32 %v1275_v8, %v1235_v9  ;;  %v1237_v11 = vadd.f32 %v1236_v58, %v547_v6 }
 0x223   :  { %v1238_v12 = vpop.f32.mrf.mxu0  ;;  %v1279_v13 = vpop.f32.mrf.mxu1 }
 0x224   :  { %v1364_v14 = vmul.f32 0.2, %v1276_v10  ;;  %v1278_v15 = vadd.f32 %v1277_v59, %v1237_v11 }
 0x225   :  { %v1239_v16 = vpop.f32.mrf.mxu0  ;;  %v1280_v17 = vpop.f32.mrf.mxu1 }
 0x226   :  { %v1365_v18 = vmul.f32 0.2, %v1278_v15  ;;  %v1368_v19 = vmax.f32 %v1276_v10, %v1364_v14  ;;  %v8376_v10 = vld [vmem:[#allocation9 + $0x108] ss:$16 sps:$4 sm:$0xff]   ;;  %v8384_v16 = vld [vmem:[#allocation9 + $0x2cc] ss:$16 sps:$4 sm:$0xff]  }
 0x227   :  { %v8379_v14 = vld [vmem:[#allocation9 + $0x2e8] ss:$16 sps:$4 sm:$0xff]  }
 0x228   :  { %v1369_v20 = vmax.f32 %v1278_v15, %v1365_v18  ;;  %v9765_v28 = vpack.c.bf16 %v1368_v19, %v1368_v19  ;;  %v8382_v17 = vld [vmem:[#allocation9 + $0x2c8] ss:$16 sps:$4 sm:$0xff]   ;;  %v8387_v18 = vld [vmem:[#allocation9 + $0x2ac] ss:$16 sps:$4 sm:$0xff]  }
 0x229   :  { %v8385_v19 = vld [vmem:[#allocation9 + $0x2a8] ss:$16 sps:$4 sm:$0xff]  }
 0x22a   :  { %v1502_v21 = vpack.c.bf16 %v1369_v20, %v1369_v20  ;;  %v8390_v20 = vld [vmem:[#allocation9 + $0x28c] ss:$16 sps:$4 sm:$0xff]  }
 0x22c   :  { %2198 = vmatprep.mubr.bf16.mxu0 %v1502_v21 }
 0x22d   :  { %2199 = vmatmul.mubr.bf16.vlgmr.msra.gmra.mxu0 %v9765_v28 }
 0x22e   :  { %2249 = vmatpush1.bf16.msra.mxu0 %v8286_v23  ;;  %2280 = vmatprep.mubr.bf16.mxu0 %v1502_v21  ;;  %v8427_v21 = vld [vmem:[#allocation12 + $0xe0] ss:$16 sps:$4 sm:$0xff]   ;;  %v8429_v23 = vld [vmem:[#allocation12 + $0xe4] ss:$16 sps:$4 sm:$0xff]  }
 0x22f   :  { %2250 = vmatprep.subr.bf16.mxu0 %v8294_v29  ;;  %v8432_v29 = vld [vmem:[#allocation12 + $0xc4] ss:$16 sps:$4 sm:$0xff]  }
 0x232   :  { %2251 = vmatpush1.bf16.msra.mxu0 %v8292_v30  ;;  %v8388_v30 = vld [vmem:[#allocation9 + $0x288] ss:$16 sps:$4 sm:$0xff]  }
 0x233   :  { %2252 = vmatprep.subr.bf16.mxu0 %v8300_v31  ;;  %v8430_v31 = vld [vmem:[#allocation12 + $0xc0] ss:$16 sps:$4 sm:$0xff]  }
 0x236   :  { %2253 = vmatpush1.bf16.msra.mxu0 %v8298_v32  ;;  %v8393_v32 = vld [vmem:[#allocation9 + $0x26c] ss:$16 sps:$4 sm:$0xff]  }
 0x237   :  { %2254 = vmatprep.subr.bf16.mxu0 %v8306_v33  ;;  %v8391_v33 = vld [vmem:[#allocation9 + $0x268] ss:$16 sps:$4 sm:$0xff]  }
 0x23a   :  { %2255 = vmatpush1.bf16.msra.mxu0 %v8304_v34  ;;  %v8433_v34 = vld [vmem:[#allocation12 + $0xa0] ss:$16 sps:$4 sm:$0xff]  }
 0x23b   :  { %2256 = vmatprep.subr.bf16.mxu0 %v8312_v35  ;;  %v8396_v35 = vld [vmem:[#allocation9 + $0x24c] ss:$16 sps:$4 sm:$0xff]  }
 0x23e   :  { %2257 = vmatpush1.bf16.msra.mxu0 %v8310_v36  ;;  %v8438_v36 = vld [vmem:[#allocation12 + $0x84] ss:$16 sps:$4 sm:$0xff]  }
 0x23f   :  { %2258 = vmatprep.subr.bf16.mxu0 %v8318_v37  ;;  %v8394_v37 = vld [vmem:[#allocation9 + $0x248] ss:$16 sps:$4 sm:$0xff]  }
 0x242   :  { %2259 = vmatpush1.bf16.msra.mxu0 %v8316_v38  ;;  %v8436_v38 = vld [vmem:[#allocation12 + $0x80] ss:$16 sps:$4 sm:$0xff]  }
 0x243   :  { %2260 = vmatprep.subr.bf16.mxu0 %v8324_v39  ;;  %v8399_v39 = vld [vmem:[#allocation9 + $0x22c] ss:$16 sps:$4 sm:$0xff]  }
 0x246   :  { %2261 = vmatpush1.bf16.msra.mxu0 %v8322_v40  ;;  %v8441_v40 = vld [vmem:[#allocation12 + $0x64] ss:$16 sps:$4 sm:$0xff]  }
 0x247   :  { %2262 = vmatprep.subr.bf16.mxu0 %v8330_v41  ;;  %v8397_v41 = vld [vmem:[#allocation9 + $0x228] ss:$16 sps:$4 sm:$0xff]  }
 0x24a   :  { %2263 = vmatpush1.bf16.msra.mxu0 %v8328_v42  ;;  %v8439_v42 = vld [vmem:[#allocation12 + $0x60] ss:$16 sps:$4 sm:$0xff]  }
 0x24b   :  { %2264 = vmatprep.subr.bf16.mxu0 %v8336_v43  ;;  %v8402_v43 = vld [vmem:[#allocation9 + $0x20c] ss:$16 sps:$4 sm:$0xff]  }
 0x24e   :  { %2265 = vmatpush2.bf16.msra.mxu0 %v8334_v44  ;;  %v8444_v44 = vld [vmem:[#allocation12 + $0x44] ss:$16 sps:$4 sm:$0xff]  }
 0x24f   :  { %2266 = vmatprep.subr.bf16.mxu0 %v8342_v45  ;;  %v8400_v45 = vld [vmem:[#allocation9 + $0x208] ss:$16 sps:$4 sm:$0xff]  }
 0x252   :  { %2267 = vmatpush2.bf16.msra.mxu0 %v8340_v46  ;;  %v8442_v46 = vld [vmem:[#allocation12 + $0x40] ss:$16 sps:$4 sm:$0xff]  }
 0x253   :  { %2268 = vmatprep.subr.bf16.mxu0 %v8348_v47  ;;  %v8405_v47 = vld [vmem:[#allocation9 + $0x3ec] ss:$16 sps:$4 sm:$0xff]  }
 0x256   :  { %2269 = vmatpush2.bf16.msra.mxu0 %v8346_v48  ;;  %v8447_v48 = vld [vmem:[#allocation12 + $0x24] ss:$16 sps:$4 sm:$0xff]  }
 0x257   :  { %2270 = vmatprep.subr.bf16.mxu0 %v8354_v49  ;;  %v8403_v49 = vld [vmem:[#allocation9 + $0x3e8] ss:$16 sps:$4 sm:$0xff]  }
 0x25a   :  { %2271 = vmatpush2.bf16.msra.mxu0 %v8352_v50  ;;  %v8445_v50 = vld [vmem:[#allocation12 + $0x20] ss:$16 sps:$4 sm:$0xff]  }
 0x25b   :  { %2272 = vmatprep.subr.bf16.mxu0 %v8360_v51  ;;  %v8408_v51 = vld [vmem:[#allocation9 + $0x3cc] ss:$16 sps:$4 sm:$0xff]  }
 0x25e   :  { %2273 = vmatpush2.bf16.msra.mxu0 %v8358_v52  ;;  %v8450_v52 = vld [vmem:[#allocation12 + $0x4] ss:$16 sps:$4 sm:$0xff]  }
 0x25f   :  { %v1316_v57 = vpop.f32.mrf.mxu0  ;;  %v1357_v60 = vpop.f32.mrf.mxu1  ;;  %2274 = vmatprep.subr.bf16.mxu0 %v8366_v53  ;;  %v8406_v53 = vld [vmem:[#allocation9 + $0x3c8] ss:$16 sps:$4 sm:$0xff]  }
 0x260   :  { %v1317_v62 = vadd.f32 %v1316_v57, %v551_v54  ;;  %v8448_v54 = vld [vmem:[#allocation12] ss:$16 sps:$4 sm:$0xff]   ;;  %v8409_v57 = vld [vmem:[#allocation9 + $0x3a8] ss:$16 sps:$4 sm:$0xff]  }
 0x261   :  { %v1318_v63 = vpop.f32.mrf.mxu0  ;;  %v1359_v0 = vpop.f32.mrf.mxu1 }
 0x262   :  { %v1358_v1 = vadd.f32 %v1357_v60, %v1317_v62  ;;  %v1319_v2 = vadd.f32 %v1318_v63, %v555_v55  ;;  %2275 = vmatpush2.bf16.msra.mxu0 %v8364_v56  ;;  %v8411_v55 = vld [vmem:[#allocation9 + $0x3ac] ss:$16 sps:$4 sm:$0xff]   ;;  %v8453_v56 = vld [vmem:[#allocation12 + $0x1e4] ss:$16 sps:$4 sm:$0xff]   ;;  %v8451_v60 = vld [vmem:[#allocation12 + $0x1e0] ss:$16 sps:$4 sm:$0xff]  }
 0x263   :  { %v1320_v5 = vpop.f32.mrf.mxu0  ;;  %v1361_v6 = vpop.f32.mrf.mxu1  ;;  %2276 = vmatprep.subr.bf16.mxu0 %v8372_v61  ;;  %v8414_v61 = vld [vmem:[#allocation9 + $0x38c] ss:$16 sps:$4 sm:$0xff]   ;;  %v8456_v62 = vld [vmem:[#allocation12 + $0x1c4] ss:$16 sps:$4 sm:$0xff]  }
 0x264   :  { %v1366_v8 = vmul.f32 0.2, %v1358_v1  ;;  %v1360_v9 = vadd.f32 %v1359_v0, %v1319_v2  ;;  %v8412_v63 = vld [vmem:[#allocation9 + $0x388] ss:$16 sps:$4 sm:$0xff]   ;;  %v8454_v0 = vld [vmem:[#allocation12 + $0x1c0] ss:$16 sps:$4 sm:$0xff]  }
 0x265   :  { %v1321_v58 = vpop.f32.mrf.mxu0  ;;  %v1362_v4 = vpop.f32.mrf.mxu1  ;;  %v8459_v2 = vld [vmem:[#allocation12 + $0x1a4] ss:$16 sps:$4 sm:$0xff]   ;;  %v8457_v5 = vld [vmem:[#allocation12 + $0x1a0] ss:$16 sps:$4 sm:$0xff]   ;;  %v8420_v6 = vld [vmem:[#allocation9 + $0x34c] ss:$16 sps:$4 sm:$0xff]  }
 0x266   :  { %v1367_v59 = vmul.f32 0.2, %v1360_v9  ;;  %2277 = vmatpush2.bf16.msra.mxu0 %v8370_v3  ;;  %v1370_v11 = vmax.f32 %v1358_v1, %v1366_v8  ;;  %v8417_v1 = vld [vmem:[#allocation9 + $0x36c] ss:$16 sps:$4 sm:$0xff]   ;;  %v8415_v3 = vld [vmem:[#allocation9 + $0x368] ss:$16 sps:$4 sm:$0xff]  }
 0x267   :  { %2278 = vmatprep.subr.bf16.mxu0 %v8378_v7  ;;  %v8462_v7 = vld [vmem:[#allocation12 + $0x184] ss:$16 sps:$4 sm:$0xff]   ;;  %v8423_v58 = vld [vmem:[#allocation9 + $0x32c] ss:$16 sps:$4 sm:$0xff]  }
 0x268   :  { %v1371_v12 = vmax.f32 %v1360_v9, %v1367_v59  ;;  %v9772_v15 = vpack.c.bf16 %v1370_v11, %v1370_v11  ;;  %v8418_v8 = vld [vmem:[#allocation9 + $0x348] ss:$16 sps:$4 sm:$0xff]   ;;  %v8460_v9 = vld [vmem:[#allocation12 + $0x180] ss:$16 sps:$4 sm:$0xff]   ;;  %v8426_v11 = vld [vmem:[#allocation9 + $0x30c] ss:$16 sps:$4 sm:$0xff]  }
 0x269   :  { %v8465_v4 = vld [vmem:[#allocation12 + $0x164] ss:$16 sps:$4 sm:$0xff]  }
 0x26a   :  { %v1504_v13 = vpack.c.bf16 %v1371_v12, %v1371_v12  ;;  %2279 = vmatpush2.bf16.msra.mxu0 %v8376_v10  ;;  %v8421_v59 = vld [vmem:[#allocation9 + $0x328] ss:$16 sps:$4 sm:$0xff]   ;;  %v8463_v10 = vld [vmem:[#allocation12 + $0x160] ss:$16 sps:$4 sm:$0xff]  }
 0x26b   :  { %3132 = vmatprep.subr.bf16.mxu0 %v8429_v23  ;;  %v8468_v12 = vld [vmem:[#allocation12 + $0x144] ss:$16 sps:$4 sm:$0xff]   ;;  %v8480_v23 = vld [vmem:[#allocation12 + $0xec] ss:$16 sps:$4 sm:$0xff]  }
 0x26c   :  { %2239 = vmatprep.mubr.bf16.mxu1 %v1504_v13 }
 0x26d   :  { %2240 = vmatmul.mubr.bf16.vlgmr.msra.gmra.mxu1 %v9772_v15  ;;  %2281 = vmatmul.mubr.bf16.vlgmr.msra.gmra.mxu0 %v9765_v28  ;;  %v8435_v28 = vld [vmem:[#allocation12 + $0xa4] ss:$16 sps:$4 sm:$0xff]  }
 0x26e   :  { %2290 = vmatpush1.bf16.msra.mxu1 %v8379_v14  ;;  %2321 = vmatprep.mubr.bf16.mxu1 %v1504_v13  ;;  %v8424_v13 = vld [vmem:[#allocation9 + $0x308] ss:$16 sps:$4 sm:$0xff]   ;;  %v8466_v14 = vld [vmem:[#allocation12 + $0x140] ss:$16 sps:$4 sm:$0xff]  }
 0x26f   :  { %2291 = vmatprep.subr.bf16.mxu1 %v8384_v16  ;;  %3133 = vmatpush1.bf16.msra.mxu0 %v8427_v21  ;;  %v8471_v16 = vld [vmem:[#allocation12 + $0x124] ss:$16 sps:$4 sm:$0xff]  }
 0x270   :  { %3134 = vmatprep.subr.bf16.mxu0 %v8432_v29  ;;  %v8477_v21 = vld [vmem:[#allocation12 + $0x2e4] ss:$16 sps:$4 sm:$0xff]   ;;  %v8481_v29 = vld [vmem:[#allocation12 + $0x2c0] ss:$16 sps:$4 sm:$0xff]  }
 0x272   :  { %2292 = vmatpush1.bf16.msra.mxu1 %v8382_v17  ;;  %v8469_v17 = vld [vmem:[#allocation12 + $0x120] ss:$16 sps:$4 sm:$0xff]  }
 0x273   :  { %2293 = vmatprep.subr.bf16.mxu1 %v8387_v18  ;;  %3135 = vmatpush1.bf16.msra.mxu0 %v8430_v31  ;;  %v8474_v18 = vld [vmem:[#allocation12 + $0x104] ss:$16 sps:$4 sm:$0xff]   ;;  %v8487_v31 = vld [vmem:[#allocation12 + $0x2a0] ss:$16 sps:$4 sm:$0xff]  }
 0x274   :  { %3136 = vmatprep.subr.bf16.mxu0 %v8435_v28  ;;  %v8495_v28 = vld [vmem:[#allocation12 + $0x284] ss:$16 sps:$4 sm:$0xff]  }
 0x276   :  { %2294 = vmatpush1.bf16.msra.mxu1 %v8385_v19  ;;  %v8472_v19 = vld [vmem:[#allocation12 + $0x100] ss:$16 sps:$4 sm:$0xff]  }
 0x277   :  { %2295 = vmatprep.subr.bf16.mxu1 %v8390_v20  ;;  %3137 = vmatpush1.bf16.msra.mxu0 %v8433_v34  ;;  %v8475_v20 = vld [vmem:[#allocation12 + $0x2e0] ss:$16 sps:$4 sm:$0xff]   ;;  %v8501_v34 = vld [vmem:[#allocation12 + $0x264] ss:$16 sps:$4 sm:$0xff]  }
 0x278   :  { %3138 = vmatprep.subr.bf16.mxu0 %v8438_v36  ;;  %v8507_v36 = vld [vmem:[#allocation12 + $0x244] ss:$16 sps:$4 sm:$0xff]  }
 0x27a   :  { %2296 = vmatpush1.bf16.msra.mxu1 %v8388_v30  ;;  %v8483_v30 = vld [vmem:[#allocation12 + $0x2c4] ss:$16 sps:$4 sm:$0xff]  }
 0x27b   :  { %2297 = vmatprep.subr.bf16.mxu1 %v8393_v32  ;;  %3139 = vmatpush1.bf16.msra.mxu0 %v8436_v38  ;;  %v8493_v32 = vld [vmem:[#allocation12 + $0x280] ss:$16 sps:$4 sm:$0xff]   ;;  %v8513_v38 = vld [vmem:[#allocation12 + $0x224] ss:$16 sps:$4 sm:$0xff]  }
 0x27c   :  { %3140 = vmatprep.subr.bf16.mxu0 %v8441_v40  ;;  %v8519_v40 = vld [vmem:[#allocation12 + $0x204] ss:$16 sps:$4 sm:$0xff]  }
 0x27e   :  { %2298 = vmatpush1.bf16.msra.mxu1 %v8391_v33  ;;  %v8499_v33 = vld [vmem:[#allocation12 + $0x260] ss:$16 sps:$4 sm:$0xff]  }
 0x27f   :  { %2299 = vmatprep.subr.bf16.mxu1 %v8396_v35  ;;  %3141 = vmatpush1.bf16.msra.mxu0 %v8439_v42  ;;  %v8505_v35 = vld [vmem:[#allocation12 + $0x240] ss:$16 sps:$4 sm:$0xff]   ;;  %v8525_v42 = vld [vmem:[#allocation12 + $0x3e4] ss:$16 sps:$4 sm:$0xff]  }
 0x280   :  { %3142 = vmatprep.subr.bf16.mxu0 %v8444_v44  ;;  %v8531_v44 = vld [vmem:[#allocation12 + $0x3c4] ss:$16 sps:$4 sm:$0xff]  }
 0x282   :  { %2300 = vmatpush1.bf16.msra.mxu1 %v8394_v37  ;;  %v8511_v37 = vld [vmem:[#allocation12 + $0x220] ss:$16 sps:$4 sm:$0xff]  }
 0x283   :  { %2301 = vmatprep.subr.bf16.mxu1 %v8399_v39  ;;  %3143 = vmatpush1.bf16.msra.mxu0 %v8442_v46  ;;  %v8517_v39 = vld [vmem:[#allocation12 + $0x200] ss:$16 sps:$4 sm:$0xff]   ;;  %v8537_v46 = vld [vmem:[#allocation12 + $0x3a4] ss:$16 sps:$4 sm:$0xff]  }
 0x284   :  { %3144 = vmatprep.subr.bf16.mxu0 %v8447_v48  ;;  %v8543_v48 = vld [vmem:[#allocation12 + $0x384] ss:$16 sps:$4 sm:$0xff]  }
 0x286   :  { %2302 = vmatpush1.bf16.msra.mxu1 %v8397_v41  ;;  %v8523_v41 = vld [vmem:[#allocation12 + $0x3e0] ss:$16 sps:$4 sm:$0xff]  }
 0x287   :  { %2303 = vmatprep.subr.bf16.mxu1 %v8402_v43  ;;  %3145 = vmatpush1.bf16.msra.mxu0 %v8445_v50  ;;  %v8529_v43 = vld [vmem:[#allocation12 + $0x3c0] ss:$16 sps:$4 sm:$0xff]   ;;  %v8549_v50 = vld [vmem:[#allocation12 + $0x364] ss:$16 sps:$4 sm:$0xff]  }
 0x288   :  { %3146 = vmatprep.subr.bf16.mxu0 %v8450_v52  ;;  %v8555_v52 = vld [vmem:[#allocation12 + $0x344] ss:$16 sps:$4 sm:$0xff]  }
 0x28a   :  { %2304 = vmatpush1.bf16.msra.mxu1 %v8400_v45  ;;  %v8535_v45 = vld [vmem:[#allocation12 + $0x3a0] ss:$16 sps:$4 sm:$0xff]  }
 0x28b   :  { %2305 = vmatprep.subr.bf16.mxu1 %v8405_v47  ;;  %3147 = vmatpush1.bf16.msra.mxu0 %v8448_v54  ;;  %v8541_v47 = vld [vmem:[#allocation12 + $0x380] ss:$16 sps:$4 sm:$0xff]   ;;  %v8561_v54 = vld [vmem:[#allocation12 + $0x324] ss:$16 sps:$4 sm:$0xff]  }
 0x28c   :  { %3148 = vmatprep.subr.bf16.mxu0 %v8453_v56  ;;  %v8559_v56 = vld [vmem:[#allocation12 + $0x320] ss:$16 sps:$4 sm:$0xff]  }
 0x28e   :  { %2306 = vmatpush2.bf16.msra.mxu1 %v8403_v49  ;;  %v8547_v49 = vld [vmem:[#allocation12 + $0x360] ss:$16 sps:$4 sm:$0xff]  }
 0x28f   :  { %2307 = vmatprep.subr.bf16.mxu1 %v8408_v51  ;;  %3149 = vmatpush2.bf16.msra.mxu0 %v8451_v60  ;;  %v8553_v51 = vld [vmem:[#allocation12 + $0x340] ss:$16 sps:$4 sm:$0xff]   ;;  %v8567_v60 = vld [vmem:[#allocation12 + $0x304] ss:$16 sps:$4 sm:$0xff]  }
 0x290   :  { %3150 = vmatprep.subr.bf16.mxu0 %v8456_v62  ;;  %v8565_v62 = vld [vmem:[#allocation12 + $0x300] ss:$16 sps:$4 sm:$0xff]  }
 0x292   :  { %2308 = vmatpush2.bf16.msra.mxu1 %v8406_v53 }
 0x293   :  { %2309 = vmatprep.subr.bf16.mxu1 %v8411_v55  ;;  %3151 = vmatpush2.bf16.msra.mxu0 %v8454_v0  ;;  %v9777_v0 = vld [vmem:[#allocation10] sm:$0xf] }
 0x294   :  { %3152 = vmatprep.subr.bf16.mxu0 %v8459_v2  ;;  %v1513_v2 = vrot.slane %v9777_v0, %v9739_v26 }
 0x296   :  { %2310 = vmatpush2.bf16.msra.mxu1 %v8409_v57 }
 0x297   :  { %2311 = vmatprep.subr.bf16.mxu1 %v8414_v61  ;;  %3153 = vmatpush2.bf16.msra.mxu0 %v8457_v5 }
 0x298   :  { %3154 = vmatprep.subr.bf16.mxu0 %v8462_v7 }
 0x29a   :  { %2312 = vmatpush2.bf16.msra.mxu1 %v8412_v63  ;;  %v8573_v63 = vld [vmem:[#allocation12 + $0x2ec] ss:$16 sps:$4 sm:$0xff]  }
 0x29b   :  { %2313 = vmatprep.subr.bf16.mxu1 %v8417_v1  ;;  %3155 = vmatpush2.bf16.msra.mxu0 %v8460_v9  ;;  %v1509_v1 = vrot.slane %v9777_v0, %v9733_v24 }
 0x29c   :  { %3156 = vmatprep.subr.bf16.mxu0 %v8465_v4 }
 0x29e   :  { %2314 = vmatpush2.bf16.msra.mxu1 %v8415_v3 }
 0x29f   :  { %2315 = vmatprep.subr.bf16.mxu1 %v8420_v6  ;;  %3157 = vmatpush2.bf16.msra.mxu0 %v8463_v10 }
 0x2a0   :  { %3158 = vmatprep.subr.bf16.mxu0 %v8468_v12 }
 0x2a2   :  { %2316 = vmatpush2.bf16.msra.mxu1 %v8418_v8 }
 0x2a3   :  { %2317 = vmatprep.subr.bf16.mxu1 %v8423_v58  ;;  %3159 = vmatpush2.bf16.msra.mxu0 %v8466_v14 }
 0x2a4   :  { %3160 = vmatprep.subr.bf16.mxu0 %v8471_v16 }
 0x2a6   :  { %2318 = vmatpush2.bf16.msra.mxu1 %v8421_v59 }
 0x2a7   :  { %2319 = vmatprep.subr.bf16.mxu1 %v8426_v11  ;;  %3161 = vmatpush2.bf16.msra.mxu0 %v8469_v17 }
 0x2a8   :  { %3162 = vmatprep.subr.bf16.mxu0 %v8474_v18 }
 0x2aa   :  { %2320 = vmatpush2.bf16.msra.mxu1 %v8424_v13 }
 0x2ab   :  { %3163 = vmatpush2.bf16.msra.mxu0 %v8472_v19  ;;  %3173 = vmatprep.subr.bf16.mxu1 %v8477_v21  ;;  %v8478_v19 = vld [vmem:[#allocation12 + $0xe8] ss:$16 sps:$4 sm:$0xff]   ;;  %v8486_v21 = vld [vmem:[#allocation12 + $0xcc] ss:$16 sps:$4 sm:$0xff]  }
 0x2ac   :  { %3214 = vmatprep.subr.bf16.mxu0 %v8480_v23  ;;  %v8484_v23 = vld [vmem:[#allocation12 + $0xc8] ss:$16 sps:$4 sm:$0xff]  }
 0x2ad   :  { %2322 = vmatmul.mubr.bf16.vlgmr.msra.gmra.mxu1 %v9772_v15  ;;  %v8489_v15 = vld [vmem:[#allocation12 + $0x2a4] ss:$16 sps:$4 sm:$0xff]  }
 0x2ae   :  { %3174 = vmatpush1.bf16.msra.mxu1 %v8475_v20 }
 0x2af   :  { %3175 = vmatprep.subr.bf16.mxu1 %v8483_v30  ;;  %v8490_v30 = vld [vmem:[#allocation12 + $0xa8] ss:$16 sps:$4 sm:$0xff]  }
 0x2b2   :  { %3176 = vmatpush1.bf16.msra.mxu1 %v8481_v29  ;;  %v8492_v29 = vld [vmem:[#allocation12 + $0xac] ss:$16 sps:$4 sm:$0xff]  }
 0x2b3   :  { %3177 = vmatprep.subr.bf16.mxu1 %v8489_v15  ;;  %v8496_v15 = vld [vmem:[#allocation12 + $0x88] ss:$16 sps:$4 sm:$0xff]  }
 0x2b6   :  { %3178 = vmatpush1.bf16.msra.mxu1 %v8487_v31  ;;  %v8498_v31 = vld [vmem:[#allocation12 + $0x8c] ss:$16 sps:$4 sm:$0xff]  }
 0x2b7   :  { %3179 = vmatprep.subr.bf16.mxu1 %v8495_v28  ;;  %v8502_v28 = vld [vmem:[#allocation12 + $0x68] ss:$16 sps:$4 sm:$0xff]  }
 0x2ba   :  { %3180 = vmatpush1.bf16.msra.mxu1 %v8493_v32  ;;  %v8504_v32 = vld [vmem:[#allocation12 + $0x6c] ss:$16 sps:$4 sm:$0xff]  }
 0x2bb   :  { %3181 = vmatprep.subr.bf16.mxu1 %v8501_v34  ;;  %v8508_v34 = vld [vmem:[#allocation12 + $0x48] ss:$16 sps:$4 sm:$0xff]  }
 0x2be   :  { %3182 = vmatpush1.bf16.msra.mxu1 %v8499_v33  ;;  %v8510_v33 = vld [vmem:[#allocation12 + $0x4c] ss:$16 sps:$4 sm:$0xff]  }
 0x2bf   :  { %3183 = vmatprep.subr.bf16.mxu1 %v8507_v36  ;;  %v8514_v36 = vld [vmem:[#allocation12 + $0x28] ss:$16 sps:$4 sm:$0xff]  }
 0x2c2   :  { %3184 = vmatpush1.bf16.msra.mxu1 %v8505_v35  ;;  %v8516_v35 = vld [vmem:[#allocation12 + $0x2c] ss:$16 sps:$4 sm:$0xff]  }
 0x2c3   :  { %3185 = vmatprep.subr.bf16.mxu1 %v8513_v38  ;;  %v8520_v38 = vld [vmem:[#allocation12 + $0x8] ss:$16 sps:$4 sm:$0xff]  }
 0x2c6   :  { %3186 = vmatpush1.bf16.msra.mxu1 %v8511_v37  ;;  %v8522_v37 = vld [vmem:[#allocation12 + $0xc] ss:$16 sps:$4 sm:$0xff]  }
 0x2c7   :  { %3187 = vmatprep.subr.bf16.mxu1 %v8519_v40  ;;  %v8526_v40 = vld [vmem:[#allocation12 + $0x1e8] ss:$16 sps:$4 sm:$0xff]  }
 0x2ca   :  { %3188 = vmatpush1.bf16.msra.mxu1 %v8517_v39  ;;  %v8528_v39 = vld [vmem:[#allocation12 + $0x1ec] ss:$16 sps:$4 sm:$0xff]  }
 0x2cb   :  { %3189 = vmatprep.subr.bf16.mxu1 %v8525_v42  ;;  %v8532_v42 = vld [vmem:[#allocation12 + $0x1c8] ss:$16 sps:$4 sm:$0xff]  }
 0x2ce   :  { %3190 = vmatpush2.bf16.msra.mxu1 %v8523_v41  ;;  %v8534_v41 = vld [vmem:[#allocation12 + $0x1cc] ss:$16 sps:$4 sm:$0xff]  }
 0x2cf   :  { %3191 = vmatprep.subr.bf16.mxu1 %v8531_v44  ;;  %v8538_v44 = vld [vmem:[#allocation12 + $0x1a8] ss:$16 sps:$4 sm:$0xff]  }
 0x2d2   :  { %3192 = vmatpush2.bf16.msra.mxu1 %v8529_v43  ;;  %v8540_v43 = vld [vmem:[#allocation12 + $0x1ac] ss:$16 sps:$4 sm:$0xff]  }
 0x2d3   :  { %3193 = vmatprep.subr.bf16.mxu1 %v8537_v46  ;;  %v8544_v46 = vld [vmem:[#allocation12 + $0x188] ss:$16 sps:$4 sm:$0xff]  }
 0x2d6   :  { %3194 = vmatpush2.bf16.msra.mxu1 %v8535_v45  ;;  %v8546_v45 = vld [vmem:[#allocation12 + $0x18c] ss:$16 sps:$4 sm:$0xff]  }
 0x2d7   :  { %3195 = vmatprep.subr.bf16.mxu1 %v8543_v48  ;;  %v8550_v48 = vld [vmem:[#allocation12 + $0x168] ss:$16 sps:$4 sm:$0xff]  }
 0x2da   :  { %3196 = vmatpush2.bf16.msra.mxu1 %v8541_v47  ;;  %v8552_v47 = vld [vmem:[#allocation12 + $0x16c] ss:$16 sps:$4 sm:$0xff]  }
 0x2db   :  { %3197 = vmatprep.subr.bf16.mxu1 %v8549_v50  ;;  %v1517_v50 = vrot.slane %v9777_v0, %v9736_v25 }
 0x2de   :  { %3198 = vmatpush2.bf16.msra.mxu1 %v8547_v49  ;;  %v8558_v49 = vld [vmem:[#allocation12 + $0x14c] ss:$16 sps:$4 sm:$0xff]  }
 0x2df   :  { %3199 = vmatprep.subr.bf16.mxu1 %v8555_v52  ;;  %v8556_v52 = vld [vmem:[#allocation12 + $0x148] ss:$16 sps:$4 sm:$0xff]  }
 0x2e2   :  { %3200 = vmatpush2.bf16.msra.mxu1 %v8553_v51  ;;  %v1521_v51 = vrot.slane %v9777_v0, %v9742_v27  ;;  %v8568_v0 = vld [vmem:[#allocation12 + $0x108] ss:$16 sps:$4 sm:$0xff]  }
 0x2e3   :  { %3201 = vmatprep.subr.bf16.mxu1 %v8561_v54 }
 0x2e6   :  { %3202 = vmatpush2.bf16.msra.mxu1 %v8559_v56 }
 0x2e7   :  { %3203 = vmatprep.subr.bf16.mxu1 %v8567_v60  ;;  %v8562_v60 = vld [vmem:[#allocation12 + $0x128] ss:$16 sps:$4 sm:$0xff]  }
 0x2ea   :  { %3204 = vmatpush2.bf16.msra.mxu1 %v8565_v62  ;;  %v8570_v62 = vld [vmem:[#allocation12 + $0x10c] ss:$16 sps:$4 sm:$0xff]  }
 0x2eb   :  { %3255 = vmatprep.subr.bf16.mxu1 %v8573_v63 }
 0x2ed   :  { %v2200_v53 = vpop.f32.mrf.mxu0 }
 0x2ee   :  { %v2201_v3 = vadd.f32 %v2200_v53, %v1509_v1  ;;  %v8564_v53 = vld [vmem:[#allocation12 + $0x12c] ss:$16 sps:$4 sm:$0xff]  }
 0x2ef   :  { %v2202_v55 = vpop.f32.mrf.mxu0 }
 0x2f0   :  { %v2203_v7 = vadd.f32 %v2202_v55, %v1513_v2 }
 0x2f1   :  { %v2204_v57 = vpop.f32.mrf.mxu0 }
 0x2f3   :  { %v2205_v61 = vpop.f32.mrf.mxu0 }
 0x32d   :  { %v2241_v5 = vpop.f32.mrf.mxu1  ;;  %v9783_v6 = vpop.f32.mrf.mxu0 }
 0x32e   :  { %v2242_v8 = vadd.f32 %v2241_v5, %v2201_v3  ;;  %v2283_v54 = vadd.f32 %v9783_v6, %v1517_v50  ;;  %v8643_v50 = vld [vmem:[#allocation15 + $0x1e0] ss:$16 sps:$4 sm:$0xff]  }
 0x32f   :  { %v2243_v9 = vpop.f32.mrf.mxu1  ;;  %v9785_v58 = vpop.f32.mrf.mxu0 }
 0x330   :  { %v2330_v4 = vmul.f32 0.2, %v2242_v8  ;;  %v2244_v59 = vadd.f32 %v2243_v9, %v2203_v7  ;;  %v2285_v56 = vadd.f32 %v9785_v58, %v1521_v51  ;;  %v8571_v9 = vld [vmem:[#allocation12 + $0x2e8] ss:$16 sps:$4 sm:$0xff]   ;;  %v8606_v51 = vld [vmem:[#allocation12 + $0x38c] ss:$16 sps:$4 sm:$0xff]  }
 0x331   :  { %v2245_v10 = vpop.f32.mrf.mxu1  ;;  %v2286_v11 = vpop.f32.mrf.mxu0 }
 0x332   :  { %v2331_v12 = vmul.f32 0.2, %v2244_v59  ;;  %v2334_v13 = vmax.f32 %v2242_v8, %v2330_v4  ;;  %v8576_v4 = vld [vmem:[#allocation12 + $0x2cc] ss:$16 sps:$4 sm:$0xff]   ;;  %v8577_v11 = vld [vmem:[#allocation12 + $0x2a8] ss:$16 sps:$4 sm:$0xff]  }
 0x333   :  { %v2246_v14 = vpop.f32.mrf.mxu1  ;;  %v2287_v16 = vpop.f32.mrf.mxu0  ;;  %v8579_v10 = vld [vmem:[#allocation12 + $0x2ac] ss:$16 sps:$4 sm:$0xff]  }
 0x334   :  { %v2335_v17 = vmax.f32 %v2244_v59, %v2331_v12  ;;  %v9787_v20 = vpack.c.bf16 %v2334_v13, %v2334_v13  ;;  %v8574_v59 = vld [vmem:[#allocation12 + $0x2c8] ss:$16 sps:$4 sm:$0xff]   ;;  %v8582_v12 = vld [vmem:[#allocation12 + $0x28c] ss:$16 sps:$4 sm:$0xff]   ;;  %v8619_v13 = vld [vmem:[#allocation15 + $0xe0] ss:$16 sps:$4 sm:$0xff]  }
 0x335   :  { %v8621_v14 = vld [vmem:[#allocation15 + $0xe4] ss:$16 sps:$4 sm:$0xff]  }
 0x336   :  { %v2468_v18 = vpack.c.bf16 %v2335_v17, %v2335_v17  ;;  %v8624_v16 = vld [vmem:[#allocation15 + $0xc4] ss:$16 sps:$4 sm:$0xff]  }
 0x337   :  { %v8580_v17 = vld [vmem:[#allocation12 + $0x288] ss:$16 sps:$4 sm:$0xff]  }
 0x338   :  { %3164 = vmatprep.mubr.bf16.mxu0 %v2468_v18 }
 0x339   :  { %3165 = vmatmul.mubr.bf16.vlgmr.msra.gmra.mxu0 %v9787_v20 }
 0x33a   :  { %3215 = vmatpush1.bf16.msra.mxu0 %v8478_v19  ;;  %3246 = vmatprep.mubr.bf16.mxu0 %v2468_v18  ;;  %v8622_v18 = vld [vmem:[#allocation15 + $0xc0] ss:$16 sps:$4 sm:$0xff]   ;;  %v8585_v19 = vld [vmem:[#allocation12 + $0x26c] ss:$16 sps:$4 sm:$0xff]  }
 0x33b   :  { %3216 = vmatprep.subr.bf16.mxu0 %v8486_v21  ;;  %v8583_v21 = vld [vmem:[#allocation12 + $0x268] ss:$16 sps:$4 sm:$0xff]  }
 0x33e   :  { %3217 = vmatpush1.bf16.msra.mxu0 %v8484_v23  ;;  %v8625_v23 = vld [vmem:[#allocation15 + $0xa0] ss:$16 sps:$4 sm:$0xff]  }
 0x33f   :  { %3218 = vmatprep.subr.bf16.mxu0 %v8492_v29  ;;  %v8588_v29 = vld [vmem:[#allocation12 + $0x24c] ss:$16 sps:$4 sm:$0xff]  }
 0x342   :  { %3219 = vmatpush1.bf16.msra.mxu0 %v8490_v30  ;;  %v8630_v30 = vld [vmem:[#allocation15 + $0x84] ss:$16 sps:$4 sm:$0xff]  }
 0x343   :  { %3220 = vmatprep.subr.bf16.mxu0 %v8498_v31  ;;  %v8586_v31 = vld [vmem:[#allocation12 + $0x248] ss:$16 sps:$4 sm:$0xff]  }
 0x346   :  { %3221 = vmatpush1.bf16.msra.mxu0 %v8496_v15  ;;  %v8628_v15 = vld [vmem:[#allocation15 + $0x80] ss:$16 sps:$4 sm:$0xff]  }
 0x347   :  { %3222 = vmatprep.subr.bf16.mxu0 %v8504_v32  ;;  %v8591_v32 = vld [vmem:[#allocation12 + $0x22c] ss:$16 sps:$4 sm:$0xff]  }
 0x34a   :  { %3223 = vmatpush1.bf16.msra.mxu0 %v8502_v28  ;;  %v8633_v28 = vld [vmem:[#allocation15 + $0x64] ss:$16 sps:$4 sm:$0xff]  }
 0x34b   :  { %3224 = vmatprep.subr.bf16.mxu0 %v8510_v33  ;;  %v8589_v33 = vld [vmem:[#allocation12 + $0x228] ss:$16 sps:$4 sm:$0xff]  }
 0x34e   :  { %3225 = vmatpush1.bf16.msra.mxu0 %v8508_v34  ;;  %v8631_v34 = vld [vmem:[#allocation15 + $0x60] ss:$16 sps:$4 sm:$0xff]  }
 0x34f   :  { %3226 = vmatprep.subr.bf16.mxu0 %v8516_v35  ;;  %v8594_v35 = vld [vmem:[#allocation12 + $0x20c] ss:$16 sps:$4 sm:$0xff]  }
 0x352   :  { %3227 = vmatpush1.bf16.msra.mxu0 %v8514_v36  ;;  %v8636_v36 = vld [vmem:[#allocation15 + $0x44] ss:$16 sps:$4 sm:$0xff]  }
 0x353   :  { %3228 = vmatprep.subr.bf16.mxu0 %v8522_v37  ;;  %v8592_v37 = vld [vmem:[#allocation12 + $0x208] ss:$16 sps:$4 sm:$0xff]  }
 0x356   :  { %3229 = vmatpush1.bf16.msra.mxu0 %v8520_v38  ;;  %v8634_v38 = vld [vmem:[#allocation15 + $0x40] ss:$16 sps:$4 sm:$0xff]  }
 0x357   :  { %3230 = vmatprep.subr.bf16.mxu0 %v8528_v39  ;;  %v8597_v39 = vld [vmem:[#allocation12 + $0x3ec] ss:$16 sps:$4 sm:$0xff]  }
 0x35a   :  { %3231 = vmatpush2.bf16.msra.mxu0 %v8526_v40  ;;  %v8639_v40 = vld [vmem:[#allocation15 + $0x24] ss:$16 sps:$4 sm:$0xff]  }
 0x35b   :  { %3232 = vmatprep.subr.bf16.mxu0 %v8534_v41  ;;  %v8595_v41 = vld [vmem:[#allocation12 + $0x3e8] ss:$16 sps:$4 sm:$0xff]  }
 0x35e   :  { %3233 = vmatpush2.bf16.msra.mxu0 %v8532_v42  ;;  %v8637_v42 = vld [vmem:[#allocation15 + $0x20] ss:$16 sps:$4 sm:$0xff]  }
 0x35f   :  { %3234 = vmatprep.subr.bf16.mxu0 %v8540_v43  ;;  %v8600_v43 = vld [vmem:[#allocation12 + $0x3cc] ss:$16 sps:$4 sm:$0xff]  }
 0x362   :  { %3235 = vmatpush2.bf16.msra.mxu0 %v8538_v44  ;;  %v8642_v44 = vld [vmem:[#allocation15 + $0x4] ss:$16 sps:$4 sm:$0xff]  }
 0x363   :  { %3236 = vmatprep.subr.bf16.mxu0 %v8546_v45  ;;  %v8598_v45 = vld [vmem:[#allocation12 + $0x3c8] ss:$16 sps:$4 sm:$0xff]  }
 0x366   :  { %3237 = vmatpush2.bf16.msra.mxu0 %v8544_v46  ;;  %v8640_v46 = vld [vmem:[#allocation15] ss:$16 sps:$4 sm:$0xff]  }
 0x367   :  { %3238 = vmatprep.subr.bf16.mxu0 %v8552_v47  ;;  %v8603_v47 = vld [vmem:[#allocation12 + $0x3ac] ss:$16 sps:$4 sm:$0xff]  }
 0x36a   :  { %3239 = vmatpush2.bf16.msra.mxu0 %v8550_v48  ;;  %v8645_v48 = vld [vmem:[#allocation15 + $0x1e4] ss:$16 sps:$4 sm:$0xff]  }
 0x36b   :  { %3240 = vmatprep.subr.bf16.mxu0 %v8558_v49  ;;  %v8601_v49 = vld [vmem:[#allocation12 + $0x3a8] ss:$16 sps:$4 sm:$0xff]  }
 0x36d   :  { %v2323_v55 = vpop.f32.mrf.mxu1 }
 0x36e   :  { %v2324_v57 = vadd.f32 %v2323_v55, %v2283_v54  ;;  %3241 = vmatpush2.bf16.msra.mxu0 %v8556_v52  ;;  %v8648_v52 = vld [vmem:[#allocation15 + $0x1c4] ss:$16 sps:$4 sm:$0xff]   ;;  %v8646_v54 = vld [vmem:[#allocation15 + $0x1c0] ss:$16 sps:$4 sm:$0xff]   ;;  %v8609_v55 = vld [vmem:[#allocation12 + $0x36c] ss:$16 sps:$4 sm:$0xff]  }
 0x36f   :  { %v2325_v61 = vpop.f32.mrf.mxu1  ;;  %3242 = vmatprep.subr.bf16.mxu0 %v8564_v53  ;;  %v8604_v53 = vld [vmem:[#allocation12 + $0x388] ss:$16 sps:$4 sm:$0xff]  }
 0x370   :  { %v2332_v63 = vmul.f32 0.2, %v2324_v57  ;;  %v2326_v1 = vadd.f32 %v2325_v61, %v2285_v56  ;;  %v8651_v56 = vld [vmem:[#allocation15 + $0x1a4] ss:$16 sps:$4 sm:$0xff]   ;;  %v8612_v61 = vld [vmem:[#allocation12 + $0x34c] ss:$16 sps:$4 sm:$0xff]  }
 0x371   :  { %v2327_v2 = vpop.f32.mrf.mxu1 }
 0x372   :  { %v2333_v3 = vmul.f32 0.2, %v2326_v1  ;;  %3243 = vmatpush2.bf16.msra.mxu0 %v8562_v60  ;;  %v2336_v5 = vmax.f32 %v2324_v57, %v2332_v63  ;;  %v8607_v57 = vld [vmem:[#allocation12 + $0x368] ss:$16 sps:$4 sm:$0xff]   ;;  %v8649_v60 = vld [vmem:[#allocation15 + $0x1a0] ss:$16 sps:$4 sm:$0xff]  }
 0x373   :  { %v2328_v7 = vpop.f32.mrf.mxu1  ;;  %3244 = vmatprep.subr.bf16.mxu0 %v8570_v62  ;;  %v8654_v62 = vld [vmem:[#allocation15 + $0x184] ss:$16 sps:$4 sm:$0xff]   ;;  %v8615_v2 = vld [vmem:[#allocation12 + $0x32c] ss:$16 sps:$4 sm:$0xff]  }
 0x374   :  { %v2337_v8 = vmax.f32 %v2326_v1, %v2333_v3  ;;  %v9796_v58 = vpack.c.bf16 %v2336_v5, %v2336_v5  ;;  %v8610_v63 = vld [vmem:[#allocation12 + $0x348] ss:$16 sps:$4 sm:$0xff]   ;;  %v8652_v1 = vld [vmem:[#allocation15 + $0x180] ss:$16 sps:$4 sm:$0xff]   ;;  %v8618_v7 = vld [vmem:[#allocation12 + $0x30c] ss:$16 sps:$4 sm:$0xff]  }
 0x375   :  { %v8657_v3 = vld [vmem:[#allocation15 + $0x164] ss:$16 sps:$4 sm:$0xff]   ;;  %v8655_v5 = vld [vmem:[#allocation15 + $0x160] ss:$16 sps:$4 sm:$0xff]  }
 0x376   :  { %v2470_v6 = vpack.c.bf16 %v2337_v8, %v2337_v8  ;;  %3245 = vmatpush2.bf16.msra.mxu0 %v8568_v0  ;;  %v8613_v0 = vld [vmem:[#allocation12 + $0x328] ss:$16 sps:$4 sm:$0xff]  }
 0x377   :  { %4098 = vmatprep.subr.bf16.mxu0 %v8621_v14  ;;  %v8660_v8 = vld [vmem:[#allocation15 + $0x144] ss:$16 sps:$4 sm:$0xff]   ;;  %v8672_v14 = vld [vmem:[#allocation15 + $0xec] ss:$16 sps:$4 sm:$0xff]  }
 0x378   :  { %3205 = vmatprep.mubr.bf16.mxu1 %v2470_v6 }
 0x379   :  { %3206 = vmatmul.mubr.bf16.vlgmr.msra.gmra.mxu1 %v9796_v58  ;;  %3247 = vmatmul.mubr.bf16.vlgmr.msra.gmra.mxu0 %v9787_v20  ;;  %v8627_v20 = vld [vmem:[#allocation15 + $0xa4] ss:$16 sps:$4 sm:$0xff]  }
 0x37a   :  { %3256 = vmatpush1.bf16.msra.mxu1 %v8571_v9  ;;  %3287 = vmatprep.mubr.bf16.mxu1 %v2470_v6  ;;  %v8616_v6 = vld [vmem:[#allocation12 + $0x308] ss:$16 sps:$4 sm:$0xff]   ;;  %v8658_v9 = vld [vmem:[#allocation15 + $0x140] ss:$16 sps:$4 sm:$0xff]  }
 0x37b   :  { %3257 = vmatprep.subr.bf16.mxu1 %v8576_v4  ;;  %4099 = vmatpush1.bf16.msra.mxu0 %v8619_v13  ;;  %v8663_v4 = vld [vmem:[#allocation15 + $0x124] ss:$16 sps:$4 sm:$0xff]  }
 0x37c   :  { %4100 = vmatprep.subr.bf16.mxu0 %v8624_v16  ;;  %v8669_v13 = vld [vmem:[#allocation15 + $0x2e4] ss:$16 sps:$4 sm:$0xff]   ;;  %v8673_v16 = vld [vmem:[#allocation15 + $0x2c0] ss:$16 sps:$4 sm:$0xff]  }
 0x37e   :  { %3258 = vmatpush1.bf16.msra.mxu1 %v8574_v59  ;;  %v8661_v59 = vld [vmem:[#allocation15 + $0x120] ss:$16 sps:$4 sm:$0xff]  }
 0x37f   :  { %3259 = vmatprep.subr.bf16.mxu1 %v8579_v10  ;;  %4101 = vmatpush1.bf16.msra.mxu0 %v8622_v18  ;;  %v8666_v10 = vld [vmem:[#allocation15 + $0x104] ss:$16 sps:$4 sm:$0xff]   ;;  %v8679_v18 = vld [vmem:[#allocation15 + $0x2a0] ss:$16 sps:$4 sm:$0xff]  }
 0x380   :  { %4102 = vmatprep.subr.bf16.mxu0 %v8627_v20  ;;  %v8687_v20 = vld [vmem:[#allocation15 + $0x284] ss:$16 sps:$4 sm:$0xff]  }
 0x382   :  { %3260 = vmatpush1.bf16.msra.mxu1 %v8577_v11  ;;  %v8664_v11 = vld [vmem:[#allocation15 + $0x100] ss:$16 sps:$4 sm:$0xff]  }
 0x383   :  { %3261 = vmatprep.subr.bf16.mxu1 %v8582_v12  ;;  %4103 = vmatpush1.bf16.msra.mxu0 %v8625_v23  ;;  %v8667_v12 = vld [vmem:[#allocation15 + $0x2e0] ss:$16 sps:$4 sm:$0xff]   ;;  %v8693_v23 = vld [vmem:[#allocation15 + $0x264] ss:$16 sps:$4 sm:$0xff]  }
 0x384   :  { %4104 = vmatprep.subr.bf16.mxu0 %v8630_v30  ;;  %v8699_v30 = vld [vmem:[#allocation15 + $0x244] ss:$16 sps:$4 sm:$0xff]  }
 0x386   :  { %3262 = vmatpush1.bf16.msra.mxu1 %v8580_v17  ;;  %v8675_v17 = vld [vmem:[#allocation15 + $0x2c4] ss:$16 sps:$4 sm:$0xff]  }
 0x387   :  { %3263 = vmatprep.subr.bf16.mxu1 %v8585_v19  ;;  %4105 = vmatpush1.bf16.msra.mxu0 %v8628_v15  ;;  %v8685_v19 = vld [vmem:[#allocation15 + $0x280] ss:$16 sps:$4 sm:$0xff]   ;;  %v8705_v15 = vld [vmem:[#allocation15 + $0x224] ss:$16 sps:$4 sm:$0xff]  }
 0x388   :  { %4106 = vmatprep.subr.bf16.mxu0 %v8633_v28  ;;  %v8711_v28 = vld [vmem:[#allocation15 + $0x204] ss:$16 sps:$4 sm:$0xff]  }
 0x38a   :  { %3264 = vmatpush1.bf16.msra.mxu1 %v8583_v21  ;;  %v8691_v21 = vld [vmem:[#allocation15 + $0x260] ss:$16 sps:$4 sm:$0xff]  }
 0x38b   :  { %3265 = vmatprep.subr.bf16.mxu1 %v8588_v29  ;;  %4107 = vmatpush1.bf16.msra.mxu0 %v8631_v34  ;;  %v8697_v29 = vld [vmem:[#allocation15 + $0x240] ss:$16 sps:$4 sm:$0xff]   ;;  %v8717_v34 = vld [vmem:[#allocation15 + $0x3e4] ss:$16 sps:$4 sm:$0xff]  }
 0x38c   :  { %4108 = vmatprep.subr.bf16.mxu0 %v8636_v36  ;;  %v8723_v36 = vld [vmem:[#allocation15 + $0x3c4] ss:$16 sps:$4 sm:$0xff]  }
 0x38e   :  { %3266 = vmatpush1.bf16.msra.mxu1 %v8586_v31  ;;  %v8703_v31 = vld [vmem:[#allocation15 + $0x220] ss:$16 sps:$4 sm:$0xff]  }
 0x38f   :  { %3267 = vmatprep.subr.bf16.mxu1 %v8591_v32  ;;  %4109 = vmatpush1.bf16.msra.mxu0 %v8634_v38  ;;  %v8709_v32 = vld [vmem:[#allocation15 + $0x200] ss:$16 sps:$4 sm:$0xff]   ;;  %v8729_v38 = vld [vmem:[#allocation15 + $0x3a4] ss:$16 sps:$4 sm:$0xff]  }
 0x390   :  { %4110 = vmatprep.subr.bf16.mxu0 %v8639_v40  ;;  %v8735_v40 = vld [vmem:[#allocation15 + $0x384] ss:$16 sps:$4 sm:$0xff]  }
 0x392   :  { %3268 = vmatpush1.bf16.msra.mxu1 %v8589_v33  ;;  %v8715_v33 = vld [vmem:[#allocation15 + $0x3e0] ss:$16 sps:$4 sm:$0xff]  }
 0x393   :  { %3269 = vmatprep.subr.bf16.mxu1 %v8594_v35  ;;  %4111 = vmatpush1.bf16.msra.mxu0 %v8637_v42  ;;  %v8721_v35 = vld [vmem:[#allocation15 + $0x3c0] ss:$16 sps:$4 sm:$0xff]   ;;  %v8741_v42 = vld [vmem:[#allocation15 + $0x364] ss:$16 sps:$4 sm:$0xff]  }
 0x394   :  { %4112 = vmatprep.subr.bf16.mxu0 %v8642_v44  ;;  %v8747_v44 = vld [vmem:[#allocation15 + $0x344] ss:$16 sps:$4 sm:$0xff]  }
 0x396   :  { %3270 = vmatpush1.bf16.msra.mxu1 %v8592_v37  ;;  %v8727_v37 = vld [vmem:[#allocation15 + $0x3a0] ss:$16 sps:$4 sm:$0xff]  }
 0x397   :  { %3271 = vmatprep.subr.bf16.mxu1 %v8597_v39  ;;  %4113 = vmatpush1.bf16.msra.mxu0 %v8640_v46  ;;  %v8733_v39 = vld [vmem:[#allocation15 + $0x380] ss:$16 sps:$4 sm:$0xff]   ;;  %v8753_v46 = vld [vmem:[#allocation15 + $0x324] ss:$16 sps:$4 sm:$0xff]  }
 0x398   :  { %4114 = vmatprep.subr.bf16.mxu0 %v8645_v48  ;;  %v8751_v48 = vld [vmem:[#allocation15 + $0x320] ss:$16 sps:$4 sm:$0xff]  }
 0x39a   :  { %3272 = vmatpush2.bf16.msra.mxu1 %v8595_v41  ;;  %v8739_v41 = vld [vmem:[#allocation15 + $0x360] ss:$16 sps:$4 sm:$0xff]  }
 0x39b   :  { %3273 = vmatprep.subr.bf16.mxu1 %v8600_v43  ;;  %4115 = vmatpush2.bf16.msra.mxu0 %v8643_v50  ;;  %v8745_v43 = vld [vmem:[#allocation15 + $0x340] ss:$16 sps:$4 sm:$0xff]   ;;  %v8759_v50 = vld [vmem:[#allocation15 + $0x304] ss:$16 sps:$4 sm:$0xff]  }
 0x39c   :  { %4116 = vmatprep.subr.bf16.mxu0 %v8648_v52  ;;  %v8757_v52 = vld [vmem:[#allocation15 + $0x300] ss:$16 sps:$4 sm:$0xff]  }
 0x39e   :  { %3274 = vmatpush2.bf16.msra.mxu1 %v8598_v45 }
 0x39f   :  { %3275 = vmatprep.subr.bf16.mxu1 %v8603_v47  ;;  %4117 = vmatpush2.bf16.msra.mxu0 %v8646_v54  ;;  %v9801_v54 = vld [vmem:[#allocation13] sm:$0xf] }
 0x3a0   :  { %4118 = vmatprep.subr.bf16.mxu0 %v8651_v56  ;;  %v2479_v56 = vrot.slane %v9801_v54, %v9739_v26 }
 0x3a2   :  { %3276 = vmatpush2.bf16.msra.mxu1 %v8601_v49 }
 0x3a3   :  { %3277 = vmatprep.subr.bf16.mxu1 %v8606_v51  ;;  %4119 = vmatpush2.bf16.msra.mxu0 %v8649_v60 }
 0x3a4   :  { %4120 = vmatprep.subr.bf16.mxu0 %v8654_v62 }
 0x3a6   :  { %3278 = vmatpush2.bf16.msra.mxu1 %v8604_v53  ;;  %v8765_v53 = vld [vmem:[#allocation15 + $0x2ec] ss:$16 sps:$4 sm:$0xff]  }
 0x3a7   :  { %3279 = vmatprep.subr.bf16.mxu1 %v8609_v55  ;;  %4121 = vmatpush2.bf16.msra.mxu0 %v8652_v1  ;;  %v2475_v55 = vrot.slane %v9801_v54, %v9733_v24 }
 0x3a8   :  { %4122 = vmatprep.subr.bf16.mxu0 %v8657_v3 }
 0x3aa   :  { %3280 = vmatpush2.bf16.msra.mxu1 %v8607_v57 }
 0x3ab   :  { %3281 = vmatprep.subr.bf16.mxu1 %v8612_v61  ;;  %4123 = vmatpush2.bf16.msra.mxu0 %v8655_v5 }
 0x3ac   :  { %4124 = vmatprep.subr.bf16.mxu0 %v8660_v8 }
 0x3ae   :  { %3282 = vmatpush2.bf16.msra.mxu1 %v8610_v63 }
 0x3af   :  { %3283 = vmatprep.subr.bf16.mxu1 %v8615_v2  ;;  %4125 = vmatpush2.bf16.msra.mxu0 %v8658_v9 }
 0x3b0   :  { %4126 = vmatprep.subr.bf16.mxu0 %v8663_v4 }
 0x3b2   :  { %3284 = vmatpush2.bf16.msra.mxu1 %v8613_v0 }
 0x3b3   :  { %3285 = vmatprep.subr.bf16.mxu1 %v8618_v7  ;;  %4127 = vmatpush2.bf16.msra.mxu0 %v8661_v59 }
 0x3b4   :  { %4128 = vmatprep.subr.bf16.mxu0 %v8666_v10 }
 0x3b6   :  { %3286 = vmatpush2.bf16.msra.mxu1 %v8616_v6 }
 0x3b7   :  { %4129 = vmatpush2.bf16.msra.mxu0 %v8664_v11  ;;  %4139 = vmatprep.subr.bf16.mxu1 %v8669_v13  ;;  %v8670_v11 = vld [vmem:[#allocation15 + $0xe8] ss:$16 sps:$4 sm:$0xff]   ;;  %v8678_v13 = vld [vmem:[#allocation15 + $0xcc] ss:$16 sps:$4 sm:$0xff]  }
 0x3b8   :  { %4180 = vmatprep.subr.bf16.mxu0 %v8672_v14  ;;  %v8676_v14 = vld [vmem:[#allocation15 + $0xc8] ss:$16 sps:$4 sm:$0xff]  }
 0x3b9   :  { %3288 = vmatmul.mubr.bf16.vlgmr.msra.gmra.mxu1 %v9796_v58  ;;  %v8681_v58 = vld [vmem:[#allocation15 + $0x2a4] ss:$16 sps:$4 sm:$0xff]  }
 0x3ba   :  { %4140 = vmatpush1.bf16.msra.mxu1 %v8667_v12 }
 0x3bb   :  { %4141 = vmatprep.subr.bf16.mxu1 %v8675_v17  ;;  %v8682_v17 = vld [vmem:[#allocation15 + $0xa8] ss:$16 sps:$4 sm:$0xff]  }
 0x3be   :  { %4142 = vmatpush1.bf16.msra.mxu1 %v8673_v16  ;;  %v8684_v16 = vld [vmem:[#allocation15 + $0xac] ss:$16 sps:$4 sm:$0xff]  }
 0x3bf   :  { %4143 = vmatprep.subr.bf16.mxu1 %v8681_v58  ;;  %v8688_v58 = vld [vmem:[#allocation15 + $0x88] ss:$16 sps:$4 sm:$0xff]  }
 0x3c2   :  { %4144 = vmatpush1.bf16.msra.mxu1 %v8679_v18  ;;  %v8690_v18 = vld [vmem:[#allocation15 + $0x8c] ss:$16 sps:$4 sm:$0xff]  }
 0x3c3   :  { %4145 = vmatprep.subr.bf16.mxu1 %v8687_v20  ;;  %v8694_v20 = vld [vmem:[#allocation15 + $0x68] ss:$16 sps:$4 sm:$0xff]  }
 0x3c6   :  { %4146 = vmatpush1.bf16.msra.mxu1 %v8685_v19  ;;  %v8696_v19 = vld [vmem:[#allocation15 + $0x6c] ss:$16 sps:$4 sm:$0xff]  }
 0x3c7   :  { %4147 = vmatprep.subr.bf16.mxu1 %v8693_v23  ;;  %v8700_v23 = vld [vmem:[#allocation15 + $0x48] ss:$16 sps:$4 sm:$0xff]  }
 0x3ca   :  { %4148 = vmatpush1.bf16.msra.mxu1 %v8691_v21  ;;  %v8702_v21 = vld [vmem:[#allocation15 + $0x4c] ss:$16 sps:$4 sm:$0xff]  }
 0x3cb   :  { %4149 = vmatprep.subr.bf16.mxu1 %v8699_v30  ;;  %v8706_v30 = vld [vmem:[#allocation15 + $0x28] ss:$16 sps:$4 sm:$0xff]  }
 0x3ce   :  { %4150 = vmatpush1.bf16.msra.mxu1 %v8697_v29  ;;  %v8708_v29 = vld [vmem:[#allocation15 + $0x2c] ss:$16 sps:$4 sm:$0xff]  }
 0x3cf   :  { %4151 = vmatprep.subr.bf16.mxu1 %v8705_v15  ;;  %v8712_v15 = vld [vmem:[#allocation15 + $0x8] ss:$16 sps:$4 sm:$0xff]  }
 0x3d2   :  { %4152 = vmatpush1.bf16.msra.mxu1 %v8703_v31  ;;  %v8714_v31 = vld [vmem:[#allocation15 + $0xc] ss:$16 sps:$4 sm:$0xff]  }
 0x3d3   :  { %4153 = vmatprep.subr.bf16.mxu1 %v8711_v28  ;;  %v8718_v28 = vld [vmem:[#allocation15 + $0x1e8] ss:$16 sps:$4 sm:$0xff]  }
 0x3d6   :  { %4154 = vmatpush1.bf16.msra.mxu1 %v8709_v32  ;;  %v8720_v32 = vld [vmem:[#allocation15 + $0x1ec] ss:$16 sps:$4 sm:$0xff]  }
 0x3d7   :  { %4155 = vmatprep.subr.bf16.mxu1 %v8717_v34  ;;  %v8724_v34 = vld [vmem:[#allocation15 + $0x1c8] ss:$16 sps:$4 sm:$0xff]  }
 0x3da   :  { %4156 = vmatpush2.bf16.msra.mxu1 %v8715_v33  ;;  %v8726_v33 = vld [vmem:[#allocation15 + $0x1cc] ss:$16 sps:$4 sm:$0xff]  }
 0x3db   :  { %4157 = vmatprep.subr.bf16.mxu1 %v8723_v36  ;;  %v8730_v36 = vld [vmem:[#allocation15 + $0x1a8] ss:$16 sps:$4 sm:$0xff]  }
 0x3de   :  { %4158 = vmatpush2.bf16.msra.mxu1 %v8721_v35  ;;  %v8732_v35 = vld [vmem:[#allocation15 + $0x1ac] ss:$16 sps:$4 sm:$0xff]  }
 0x3df   :  { %4159 = vmatprep.subr.bf16.mxu1 %v8729_v38  ;;  %v8736_v38 = vld [vmem:[#allocation15 + $0x188] ss:$16 sps:$4 sm:$0xff]  }
 0x3e2   :  { %4160 = vmatpush2.bf16.msra.mxu1 %v8727_v37  ;;  %v8738_v37 = vld [vmem:[#allocation15 + $0x18c] ss:$16 sps:$4 sm:$0xff]  }
 0x3e3   :  { %4161 = vmatprep.subr.bf16.mxu1 %v8735_v40  ;;  %v8742_v40 = vld [vmem:[#allocation15 + $0x168] ss:$16 sps:$4 sm:$0xff]  }
 0x3e6   :  { %4162 = vmatpush2.bf16.msra.mxu1 %v8733_v39  ;;  %v8744_v39 = vld [vmem:[#allocation15 + $0x16c] ss:$16 sps:$4 sm:$0xff]  }
 0x3e7   :  { %4163 = vmatprep.subr.bf16.mxu1 %v8741_v42  ;;  %v2483_v42 = vrot.slane %v9801_v54, %v9736_v25 }
 0x3ea   :  { %4164 = vmatpush2.bf16.msra.mxu1 %v8739_v41  ;;  %v8750_v41 = vld [vmem:[#allocation15 + $0x14c] ss:$16 sps:$4 sm:$0xff]  }
 0x3eb   :  { %4165 = vmatprep.subr.bf16.mxu1 %v8747_v44  ;;  %v8748_v44 = vld [vmem:[#allocation15 + $0x148] ss:$16 sps:$4 sm:$0xff]  }
 0x3ee   :  { %4166 = vmatpush2.bf16.msra.mxu1 %v8745_v43  ;;  %v2487_v43 = vrot.slane %v9801_v54, %v9742_v27  ;;  %v8760_v54 = vld [vmem:[#allocation15 + $0x108] ss:$16 sps:$4 sm:$0xff]  }
 0x3ef   :  { %4167 = vmatprep.subr.bf16.mxu1 %v8753_v46 }
 0x3f2   :  { %4168 = vmatpush2.bf16.msra.mxu1 %v8751_v48 }
 0x3f3   :  { %4169 = vmatprep.subr.bf16.mxu1 %v8759_v50  ;;  %v8754_v50 = vld [vmem:[#allocation15 + $0x128] ss:$16 sps:$4 sm:$0xff]  }
 0x3f6   :  { %4170 = vmatpush2.bf16.msra.mxu1 %v8757_v52  ;;  %v8762_v52 = vld [vmem:[#allocation15 + $0x10c] ss:$16 sps:$4 sm:$0xff]  }
 0x3f7   :  { %4221 = vmatprep.subr.bf16.mxu1 %v8765_v53 }
 0x3f9   :  { %v3166_v45 = vpop.f32.mrf.mxu0 }
 0x3fa   :  { %v3167_v57 = vadd.f32 %v3166_v45, %v2475_v55  ;;  %v8756_v45 = vld [vmem:[#allocation15 + $0x12c] ss:$16 sps:$4 sm:$0xff]  }
 0x3fb   :  { %v3168_v47 = vpop.f32.mrf.mxu0 }
 0x3fc   :  { %v3169_v62 = vadd.f32 %v3168_v47, %v2479_v56 }
 0x3fd   :  { %v3170_v49 = vpop.f32.mrf.mxu0 }
 0x3ff   :  { %v3171_v51 = vpop.f32.mrf.mxu0 }
 0x439   :  { %v3207_v60 = vpop.f32.mrf.mxu1  ;;  %v9807_v61 = vpop.f32.mrf.mxu0 }
 0x43a   :  { %v3208_v63 = vadd.f32 %v3207_v60, %v3167_v57  ;;  %v3249_v46 = vadd.f32 %v9807_v61, %v2483_v42  ;;  %v8835_v42 = vld [vmem:[#allocation16 + $0x1e0] ss:$16 sps:$4 sm:$0xff]  }
 0x43b   :  { %v3209_v1 = vpop.f32.mrf.mxu1  ;;  %v9809_v2 = vpop.f32.mrf.mxu0 }
 0x43c   :  { %v3296_v3 = vmul.f32 0.2, %v3208_v63  ;;  %v3210_v0 = vadd.f32 %v3209_v1, %v3169_v62  ;;  %v3251_v48 = vadd.f32 %v9809_v2, %v2487_v43  ;;  %v8763_v1 = vld [vmem:[#allocation15 + $0x2e8] ss:$16 sps:$4 sm:$0xff]   ;;  %v8798_v43 = vld [vmem:[#allocation15 + $0x38c] ss:$16 sps:$4 sm:$0xff]  }
 0x43d   :  { %v3211_v5 = vpop.f32.mrf.mxu1  ;;  %v3252_v7 = vpop.f32.mrf.mxu0 }
 0x43e   :  { %v3297_v8 = vmul.f32 0.2, %v3210_v0  ;;  %v3300_v6 = vmax.f32 %v3208_v63, %v3296_v3  ;;  %v8768_v3 = vld [vmem:[#allocation15 + $0x2cc] ss:$16 sps:$4 sm:$0xff]   ;;  %v8769_v7 = vld [vmem:[#allocation15 + $0x2a8] ss:$16 sps:$4 sm:$0xff]  }
 0x43f   :  { %v3212_v9 = vpop.f32.mrf.mxu1  ;;  %v3253_v4 = vpop.f32.mrf.mxu0  ;;  %v8771_v5 = vld [vmem:[#allocation15 + $0x2ac] ss:$16 sps:$4 sm:$0xff]  }
 0x440   :  { %v3301_v59 = vmax.f32 %v3210_v0, %v3297_v8  ;;  %v9811_v12 = vpack.c.bf16 %v3300_v6, %v3300_v6  ;;  %v8766_v0 = vld [vmem:[#allocation15 + $0x2c8] ss:$16 sps:$4 sm:$0xff]   ;;  %v8774_v8 = vld [vmem:[#allocation15 + $0x28c] ss:$16 sps:$4 sm:$0xff]   ;;  %v8811_v6 = vld [vmem:[#allocation16 + $0xe0] ss:$16 sps:$4 sm:$0xff]  }
 0x441   :  { %v8813_v9 = vld [vmem:[#allocation16 + $0xe4] ss:$16 sps:$4 sm:$0xff]  }
 0x442   :  { %v3434_v10 = vpack.c.bf16 %v3301_v59, %v3301_v59  ;;  %v8816_v4 = vld [vmem:[#allocation16 + $0xc4] ss:$16 sps:$4 sm:$0xff]   ;;  %v8772_v59 = vld [vmem:[#allocation15 + $0x288] ss:$16 sps:$4 sm:$0xff]  }
 0x444   :  { %4130 = vmatprep.mubr.bf16.mxu0 %v3434_v10 }
 0x445   :  { %4131 = vmatmul.mubr.bf16.vlgmr.msra.gmra.mxu0 %v9811_v12 }
 0x446   :  { %4181 = vmatpush1.bf16.msra.mxu0 %v8670_v11  ;;  %4212 = vmatprep.mubr.bf16.mxu0 %v3434_v10  ;;  %v8814_v10 = vld [vmem:[#allocation16 + $0xc0] ss:$16 sps:$4 sm:$0xff]   ;;  %v8777_v11 = vld [vmem:[#allocation15 + $0x26c] ss:$16 sps:$4 sm:$0xff]  }
 0x447   :  { %4182 = vmatprep.subr.bf16.mxu0 %v8678_v13  ;;  %v8775_v13 = vld [vmem:[#allocation15 + $0x268] ss:$16 sps:$4 sm:$0xff]  }
 0x44a   :  { %4183 = vmatpush1.bf16.msra.mxu0 %v8676_v14  ;;  %v8817_v14 = vld [vmem:[#allocation16 + $0xa0] ss:$16 sps:$4 sm:$0xff]  }
 0x44b   :  { %4184 = vmatprep.subr.bf16.mxu0 %v8684_v16  ;;  %v8780_v16 = vld [vmem:[#allocation15 + $0x24c] ss:$16 sps:$4 sm:$0xff]  }
 0x44e   :  { %4185 = vmatpush1.bf16.msra.mxu0 %v8682_v17  ;;  %v8822_v17 = vld [vmem:[#allocation16 + $0x84] ss:$16 sps:$4 sm:$0xff]  }
 0x44f   :  { %4186 = vmatprep.subr.bf16.mxu0 %v8690_v18  ;;  %v8778_v18 = vld [vmem:[#allocation15 + $0x248] ss:$16 sps:$4 sm:$0xff]  }
 0x452   :  { %4187 = vmatpush1.bf16.msra.mxu0 %v8688_v58  ;;  %v8820_v58 = vld [vmem:[#allocation16 + $0x80] ss:$16 sps:$4 sm:$0xff]  }
 0x453   :  { %4188 = vmatprep.subr.bf16.mxu0 %v8696_v19  ;;  %v8783_v19 = vld [vmem:[#allocation15 + $0x22c] ss:$16 sps:$4 sm:$0xff]  }
 0x456   :  { %4189 = vmatpush1.bf16.msra.mxu0 %v8694_v20  ;;  %v8825_v20 = vld [vmem:[#allocation16 + $0x64] ss:$16 sps:$4 sm:$0xff]  }
 0x457   :  { %4190 = vmatprep.subr.bf16.mxu0 %v8702_v21  ;;  %v8781_v21 = vld [vmem:[#allocation15 + $0x228] ss:$16 sps:$4 sm:$0xff]  }
 0x45a   :  { %4191 = vmatpush1.bf16.msra.mxu0 %v8700_v23  ;;  %v8823_v23 = vld [vmem:[#allocation16 + $0x60] ss:$16 sps:$4 sm:$0xff]  }
 0x45b   :  { %4192 = vmatprep.subr.bf16.mxu0 %v8708_v29  ;;  %v8786_v29 = vld [vmem:[#allocation15 + $0x20c] ss:$16 sps:$4 sm:$0xff]  }
 0x45e   :  { %4193 = vmatpush1.bf16.msra.mxu0 %v8706_v30  ;;  %v8828_v30 = vld [vmem:[#allocation16 + $0x44] ss:$16 sps:$4 sm:$0xff]  }
 0x45f   :  { %4194 = vmatprep.subr.bf16.mxu0 %v8714_v31  ;;  %v8784_v31 = vld [vmem:[#allocation15 + $0x208] ss:$16 sps:$4 sm:$0xff]  }
 0x462   :  { %4195 = vmatpush1.bf16.msra.mxu0 %v8712_v15  ;;  %v8826_v15 = vld [vmem:[#allocation16 + $0x40] ss:$16 sps:$4 sm:$0xff]  }
 0x463   :  { %4196 = vmatprep.subr.bf16.mxu0 %v8720_v32  ;;  %v8789_v32 = vld [vmem:[#allocation15 + $0x3ec] ss:$16 sps:$4 sm:$0xff]  }
 0x466   :  { %4197 = vmatpush2.bf16.msra.mxu0 %v8718_v28  ;;  %v8831_v28 = vld [vmem:[#allocation16 + $0x24] ss:$16 sps:$4 sm:$0xff]  }
 0x467   :  { %4198 = vmatprep.subr.bf16.mxu0 %v8726_v33  ;;  %v8787_v33 = vld [vmem:[#allocation15 + $0x3e8] ss:$16 sps:$4 sm:$0xff]  }
 0x46a   :  { %4199 = vmatpush2.bf16.msra.mxu0 %v8724_v34  ;;  %v8829_v34 = vld [vmem:[#allocation16 + $0x20] ss:$16 sps:$4 sm:$0xff]  }
 0x46b   :  { %4200 = vmatprep.subr.bf16.mxu0 %v8732_v35  ;;  %v8792_v35 = vld [vmem:[#allocation15 + $0x3cc] ss:$16 sps:$4 sm:$0xff]  }
 0x46e   :  { %4201 = vmatpush2.bf16.msra.mxu0 %v8730_v36  ;;  %v8834_v36 = vld [vmem:[#allocation16 + $0x4] ss:$16 sps:$4 sm:$0xff]  }
 0x46f   :  { %4202 = vmatprep.subr.bf16.mxu0 %v8738_v37  ;;  %v8790_v37 = vld [vmem:[#allocation15 + $0x3c8] ss:$16 sps:$4 sm:$0xff]  }
 0x472   :  { %4203 = vmatpush2.bf16.msra.mxu0 %v8736_v38  ;;  %v8832_v38 = vld [vmem:[#allocation16] ss:$16 sps:$4 sm:$0xff]  }
 0x473   :  { %4204 = vmatprep.subr.bf16.mxu0 %v8744_v39  ;;  %v8795_v39 = vld [vmem:[#allocation15 + $0x3ac] ss:$16 sps:$4 sm:$0xff]  }
 0x476   :  { %4205 = vmatpush2.bf16.msra.mxu0 %v8742_v40  ;;  %v8837_v40 = vld [vmem:[#allocation16 + $0x1e4] ss:$16 sps:$4 sm:$0xff]  }
 0x477   :  { %4206 = vmatprep.subr.bf16.mxu0 %v8750_v41  ;;  %v8793_v41 = vld [vmem:[#allocation15 + $0x3a8] ss:$16 sps:$4 sm:$0xff]  }
 0x479   :  { %v3289_v47 = vpop.f32.mrf.mxu1 }
 0x47a   :  { %v3290_v49 = vadd.f32 %v3289_v47, %v3249_v46  ;;  %4207 = vmatpush2.bf16.msra.mxu0 %v8748_v44  ;;  %v8840_v44 = vld [vmem:[#allocation16 + $0x1c4] ss:$16 sps:$4 sm:$0xff]   ;;  %v8838_v46 = vld [vmem:[#allocation16 + $0x1c0] ss:$16 sps:$4 sm:$0xff]   ;;  %v8801_v47 = vld [vmem:[#allocation15 + $0x36c] ss:$16 sps:$4 sm:$0xff]  }
 0x47b   :  { %v3291_v51 = vpop.f32.mrf.mxu1  ;;  %4208 = vmatprep.subr.bf16.mxu0 %v8756_v45  ;;  %v8796_v45 = vld [vmem:[#allocation15 + $0x388] ss:$16 sps:$4 sm:$0xff]  }
 0x47c   :  { %v3298_v53 = vmul.f32 0.2, %v3290_v49  ;;  %v3292_v55 = vadd.f32 %v3291_v51, %v3251_v48  ;;  %v8843_v48 = vld [vmem:[#allocation16 + $0x1a4] ss:$16 sps:$4 sm:$0xff]   ;;  %v8804_v51 = vld [vmem:[#allocation15 + $0x34c] ss:$16 sps:$4 sm:$0xff]  }
 0x47d   :  { %v3293_v56 = vpop.f32.mrf.mxu1 }
 0x47e   :  { %v3299_v57 = vmul.f32 0.2, %v3292_v55  ;;  %4209 = vmatpush2.bf16.msra.mxu0 %v8754_v50  ;;  %v3302_v60 = vmax.f32 %v3290_v49, %v3298_v53  ;;  %v8799_v49 = vld [vmem:[#allocation15 + $0x368] ss:$16 sps:$4 sm:$0xff]   ;;  %v8841_v50 = vld [vmem:[#allocation16 + $0x1a0] ss:$16 sps:$4 sm:$0xff]  }
 0x47f   :  { %v3294_v62 = vpop.f32.mrf.mxu1  ;;  %4210 = vmatprep.subr.bf16.mxu0 %v8762_v52  ;;  %v8846_v52 = vld [vmem:[#allocation16 + $0x184] ss:$16 sps:$4 sm:$0xff]   ;;  %v8802_v53 = vld [vmem:[#allocation15 + $0x348] ss:$16 sps:$4 sm:$0xff]   ;;  %v8807_v56 = vld [vmem:[#allocation15 + $0x32c] ss:$16 sps:$4 sm:$0xff]  }
 0x480   :  { %v3303_v63 = vmax.f32 %v3292_v55, %v3299_v57  ;;  %v9820_v2 = vpack.c.bf16 %v3302_v60, %v3302_v60  ;;  %v8844_v55 = vld [vmem:[#allocation16 + $0x180] ss:$16 sps:$4 sm:$0xff]   ;;  %v8849_v57 = vld [vmem:[#allocation16 + $0x164] ss:$16 sps:$4 sm:$0xff]   ;;  %v8810_v62 = vld [vmem:[#allocation15 + $0x30c] ss:$16 sps:$4 sm:$0xff]  }
 0x481   :  { %v8847_v60 = vld [vmem:[#allocation16 + $0x160] ss:$16 sps:$4 sm:$0xff]  }
 0x482   :  { %v3436_v61 = vpack.c.bf16 %v3303_v63, %v3303_v63  ;;  %4211 = vmatpush2.bf16.msra.mxu0 %v8760_v54  ;;  %v8805_v54 = vld [vmem:[#allocation15 + $0x328] ss:$16 sps:$4 sm:$0xff]   ;;  %v8852_v63 = vld [vmem:[#allocation16 + $0x144] ss:$16 sps:$4 sm:$0xff]  }
 0x483   :  { %5064 = vmatprep.subr.bf16.mxu0 %v8813_v9  ;;  %v8864_v9 = vld [vmem:[#allocation16 + $0xec] ss:$16 sps:$4 sm:$0xff]  }
 0x484   :  { %4171 = vmatprep.mubr.bf16.mxu1 %v3436_v61 }
 0x485   :  { %4172 = vmatmul.mubr.bf16.vlgmr.msra.gmra.mxu1 %v9820_v2  ;;  %4213 = vmatmul.mubr.bf16.vlgmr.msra.gmra.mxu0 %v9811_v12  ;;  %v8819_v12 = vld [vmem:[#allocation16 + $0xa4] ss:$16 sps:$4 sm:$0xff]  }
 0x486   :  { %4222 = vmatpush1.bf16.msra.mxu1 %v8763_v1  ;;  %4253 = vmatprep.mubr.bf16.mxu1 %v3436_v61  ;;  %v8808_v61 = vld [vmem:[#allocation15 + $0x308] ss:$16 sps:$4 sm:$0xff]   ;;  %v8850_v1 = vld [vmem:[#allocation16 + $0x140] ss:$16 sps:$4 sm:$0xff]  }
 0x487   :  { %4223 = vmatprep.subr.bf16.mxu1 %v8768_v3  ;;  %5065 = vmatpush1.bf16.msra.mxu0 %v8811_v6  ;;  %v8855_v3 = vld [vmem:[#allocation16 + $0x124] ss:$16 sps:$4 sm:$0xff]  }
 0x488   :  { %5066 = vmatprep.subr.bf16.mxu0 %v8816_v4  ;;  %v8861_v6 = vld [vmem:[#allocation16 + $0x2e4] ss:$16 sps:$4 sm:$0xff]   ;;  %v8865_v4 = vld [vmem:[#allocation16 + $0x2c0] ss:$16 sps:$4 sm:$0xff]  }
 0x48a   :  { %4224 = vmatpush1.bf16.msra.mxu1 %v8766_v0  ;;  %v8853_v0 = vld [vmem:[#allocation16 + $0x120] ss:$16 sps:$4 sm:$0xff]  }
 0x48b   :  { %4225 = vmatprep.subr.bf16.mxu1 %v8771_v5  ;;  %5067 = vmatpush1.bf16.msra.mxu0 %v8814_v10  ;;  %v8858_v5 = vld [vmem:[#allocation16 + $0x104] ss:$16 sps:$4 sm:$0xff]   ;;  %v8871_v10 = vld [vmem:[#allocation16 + $0x2a0] ss:$16 sps:$4 sm:$0xff]  }
 0x48c   :  { %5068 = vmatprep.subr.bf16.mxu0 %v8819_v12  ;;  %v8879_v12 = vld [vmem:[#allocation16 + $0x284] ss:$16 sps:$4 sm:$0xff]  }
 0x48e   :  { %4226 = vmatpush1.bf16.msra.mxu1 %v8769_v7  ;;  %v8856_v7 = vld [vmem:[#allocation16 + $0x100] ss:$16 sps:$4 sm:$0xff]  }
 0x48f   :  { %4227 = vmatprep.subr.bf16.mxu1 %v8774_v8  ;;  %5069 = vmatpush1.bf16.msra.mxu0 %v8817_v14  ;;  %v8859_v8 = vld [vmem:[#allocation16 + $0x2e0] ss:$16 sps:$4 sm:$0xff]   ;;  %v8885_v14 = vld [vmem:[#allocation16 + $0x264] ss:$16 sps:$4 sm:$0xff]  }
 0x490   :  { %5070 = vmatprep.subr.bf16.mxu0 %v8822_v17  ;;  %v8891_v17 = vld [vmem:[#allocation16 + $0x244] ss:$16 sps:$4 sm:$0xff]  }
 0x492   :  { %4228 = vmatpush1.bf16.msra.mxu1 %v8772_v59  ;;  %v8867_v59 = vld [vmem:[#allocation16 + $0x2c4] ss:$16 sps:$4 sm:$0xff]  }
 0x493   :  { %4229 = vmatprep.subr.bf16.mxu1 %v8777_v11  ;;  %5071 = vmatpush1.bf16.msra.mxu0 %v8820_v58  ;;  %v8877_v11 = vld [vmem:[#allocation16 + $0x280] ss:$16 sps:$4 sm:$0xff]   ;;  %v8897_v58 = vld [vmem:[#allocation16 + $0x224] ss:$16 sps:$4 sm:$0xff]  }
 0x494   :  { %5072 = vmatprep.subr.bf16.mxu0 %v8825_v20  ;;  %v8903_v20 = vld [vmem:[#allocation16 + $0x204] ss:$16 sps:$4 sm:$0xff]  }
 0x496   :  { %4230 = vmatpush1.bf16.msra.mxu1 %v8775_v13  ;;  %v8883_v13 = vld [vmem:[#allocation16 + $0x260] ss:$16 sps:$4 sm:$0xff]  }
 0x497   :  { %4231 = vmatprep.subr.bf16.mxu1 %v8780_v16  ;;  %5073 = vmatpush1.bf16.msra.mxu0 %v8823_v23  ;;  %v8889_v16 = vld [vmem:[#allocation16 + $0x240] ss:$16 sps:$4 sm:$0xff]   ;;  %v8909_v23 = vld [vmem:[#allocation16 + $0x3e4] ss:$16 sps:$4 sm:$0xff]  }
 0x498   :  { %5074 = vmatprep.subr.bf16.mxu0 %v8828_v30  ;;  %v8915_v30 = vld [vmem:[#allocation16 + $0x3c4] ss:$16 sps:$4 sm:$0xff]  }
 0x49a   :  { %4232 = vmatpush1.bf16.msra.mxu1 %v8778_v18  ;;  %v8895_v18 = vld [vmem:[#allocation16 + $0x220] ss:$16 sps:$4 sm:$0xff]  }
 0x49b   :  { %4233 = vmatprep.subr.bf16.mxu1 %v8783_v19  ;;  %5075 = vmatpush1.bf16.msra.mxu0 %v8826_v15  ;;  %v8901_v19 = vld [vmem:[#allocation16 + $0x200] ss:$16 sps:$4 sm:$0xff]   ;;  %v8921_v15 = vld [vmem:[#allocation16 + $0x3a4] ss:$16 sps:$4 sm:$0xff]  }
 0x49c   :  { %5076 = vmatprep.subr.bf16.mxu0 %v8831_v28  ;;  %v8927_v28 = vld [vmem:[#allocation16 + $0x384] ss:$16 sps:$4 sm:$0xff]  }
 0x49e   :  { %4234 = vmatpush1.bf16.msra.mxu1 %v8781_v21  ;;  %v8907_v21 = vld [vmem:[#allocation16 + $0x3e0] ss:$16 sps:$4 sm:$0xff]  }
 0x49f   :  { %4235 = vmatprep.subr.bf16.mxu1 %v8786_v29  ;;  %5077 = vmatpush1.bf16.msra.mxu0 %v8829_v34  ;;  %v8913_v29 = vld [vmem:[#allocation16 + $0x3c0] ss:$16 sps:$4 sm:$0xff]   ;;  %v8933_v34 = vld [vmem:[#allocation16 + $0x364] ss:$16 sps:$4 sm:$0xff]  }
 0x4a0   :  { %5078 = vmatprep.subr.bf16.mxu0 %v8834_v36  ;;  %v8939_v36 = vld [vmem:[#allocation16 + $0x344] ss:$16 sps:$4 sm:$0xff]  }
 0x4a2   :  { %4236 = vmatpush1.bf16.msra.mxu1 %v8784_v31  ;;  %v8919_v31 = vld [vmem:[#allocation16 + $0x3a0] ss:$16 sps:$4 sm:$0xff]  }
 0x4a3   :  { %4237 = vmatprep.subr.bf16.mxu1 %v8789_v32  ;;  %5079 = vmatpush1.bf16.msra.mxu0 %v8832_v38  ;;  %v8925_v32 = vld [vmem:[#allocation16 + $0x380] ss:$16 sps:$4 sm:$0xff]   ;;  %v8945_v38 = vld [vmem:[#allocation16 + $0x324] ss:$16 sps:$4 sm:$0xff]  }
 0x4a4   :  { %5080 = vmatprep.subr.bf16.mxu0 %v8837_v40  ;;  %v8943_v40 = vld [vmem:[#allocation16 + $0x320] ss:$16 sps:$4 sm:$0xff]  }
 0x4a6   :  { %4238 = vmatpush2.bf16.msra.mxu1 %v8787_v33  ;;  %v8931_v33 = vld [vmem:[#allocation16 + $0x360] ss:$16 sps:$4 sm:$0xff]  }
 0x4a7   :  { %4239 = vmatprep.subr.bf16.mxu1 %v8792_v35  ;;  %5081 = vmatpush2.bf16.msra.mxu0 %v8835_v42  ;;  %v8937_v35 = vld [vmem:[#allocation16 + $0x340] ss:$16 sps:$4 sm:$0xff]   ;;  %v8951_v42 = vld [vmem:[#allocation16 + $0x304] ss:$16 sps:$4 sm:$0xff]  }
 0x4a8   :  { %5082 = vmatprep.subr.bf16.mxu0 %v8840_v44  ;;  %v8949_v44 = vld [vmem:[#allocation16 + $0x300] ss:$16 sps:$4 sm:$0xff]  }
 0x4aa   :  { %4240 = vmatpush2.bf16.msra.mxu1 %v8790_v37 }
 0x4ab   :  { %4241 = vmatprep.subr.bf16.mxu1 %v8795_v39  ;;  %5083 = vmatpush2.bf16.msra.mxu0 %v8838_v46  ;;  %v9828_v46 = vld [vmem:[%s9945_s10] sm:$0xf] }
 0x4ac   :  { %5084 = vmatprep.subr.bf16.mxu0 %v8843_v48  ;;  %v3445_v48 = vrot.slane %v9828_v46, %v9739_v26 }
 0x4ae   :  { %4242 = vmatpush2.bf16.msra.mxu1 %v8793_v41 }
 0x4af   :  { %4243 = vmatprep.subr.bf16.mxu1 %v8798_v43  ;;  %5085 = vmatpush2.bf16.msra.mxu0 %v8841_v50 }
 0x4b0   :  { %5086 = vmatprep.subr.bf16.mxu0 %v8846_v52 }
 0x4b2   :  { %4244 = vmatpush2.bf16.msra.mxu1 %v8796_v45  ;;  %v8957_v45 = vld [vmem:[#allocation16 + $0x2ec] ss:$16 sps:$4 sm:$0xff]  }
 0x4b3   :  { %4245 = vmatprep.subr.bf16.mxu1 %v8801_v47  ;;  %5087 = vmatpush2.bf16.msra.mxu0 %v8844_v55  ;;  %v3441_v47 = vrot.slane %v9828_v46, %v9733_v24 }
 0x4b4   :  { %5088 = vmatprep.subr.bf16.mxu0 %v8849_v57 }
 0x4b6   :  { %4246 = vmatpush2.bf16.msra.mxu1 %v8799_v49 }
 0x4b7   :  { %4247 = vmatprep.subr.bf16.mxu1 %v8804_v51  ;;  %5089 = vmatpush2.bf16.msra.mxu0 %v8847_v60 }
 0x4b8   :  { %5090 = vmatprep.subr.bf16.mxu0 %v8852_v63 }
 0x4ba   :  { %4248 = vmatpush2.bf16.msra.mxu1 %v8802_v53 }
 0x4bb   :  { %4249 = vmatprep.subr.bf16.mxu1 %v8807_v56  ;;  %5091 = vmatpush2.bf16.msra.mxu0 %v8850_v1 }
 0x4bc   :  { %5092 = vmatprep.subr.bf16.mxu0 %v8855_v3 }
 0x4be   :  { %4250 = vmatpush2.bf16.msra.mxu1 %v8805_v54 }
 0x4bf   :  { %4251 = vmatprep.subr.bf16.mxu1 %v8810_v62  ;;  %5093 = vmatpush2.bf16.msra.mxu0 %v8853_v0 }
 0x4c0   :  { %5094 = vmatprep.subr.bf16.mxu0 %v8858_v5 }
 0x4c2   :  { %4252 = vmatpush2.bf16.msra.mxu1 %v8808_v61 }
 0x4c3   :  { %5095 = vmatpush2.bf16.msra.mxu0 %v8856_v7  ;;  %5105 = vmatprep.subr.bf16.mxu1 %v8861_v6  ;;  %v8862_v7 = vld [vmem:[#allocation16 + $0xe8] ss:$16 sps:$4 sm:$0xff]   ;;  %v8870_v6 = vld [vmem:[#allocation16 + $0xcc] ss:$16 sps:$4 sm:$0xff]  }
 0x4c4   :  { %5146 = vmatprep.subr.bf16.mxu0 %v8864_v9  ;;  %v8868_v9 = vld [vmem:[#allocation16 + $0xc8] ss:$16 sps:$4 sm:$0xff]  }
 0x4c5   :  { %4254 = vmatmul.mubr.bf16.vlgmr.msra.gmra.mxu1 %v9820_v2  ;;  %v8873_v2 = vld [vmem:[#allocation16 + $0x2a4] ss:$16 sps:$4 sm:$0xff]  }
 0x4c6   :  { %5106 = vmatpush1.bf16.msra.mxu1 %v8859_v8 }
 0x4c7   :  { %5107 = vmatprep.subr.bf16.mxu1 %v8867_v59  ;;  %v8874_v59 = vld [vmem:[#allocation16 + $0xa8] ss:$16 sps:$4 sm:$0xff]  }
 0x4ca   :  { %5108 = vmatpush1.bf16.msra.mxu1 %v8865_v4  ;;  %v8876_v4 = vld [vmem:[#allocation16 + $0xac] ss:$16 sps:$4 sm:$0xff]  }
 0x4cb   :  { %5109 = vmatprep.subr.bf16.mxu1 %v8873_v2  ;;  %v8880_v2 = vld [vmem:[#allocation16 + $0x88] ss:$16 sps:$4 sm:$0xff]  }
 0x4ce   :  { %5110 = vmatpush1.bf16.msra.mxu1 %v8871_v10  ;;  %v8882_v10 = vld [vmem:[#allocation16 + $0x8c] ss:$16 sps:$4 sm:$0xff]  }
 0x4cf   :  { %5111 = vmatprep.subr.bf16.mxu1 %v8879_v12  ;;  %v8886_v12 = vld [vmem:[#allocation16 + $0x68] ss:$16 sps:$4 sm:$0xff]  }
 0x4d2   :  { %5112 = vmatpush1.bf16.msra.mxu1 %v8877_v11  ;;  %v8888_v11 = vld [vmem:[#allocation16 + $0x6c] ss:$16 sps:$4 sm:$0xff]  }
 0x4d3   :  { %5113 = vmatprep.subr.bf16.mxu1 %v8885_v14  ;;  %v8892_v14 = vld [vmem:[#allocation16 + $0x48] ss:$16 sps:$4 sm:$0xff]  }
 0x4d6   :  { %5114 = vmatpush1.bf16.msra.mxu1 %v8883_v13  ;;  %v8894_v13 = vld [vmem:[#allocation16 + $0x4c] ss:$16 sps:$4 sm:$0xff]  }
 0x4d7   :  { %5115 = vmatprep.subr.bf16.mxu1 %v8891_v17  ;;  %v8898_v17 = vld [vmem:[#allocation16 + $0x28] ss:$16 sps:$4 sm:$0xff]  }
 0x4da   :  { %5116 = vmatpush1.bf16.msra.mxu1 %v8889_v16  ;;  %v8900_v16 = vld [vmem:[#allocation16 + $0x2c] ss:$16 sps:$4 sm:$0xff]  }
 0x4db   :  { %5117 = vmatprep.subr.bf16.mxu1 %v8897_v58  ;;  %v8904_v58 = vld [vmem:[#allocation16 + $0x8] ss:$16 sps:$4 sm:$0xff]  }
 0x4de   :  { %5118 = vmatpush1.bf16.msra.mxu1 %v8895_v18  ;;  %v8906_v18 = vld [vmem:[#allocation16 + $0xc] ss:$16 sps:$4 sm:$0xff]  }
 0x4df   :  { %5119 = vmatprep.subr.bf16.mxu1 %v8903_v20  ;;  %v8910_v20 = vld [vmem:[#allocation16 + $0x1e8] ss:$16 sps:$4 sm:$0xff]  }
 0x4e2   :  { %5120 = vmatpush1.bf16.msra.mxu1 %v8901_v19  ;;  %v8912_v19 = vld [vmem:[#allocation16 + $0x1ec] ss:$16 sps:$4 sm:$0xff]  }
 0x4e3   :  { %5121 = vmatprep.subr.bf16.mxu1 %v8909_v23  ;;  %v8916_v23 = vld [vmem:[#allocation16 + $0x1c8] ss:$16 sps:$4 sm:$0xff]  }
 0x4e6   :  { %5122 = vmatpush2.bf16.msra.mxu1 %v8907_v21  ;;  %v8918_v21 = vld [vmem:[#allocation16 + $0x1cc] ss:$16 sps:$4 sm:$0xff]  }
 0x4e7   :  { %5123 = vmatprep.subr.bf16.mxu1 %v8915_v30  ;;  %v8922_v30 = vld [vmem:[#allocation16 + $0x1a8] ss:$16 sps:$4 sm:$0xff]  }
 0x4ea   :  { %5124 = vmatpush2.bf16.msra.mxu1 %v8913_v29  ;;  %v8924_v29 = vld [vmem:[#allocation16 + $0x1ac] ss:$16 sps:$4 sm:$0xff]  }
 0x4eb   :  { %5125 = vmatprep.subr.bf16.mxu1 %v8921_v15  ;;  %v8928_v15 = vld [vmem:[#allocation16 + $0x188] ss:$16 sps:$4 sm:$0xff]  }
 0x4ee   :  { %5126 = vmatpush2.bf16.msra.mxu1 %v8919_v31  ;;  %v8930_v31 = vld [vmem:[#allocation16 + $0x18c] ss:$16 sps:$4 sm:$0xff]  }
 0x4ef   :  { %5127 = vmatprep.subr.bf16.mxu1 %v8927_v28  ;;  %v8934_v28 = vld [vmem:[#allocation16 + $0x168] ss:$16 sps:$4 sm:$0xff]  }
 0x4f2   :  { %5128 = vmatpush2.bf16.msra.mxu1 %v8925_v32  ;;  %v8936_v32 = vld [vmem:[#allocation16 + $0x16c] ss:$16 sps:$4 sm:$0xff]  }
 0x4f3   :  { %5129 = vmatprep.subr.bf16.mxu1 %v8933_v34  ;;  %v3449_v34 = vrot.slane %v9828_v46, %v9736_v25 }
 0x4f6   :  { %5130 = vmatpush2.bf16.msra.mxu1 %v8931_v33  ;;  %v8942_v33 = vld [vmem:[#allocation16 + $0x14c] ss:$16 sps:$4 sm:$0xff]  }
 0x4f7   :  { %5131 = vmatprep.subr.bf16.mxu1 %v8939_v36  ;;  %v8940_v36 = vld [vmem:[#allocation16 + $0x148] ss:$16 sps:$4 sm:$0xff]  }
 0x4fa   :  { %5132 = vmatpush2.bf16.msra.mxu1 %v8937_v35  ;;  %v3453_v35 = vrot.slane %v9828_v46, %v9742_v27  ;;  %v8952_v46 = vld [vmem:[#allocation16 + $0x108] ss:$16 sps:$4 sm:$0xff]  }
 0x4fb   :  { %5133 = vmatprep.subr.bf16.mxu1 %v8945_v38 }
 0x4fe   :  { %5134 = vmatpush2.bf16.msra.mxu1 %v8943_v40 }
 0x4ff   :  { %5135 = vmatprep.subr.bf16.mxu1 %v8951_v42  ;;  %v8946_v42 = vld [vmem:[#allocation16 + $0x128] ss:$16 sps:$4 sm:$0xff]  }
 0x502   :  { %5136 = vmatpush2.bf16.msra.mxu1 %v8949_v44  ;;  %v8954_v44 = vld [vmem:[#allocation16 + $0x10c] ss:$16 sps:$4 sm:$0xff]  }
 0x503   :  { %5187 = vmatprep.subr.bf16.mxu1 %v8957_v45 }
 0x505   :  { %v4132_v37 = vpop.f32.mrf.mxu0 }
 0x506   :  { %v4133_v49 = vadd.f32 %v4132_v37, %v3441_v47  ;;  %v8948_v37 = vld [vmem:[#allocation16 + $0x12c] ss:$16 sps:$4 sm:$0xff]  }
 0x507   :  { %v4134_v39 = vpop.f32.mrf.mxu0 }
 0x508   :  { %v4135_v52 = vadd.f32 %v4134_v39, %v3445_v48 }
 0x509   :  { %v4136_v41 = vpop.f32.mrf.mxu0 }
 0x50b   :  { %v4137_v43 = vpop.f32.mrf.mxu0 }
 0x545   :  { %v4173_v50 = vpop.f32.mrf.mxu1  ;;  %v9834_v51 = vpop.f32.mrf.mxu0 }
 0x546   :  { %v4174_v53 = vadd.f32 %v4173_v50, %v4133_v49  ;;  %v4215_v38 = vadd.f32 %v9834_v51, %v3449_v34  ;;  %v9027_v34 = vld [vmem:[#allocation18 + $0x348] ss:$28 sps:$4 sm:$0xff]  }
 0x547   :  { %v4175_v55 = vpop.f32.mrf.mxu1  ;;  %v9836_v56 = vpop.f32.mrf.mxu0 }
 0x548   :  { %v4262_v57 = vmul.f32 0.2, %v4174_v53  ;;  %v4176_v54 = vadd.f32 %v4175_v55, %v4135_v52  ;;  %v4217_v40 = vadd.f32 %v9836_v56, %v3453_v35  ;;  %v8955_v55 = vld [vmem:[#allocation16 + $0x2e8] ss:$16 sps:$4 sm:$0xff]   ;;  %v8990_v35 = vld [vmem:[#allocation16 + $0x38c] ss:$16 sps:$4 sm:$0xff]  }
 0x549   :  { %v4177_v60 = vpop.f32.mrf.mxu1  ;;  %v4218_v62 = vpop.f32.mrf.mxu0 }
 0x54a   :  { %v4263_v63 = vmul.f32 0.2, %v4176_v54  ;;  %v4266_v61 = vmax.f32 %v4174_v53, %v4262_v57  ;;  %v8960_v57 = vld [vmem:[#allocation16 + $0x2cc] ss:$16 sps:$4 sm:$0xff]   ;;  %v8961_v62 = vld [vmem:[#allocation16 + $0x2a8] ss:$16 sps:$4 sm:$0xff]  }
 0x54b   :  { %v4178_v1 = vpop.f32.mrf.mxu1  ;;  %v4219_v3 = vpop.f32.mrf.mxu0  ;;  %v8963_v60 = vld [vmem:[#allocation16 + $0x2ac] ss:$16 sps:$4 sm:$0xff]  }
 0x54c   :  { %v4267_v0 = vmax.f32 %v4176_v54, %v4263_v63  ;;  %v9838_v8 = vpack.c.bf16 %v4266_v61, %v4266_v61  ;;  %v8958_v54 = vld [vmem:[#allocation16 + $0x2c8] ss:$16 sps:$4 sm:$0xff]   ;;  %v8966_v63 = vld [vmem:[#allocation16 + $0x28c] ss:$16 sps:$4 sm:$0xff]   ;;  %v9008_v3 = vld [vmem:[#allocation18 + $0x154] ss:$28 sps:$4 sm:$0xff]  }
 0x54d   :  { %v9003_v61 = vld [vmem:[#allocation18 + $0x188] ss:$28 sps:$4 sm:$0xff]  }
 0x54e   :  { %v4400_v5 = vpack.c.bf16 %v4267_v0, %v4267_v0  ;;  %v9005_v1 = vld [vmem:[#allocation18 + $0x18c] ss:$28 sps:$4 sm:$0xff]  }
 0x54f   :  { %v8964_v0 = vld [vmem:[#allocation16 + $0x288] ss:$16 sps:$4 sm:$0xff]  }
 0x550   :  { %5096 = vmatprep.mubr.bf16.mxu0 %v4400_v5 }
 0x551   :  { %5097 = vmatmul.mubr.bf16.vlgmr.msra.gmra.mxu0 %v9838_v8 }
 0x552   :  { %5147 = vmatpush1.bf16.msra.mxu0 %v8862_v7  ;;  %5178 = vmatprep.mubr.bf16.mxu0 %v4400_v5  ;;  %v9006_v5 = vld [vmem:[#allocation18 + $0x150] ss:$28 sps:$4 sm:$0xff]  }
 0x553   :  { %5148 = vmatprep.subr.bf16.mxu0 %v8870_v6  ;;  %v8969_v7 = vld [vmem:[#allocation16 + $0x26c] ss:$16 sps:$4 sm:$0xff]   ;;  %v8967_v6 = vld [vmem:[#allocation16 + $0x268] ss:$16 sps:$4 sm:$0xff]  }
 0x556   :  { %5149 = vmatpush1.bf16.msra.mxu0 %v8868_v9  ;;  %v9009_v9 = vld [vmem:[#allocation18 + $0x118] ss:$28 sps:$4 sm:$0xff]  }
 0x557   :  { %5150 = vmatprep.subr.bf16.mxu0 %v8876_v4  ;;  %v8972_v4 = vld [vmem:[#allocation16 + $0x24c] ss:$16 sps:$4 sm:$0xff]  }
 0x55a   :  { %5151 = vmatpush1.bf16.msra.mxu0 %v8874_v59  ;;  %v9014_v59 = vld [vmem:[#allocation18 + $0xe4] ss:$28 sps:$4 sm:$0xff]  }
 0x55b   :  { %5152 = vmatprep.subr.bf16.mxu0 %v8882_v10  ;;  %v8970_v10 = vld [vmem:[#allocation16 + $0x248] ss:$16 sps:$4 sm:$0xff]  }
 0x55e   :  { %5153 = vmatpush1.bf16.msra.mxu0 %v8880_v2  ;;  %v9012_v2 = vld [vmem:[#allocation18 + $0xe0] ss:$28 sps:$4 sm:$0xff]  }
 0x55f   :  { %5154 = vmatprep.subr.bf16.mxu0 %v8888_v11  ;;  %v8975_v11 = vld [vmem:[#allocation16 + $0x22c] ss:$16 sps:$4 sm:$0xff]  }
 0x562   :  { %5155 = vmatpush1.bf16.msra.mxu0 %v8886_v12  ;;  %v9017_v12 = vld [vmem:[#allocation18 + $0xac] ss:$28 sps:$4 sm:$0xff]  }
 0x563   :  { %5156 = vmatprep.subr.bf16.mxu0 %v8894_v13  ;;  %v8973_v13 = vld [vmem:[#allocation16 + $0x228] ss:$16 sps:$4 sm:$0xff]  }
 0x566   :  { %5157 = vmatpush1.bf16.msra.mxu0 %v8892_v14  ;;  %v9015_v14 = vld [vmem:[#allocation18 + $0xa8] ss:$28 sps:$4 sm:$0xff]  }
 0x567   :  { %5158 = vmatprep.subr.bf16.mxu0 %v8900_v16  ;;  %v8978_v16 = vld [vmem:[#allocation16 + $0x20c] ss:$16 sps:$4 sm:$0xff]  }
 0x56a   :  { %5159 = vmatpush1.bf16.msra.mxu0 %v8898_v17  ;;  %v9020_v17 = vld [vmem:[#allocation18 + $0x74] ss:$28 sps:$4 sm:$0xff]  }
 0x56b   :  { %5160 = vmatprep.subr.bf16.mxu0 %v8906_v18  ;;  %v8976_v18 = vld [vmem:[#allocation16 + $0x208] ss:$16 sps:$4 sm:$0xff]  }
 0x56e   :  { %5161 = vmatpush1.bf16.msra.mxu0 %v8904_v58  ;;  %v9018_v58 = vld [vmem:[#allocation18 + $0x70] ss:$28 sps:$4 sm:$0xff]  }
 0x56f   :  { %5162 = vmatprep.subr.bf16.mxu0 %v8912_v19  ;;  %v8981_v19 = vld [vmem:[#allocation16 + $0x3ec] ss:$16 sps:$4 sm:$0xff]  }
 0x572   :  { %5163 = vmatpush2.bf16.msra.mxu0 %v8910_v20  ;;  %v9023_v20 = vld [vmem:[#allocation18 + $0x3c] ss:$28 sps:$4 sm:$0xff]  }
 0x573   :  { %5164 = vmatprep.subr.bf16.mxu0 %v8918_v21  ;;  %v8979_v21 = vld [vmem:[#allocation16 + $0x3e8] ss:$16 sps:$4 sm:$0xff]  }
 0x576   :  { %5165 = vmatpush2.bf16.msra.mxu0 %v8916_v23  ;;  %v9021_v23 = vld [vmem:[#allocation18 + $0x38] ss:$28 sps:$4 sm:$0xff]  }
 0x577   :  { %5166 = vmatprep.subr.bf16.mxu0 %v8924_v29  ;;  %v8984_v29 = vld [vmem:[#allocation16 + $0x3cc] ss:$16 sps:$4 sm:$0xff]  }
 0x57a   :  { %5167 = vmatpush2.bf16.msra.mxu0 %v8922_v30  ;;  %v9026_v30 = vld [vmem:[#allocation18 + $0x4] ss:$28 sps:$4 sm:$0xff]  }
 0x57b   :  { %5168 = vmatprep.subr.bf16.mxu0 %v8930_v31  ;;  %v8982_v31 = vld [vmem:[#allocation16 + $0x3c8] ss:$16 sps:$4 sm:$0xff]  }
 0x57e   :  { %5169 = vmatpush2.bf16.msra.mxu0 %v8928_v15  ;;  %v9024_v15 = vld [vmem:[#allocation18] ss:$28 sps:$4 sm:$0xff]  }
 0x57f   :  { %5170 = vmatprep.subr.bf16.mxu0 %v8936_v32  ;;  %v8987_v32 = vld [vmem:[#allocation16 + $0x3ac] ss:$16 sps:$4 sm:$0xff]  }
 0x582   :  { %5171 = vmatpush2.bf16.msra.mxu0 %v8934_v28  ;;  %v9029_v28 = vld [vmem:[#allocation18 + $0x34c] ss:$28 sps:$4 sm:$0xff]  }
 0x583   :  { %5172 = vmatprep.subr.bf16.mxu0 %v8942_v33  ;;  %v8985_v33 = vld [vmem:[#allocation16 + $0x3a8] ss:$16 sps:$4 sm:$0xff]  }
 0x585   :  { %v4255_v39 = vpop.f32.mrf.mxu1 }
 0x586   :  { %v4256_v41 = vadd.f32 %v4255_v39, %v4215_v38  ;;  %5173 = vmatpush2.bf16.msra.mxu0 %v8940_v36  ;;  %v9032_v36 = vld [vmem:[#allocation18 + $0x314] ss:$28 sps:$4 sm:$0xff]   ;;  %v8993_v39 = vld [vmem:[#allocation16 + $0x36c] ss:$16 sps:$4 sm:$0xff]  }
 0x587   :  { %v4257_v43 = vpop.f32.mrf.mxu1  ;;  %5174 = vmatprep.subr.bf16.mxu0 %v8948_v37  ;;  %v8988_v37 = vld [vmem:[#allocation16 + $0x388] ss:$16 sps:$4 sm:$0xff]   ;;  %v9030_v38 = vld [vmem:[#allocation18 + $0x310] ss:$28 sps:$4 sm:$0xff]  }
 0x588   :  { %v4264_v45 = vmul.f32 0.2, %v4256_v41  ;;  %v4258_v47 = vadd.f32 %v4257_v43, %v4217_v40  ;;  %v9035_v40 = vld [vmem:[#allocation18 + $0x2dc] ss:$28 sps:$4 sm:$0xff]  }
 0x589   :  { %v4259_v48 = vpop.f32.mrf.mxu1  ;;  %v8996_v43 = vld [vmem:[#allocation16 + $0x34c] ss:$16 sps:$4 sm:$0xff]  }
 0x58a   :  { %v4265_v49 = vmul.f32 0.2, %v4258_v47  ;;  %5175 = vmatpush2.bf16.msra.mxu0 %v8946_v42  ;;  %v4268_v50 = vmax.f32 %v4256_v41, %v4264_v45  ;;  %v8991_v41 = vld [vmem:[#allocation16 + $0x368] ss:$16 sps:$4 sm:$0xff]   ;;  %v8999_v48 = vld [vmem:[#allocation16 + $0x32c] ss:$16 sps:$4 sm:$0xff]  }
 0x58b   :  { %v4260_v52 = vpop.f32.mrf.mxu1  ;;  %5176 = vmatprep.subr.bf16.mxu0 %v8954_v44  ;;  %v9033_v42 = vld [vmem:[#allocation18 + $0x2d8] ss:$28 sps:$4 sm:$0xff]   ;;  %v9038_v44 = vld [vmem:[#allocation18 + $0x2a4] ss:$28 sps:$4 sm:$0xff]  }
 0x58c   :  { %v4269_v53 = vmax.f32 %v4258_v47, %v4265_v49  ;;  %v9847_v56 = vpack.c.bf16 %v4268_v50, %v4268_v50  ;;  %v8994_v45 = vld [vmem:[#allocation16 + $0x348] ss:$16 sps:$4 sm:$0xff]   ;;  %v9036_v47 = vld [vmem:[#allocation18 + $0x2a0] ss:$28 sps:$4 sm:$0xff]  }
 0x58d   :  { %v9041_v49 = vld [vmem:[#allocation18 + $0x26c] ss:$28 sps:$4 sm:$0xff]  }
 0x58e   :  { %v4402_v51 = vpack.c.bf16 %v4269_v53, %v4269_v53  ;;  %5177 = vmatpush2.bf16.msra.mxu0 %v8952_v46  ;;  %v8997_v46 = vld [vmem:[#allocation16 + $0x328] ss:$16 sps:$4 sm:$0xff]   ;;  %v9002_v52 = vld [vmem:[#allocation16 + $0x30c] ss:$16 sps:$4 sm:$0xff]   ;;  %v9044_v53 = vld [vmem:[#allocation18 + $0x234] ss:$28 sps:$4 sm:$0xff]  }
 0x58f   :  { %6685 = vmatprep.subr.bf16.mxu0 %v9005_v1  ;;  %v9039_v50 = vld [vmem:[#allocation18 + $0x268] ss:$28 sps:$4 sm:$0xff]   ;;  %v9056_v1 = vld [vmem:[#allocation18 + $0x194] ss:$28 sps:$4 sm:$0xff]  }
 0x590   :  { %5137 = vmatprep.mubr.bf16.mxu1 %v4402_v51 }
 0x591   :  { %5138 = vmatmul.mubr.bf16.vlgmr.msra.gmra.mxu1 %v9847_v56  ;;  %5179 = vmatmul.mubr.bf16.vlgmr.msra.gmra.mxu0 %v9838_v8  ;;  %v9011_v8 = vld [vmem:[#allocation18 + $0x11c] ss:$28 sps:$4 sm:$0xff]  }
 0x592   :  { %5188 = vmatpush1.bf16.msra.mxu1 %v8955_v55  ;;  %5219 = vmatprep.mubr.bf16.mxu1 %v4402_v51  ;;  %v9000_v51 = vld [vmem:[#allocation16 + $0x308] ss:$16 sps:$4 sm:$0xff]   ;;  %v9042_v55 = vld [vmem:[#allocation18 + $0x230] ss:$28 sps:$4 sm:$0xff]  }
 0x593   :  { %5189 = vmatprep.subr.bf16.mxu1 %v8960_v57  ;;  %6686 = vmatpush1.bf16.msra.mxu0 %v9003_v61  ;;  %v9047_v57 = vld [vmem:[#allocation18 + $0x1fc] ss:$28 sps:$4 sm:$0xff]   ;;  %v9053_v61 = vld [vmem:[#allocation18 + $0x50c] ss:$28 sps:$4 sm:$0xff]  }
 0x594   :  { %6687 = vmatprep.subr.bf16.mxu0 %v9008_v3  ;;  %v9057_v3 = vld [vmem:[#allocation18 + $0x4d0] ss:$28 sps:$4 sm:$0xff]  }
 0x596   :  { %5190 = vmatpush1.bf16.msra.mxu1 %v8958_v54  ;;  %v9045_v54 = vld [vmem:[#allocation18 + $0x1f8] ss:$28 sps:$4 sm:$0xff]  }
 0x597   :  { %5191 = vmatprep.subr.bf16.mxu1 %v8963_v60  ;;  %6688 = vmatpush1.bf16.msra.mxu0 %v9006_v5  ;;  %v9050_v60 = vld [vmem:[#allocation18 + $0x1c4] ss:$28 sps:$4 sm:$0xff]   ;;  %v9063_v5 = vld [vmem:[#allocation18 + $0x498] ss:$28 sps:$4 sm:$0xff]  }
 0x598   :  { %6689 = vmatprep.subr.bf16.mxu0 %v9011_v8  ;;  %v9071_v8 = vld [vmem:[#allocation18 + $0x464] ss:$28 sps:$4 sm:$0xff]  }
 0x59a   :  { %5192 = vmatpush1.bf16.msra.mxu1 %v8961_v62  ;;  %v9048_v62 = vld [vmem:[#allocation18 + $0x1c0] ss:$28 sps:$4 sm:$0xff]  }
 0x59b   :  { %5193 = vmatprep.subr.bf16.mxu1 %v8966_v63  ;;  %6690 = vmatpush1.bf16.msra.mxu0 %v9009_v9  ;;  %v9051_v63 = vld [vmem:[#allocation18 + $0x508] ss:$28 sps:$4 sm:$0xff]  }
 0x59c   :  { %6691 = vmatprep.subr.bf16.mxu0 %v9014_v59  ;;  %v9077_v9 = vld [vmem:[#allocation18 + $0x42c] ss:$28 sps:$4 sm:$0xff]   ;;  %v9083_v59 = vld [vmem:[#allocation18 + $0x3f4] ss:$28 sps:$4 sm:$0xff]  }
 0x59e   :  { %5194 = vmatpush1.bf16.msra.mxu1 %v8964_v0  ;;  %v9059_v0 = vld [vmem:[#allocation18 + $0x4d4] ss:$28 sps:$4 sm:$0xff]  }
 0x59f   :  { %5195 = vmatprep.subr.bf16.mxu1 %v8969_v7  ;;  %6692 = vmatpush1.bf16.msra.mxu0 %v9012_v2  ;;  %v9069_v7 = vld [vmem:[#allocation18 + $0x460] ss:$28 sps:$4 sm:$0xff]  }
 0x5a0   :  { %6693 = vmatprep.subr.bf16.mxu0 %v9017_v12  ;;  %v9089_v2 = vld [vmem:[#allocation18 + $0x3bc] ss:$28 sps:$4 sm:$0xff]   ;;  %v9095_v12 = vld [vmem:[#allocation18 + $0x384] ss:$28 sps:$4 sm:$0xff]  }
 0x5a2   :  { %5196 = vmatpush1.bf16.msra.mxu1 %v8967_v6  ;;  %v9075_v6 = vld [vmem:[#allocation18 + $0x428] ss:$28 sps:$4 sm:$0xff]  }
 0x5a3   :  { %5197 = vmatprep.subr.bf16.mxu1 %v8972_v4  ;;  %6694 = vmatpush1.bf16.msra.mxu0 %v9015_v14  ;;  %v9081_v4 = vld [vmem:[#allocation18 + $0x3f0] ss:$28 sps:$4 sm:$0xff]  }
 0x5a4   :  { %6695 = vmatprep.subr.bf16.mxu0 %v9020_v17  ;;  %v9101_v14 = vld [vmem:[#allocation18 + $0x6cc] ss:$28 sps:$4 sm:$0xff]   ;;  %v9107_v17 = vld [vmem:[#allocation18 + $0x694] ss:$28 sps:$4 sm:$0xff]  }
 0x5a6   :  { %5198 = vmatpush1.bf16.msra.mxu1 %v8970_v10  ;;  %v9087_v10 = vld [vmem:[#allocation18 + $0x3b8] ss:$28 sps:$4 sm:$0xff]  }
 0x5a7   :  { %5199 = vmatprep.subr.bf16.mxu1 %v8975_v11  ;;  %6696 = vmatpush1.bf16.msra.mxu0 %v9018_v58  ;;  %v9093_v11 = vld [vmem:[#allocation18 + $0x380] ss:$28 sps:$4 sm:$0xff]  }
 0x5a8   :  { %6697 = vmatprep.subr.bf16.mxu0 %v9023_v20  ;;  %v9113_v58 = vld [vmem:[#allocation18 + $0x65c] ss:$28 sps:$4 sm:$0xff]   ;;  %v9119_v20 = vld [vmem:[#allocation18 + $0x624] ss:$28 sps:$4 sm:$0xff]  }
 0x5aa   :  { %5200 = vmatpush1.bf16.msra.mxu1 %v8973_v13  ;;  %v9099_v13 = vld [vmem:[#allocation18 + $0x6c8] ss:$28 sps:$4 sm:$0xff]  }
 0x5ab   :  { %5201 = vmatprep.subr.bf16.mxu1 %v8978_v16  ;;  %6698 = vmatpush1.bf16.msra.mxu0 %v9021_v23  ;;  %v9105_v16 = vld [vmem:[#allocation18 + $0x690] ss:$28 sps:$4 sm:$0xff]  }
 0x5ac   :  { %6699 = vmatprep.subr.bf16.mxu0 %v9026_v30  ;;  %v9125_v23 = vld [vmem:[#allocation18 + $0x5ec] ss:$28 sps:$4 sm:$0xff]   ;;  %v9131_v30 = vld [vmem:[#allocation18 + $0x5b4] ss:$28 sps:$4 sm:$0xff]  }
 0x5ae   :  { %5202 = vmatpush1.bf16.msra.mxu1 %v8976_v18  ;;  %v9111_v18 = vld [vmem:[#allocation18 + $0x658] ss:$28 sps:$4 sm:$0xff]  }
 0x5af   :  { %5203 = vmatprep.subr.bf16.mxu1 %v8981_v19  ;;  %6700 = vmatpush1.bf16.msra.mxu0 %v9024_v15  ;;  %v9117_v19 = vld [vmem:[#allocation18 + $0x620] ss:$28 sps:$4 sm:$0xff]  }
 0x5b0   :  { %6701 = vmatprep.subr.bf16.mxu0 %v9029_v28  ;;  %v9137_v15 = vld [vmem:[#allocation18 + $0x57c] ss:$28 sps:$4 sm:$0xff]  }
 0x5b1   :  { %v9135_v28 = vld [vmem:[#allocation18 + $0x578] ss:$28 sps:$4 sm:$0xff]  }
 0x5b2   :  { %5204 = vmatpush2.bf16.msra.mxu1 %v8979_v21  ;;  %v9123_v21 = vld [vmem:[#allocation18 + $0x5e8] ss:$28 sps:$4 sm:$0xff]  }
 0x5b3   :  { %5205 = vmatprep.subr.bf16.mxu1 %v8984_v29  ;;  %6702 = vmatpush2.bf16.msra.mxu0 %v9027_v34  ;;  %v9129_v29 = vld [vmem:[#allocation18 + $0x5b0] ss:$28 sps:$4 sm:$0xff]   ;;  %v9143_v34 = vld [vmem:[#allocation18 + $0x544] ss:$28 sps:$4 sm:$0xff]  }
 0x5b4   :  { %6703 = vmatprep.subr.bf16.mxu0 %v9032_v36  ;;  %v9141_v36 = vld [vmem:[#allocation18 + $0x540] ss:$28 sps:$4 sm:$0xff]  }
 0x5b6   :  { %5206 = vmatpush2.bf16.msra.mxu1 %v8982_v31 }
 0x5b7   :  { %5207 = vmatprep.subr.bf16.mxu1 %v8987_v32  ;;  %6704 = vmatpush2.bf16.msra.mxu0 %v9030_v38  ;;  %v9855_v38 = vld [vmem:[%s9947_s12] sm:$0xf] }
 0x5b8   :  { %6705 = vmatprep.subr.bf16.mxu0 %v9035_v40  ;;  %v4411_v40 = vrot.slane %v9855_v38, %v9739_v26 }
 0x5ba   :  { %5208 = vmatpush2.bf16.msra.mxu1 %v8985_v33 }
 0x5bb   :  { %5209 = vmatprep.subr.bf16.mxu1 %v8990_v35  ;;  %6706 = vmatpush2.bf16.msra.mxu0 %v9033_v42 }
 0x5bc   :  { %6707 = vmatprep.subr.bf16.mxu0 %v9038_v44 }
 0x5be   :  { %5210 = vmatpush2.bf16.msra.mxu1 %v8988_v37  ;;  %v9149_v37 = vld [vmem:[#allocation18 + $0x514] ss:$28 sps:$4 sm:$0xff]  }
 0x5bf   :  { %5211 = vmatprep.subr.bf16.mxu1 %v8993_v39  ;;  %6708 = vmatpush2.bf16.msra.mxu0 %v9036_v47  ;;  %v4407_v39 = vrot.slane %v9855_v38, %v9733_v24 }
 0x5c0   :  { %6709 = vmatprep.subr.bf16.mxu0 %v9041_v49 }
 0x5c2   :  { %5212 = vmatpush2.bf16.msra.mxu1 %v8991_v41 }
 0x5c3   :  { %5213 = vmatprep.subr.bf16.mxu1 %v8996_v43  ;;  %6710 = vmatpush2.bf16.msra.mxu0 %v9039_v50 }
 0x5c4   :  { %6711 = vmatprep.subr.bf16.mxu0 %v9044_v53 }
 0x5c6   :  { %5214 = vmatpush2.bf16.msra.mxu1 %v8994_v45 }
 0x5c7   :  { %5215 = vmatprep.subr.bf16.mxu1 %v8999_v48  ;;  %6712 = vmatpush2.bf16.msra.mxu0 %v9042_v55 }
 0x5c8   :  { %6713 = vmatprep.subr.bf16.mxu0 %v9047_v57 }
 0x5ca   :  { %5216 = vmatpush2.bf16.msra.mxu1 %v8997_v46 }
 0x5cb   :  { %5217 = vmatprep.subr.bf16.mxu1 %v9002_v52  ;;  %6714 = vmatpush2.bf16.msra.mxu0 %v9045_v54 }
 0x5cc   :  { %6715 = vmatprep.subr.bf16.mxu0 %v9050_v60 }
 0x5ce   :  { %5218 = vmatpush2.bf16.msra.mxu1 %v9000_v51 }
 0x5cf   :  { %6716 = vmatpush2.bf16.msra.mxu0 %v9048_v62  ;;  %6726 = vmatprep.subr.bf16.mxu1 %v9053_v61  ;;  %v9054_v62 = vld [vmem:[#allocation18 + $0x190] ss:$28 sps:$4 sm:$0xff]   ;;  %v9062_v61 = vld [vmem:[#allocation18 + $0x15c] ss:$28 sps:$4 sm:$0xff]  }
 0x5d0   :  { %6767 = vmatprep.subr.bf16.mxu0 %v9056_v1  ;;  %v9060_v1 = vld [vmem:[#allocation18 + $0x158] ss:$28 sps:$4 sm:$0xff]  }
 0x5d1   :  { %5220 = vmatmul.mubr.bf16.vlgmr.msra.gmra.mxu1 %v9847_v56  ;;  %v9065_v56 = vld [vmem:[#allocation18 + $0x49c] ss:$28 sps:$4 sm:$0xff]  }
 0x5d2   :  { %6727 = vmatpush1.bf16.msra.mxu1 %v9051_v63 }
 0x5d3   :  { %6728 = vmatprep.subr.bf16.mxu1 %v9059_v0  ;;  %v9066_v0 = vld [vmem:[#allocation18 + $0x120] ss:$28 sps:$4 sm:$0xff]  }
 0x5d6   :  { %6729 = vmatpush1.bf16.msra.mxu1 %v9057_v3  ;;  %v9068_v3 = vld [vmem:[#allocation18 + $0x124] ss:$28 sps:$4 sm:$0xff]  }
 0x5d7   :  { %6730 = vmatprep.subr.bf16.mxu1 %v9065_v56  ;;  %v9072_v56 = vld [vmem:[#allocation18 + $0xe8] ss:$28 sps:$4 sm:$0xff]  }
 0x5da   :  { %6731 = vmatpush1.bf16.msra.mxu1 %v9063_v5  ;;  %v9074_v5 = vld [vmem:[#allocation18 + $0xec] ss:$28 sps:$4 sm:$0xff]  }
 0x5db   :  { %6732 = vmatprep.subr.bf16.mxu1 %v9071_v8  ;;  %v9078_v8 = vld [vmem:[#allocation18 + $0xb0] ss:$28 sps:$4 sm:$0xff]  }
 0x5de   :  { %6733 = vmatpush1.bf16.msra.mxu1 %v9069_v7  ;;  %v9080_v7 = vld [vmem:[#allocation18 + $0xb4] ss:$28 sps:$4 sm:$0xff]  }
 0x5df   :  { %6734 = vmatprep.subr.bf16.mxu1 %v9077_v9  ;;  %v9084_v9 = vld [vmem:[#allocation18 + $0x78] ss:$28 sps:$4 sm:$0xff]  }
 0x5e2   :  { %6735 = vmatpush1.bf16.msra.mxu1 %v9075_v6  ;;  %v9086_v6 = vld [vmem:[#allocation18 + $0x7c] ss:$28 sps:$4 sm:$0xff]  }
 0x5e3   :  { %6736 = vmatprep.subr.bf16.mxu1 %v9083_v59  ;;  %v9090_v59 = vld [vmem:[#allocation18 + $0x40] ss:$28 sps:$4 sm:$0xff]  }
 0x5e6   :  { %6737 = vmatpush1.bf16.msra.mxu1 %v9081_v4  ;;  %v9092_v4 = vld [vmem:[#allocation18 + $0x44] ss:$28 sps:$4 sm:$0xff]  }
 0x5e7   :  { %6738 = vmatprep.subr.bf16.mxu1 %v9089_v2  ;;  %v9096_v2 = vld [vmem:[#allocation18 + $0x8] ss:$28 sps:$4 sm:$0xff]  }
 0x5ea   :  { %6739 = vmatpush1.bf16.msra.mxu1 %v9087_v10  ;;  %v9098_v10 = vld [vmem:[#allocation18 + $0xc] ss:$28 sps:$4 sm:$0xff]  }
 0x5eb   :  { %6740 = vmatprep.subr.bf16.mxu1 %v9095_v12  ;;  %v9102_v12 = vld [vmem:[#allocation18 + $0x350] ss:$28 sps:$4 sm:$0xff]  }
 0x5ee   :  { %6741 = vmatpush1.bf16.msra.mxu1 %v9093_v11  ;;  %v9104_v11 = vld [vmem:[#allocation18 + $0x354] ss:$28 sps:$4 sm:$0xff]  }
 0x5ef   :  { %6742 = vmatprep.subr.bf16.mxu1 %v9101_v14  ;;  %v9108_v14 = vld [vmem:[#allocation18 + $0x318] ss:$28 sps:$4 sm:$0xff]  }
 0x5f2   :  { %6743 = vmatpush2.bf16.msra.mxu1 %v9099_v13  ;;  %v9110_v13 = vld [vmem:[#allocation18 + $0x31c] ss:$28 sps:$4 sm:$0xff]  }
 0x5f3   :  { %6744 = vmatprep.subr.bf16.mxu1 %v9107_v17  ;;  %v9114_v17 = vld [vmem:[#allocation18 + $0x2e0] ss:$28 sps:$4 sm:$0xff]  }
 0x5f6   :  { %6745 = vmatpush2.bf16.msra.mxu1 %v9105_v16  ;;  %v9116_v16 = vld [vmem:[#allocation18 + $0x2e4] ss:$28 sps:$4 sm:$0xff]  }
 0x5f7   :  { %6746 = vmatprep.subr.bf16.mxu1 %v9113_v58  ;;  %v9120_v58 = vld [vmem:[#allocation18 + $0x2a8] ss:$28 sps:$4 sm:$0xff]  }
 0x5fa   :  { %6747 = vmatpush2.bf16.msra.mxu1 %v9111_v18  ;;  %v9122_v18 = vld [vmem:[#allocation18 + $0x2ac] ss:$28 sps:$4 sm:$0xff]  }
 0x5fb   :  { %6748 = vmatprep.subr.bf16.mxu1 %v9119_v20  ;;  %v9126_v20 = vld [vmem:[#allocation18 + $0x270] ss:$28 sps:$4 sm:$0xff]  }
 0x5fe   :  { %6749 = vmatpush2.bf16.msra.mxu1 %v9117_v19  ;;  %v9128_v19 = vld [vmem:[#allocation18 + $0x274] ss:$28 sps:$4 sm:$0xff]  }
 0x5ff   :  { %6750 = vmatprep.subr.bf16.mxu1 %v9125_v23  ;;  %v4415_v23 = vrot.slane %v9855_v38, %v9736_v25 }
 0x602   :  { %6751 = vmatpush2.bf16.msra.mxu1 %v9123_v21  ;;  %v9134_v21 = vld [vmem:[#allocation18 + $0x23c] ss:$28 sps:$4 sm:$0xff]  }
 0x603   :  { %6752 = vmatprep.subr.bf16.mxu1 %v9131_v30  ;;  %v9132_v30 = vld [vmem:[#allocation18 + $0x238] ss:$28 sps:$4 sm:$0xff]  }
 0x606   :  { %6753 = vmatpush2.bf16.msra.mxu1 %v9129_v29  ;;  %v4419_v29 = vrot.slane %v9855_v38, %v9742_v27  ;;  %v9144_v38 = vld [vmem:[#allocation18 + $0x1c8] ss:$28 sps:$4 sm:$0xff]  }
 0x607   :  { %6754 = vmatprep.subr.bf16.mxu1 %v9137_v15 }
 0x60a   :  { %6755 = vmatpush2.bf16.msra.mxu1 %v9135_v28 }
 0x60b   :  { %6756 = vmatprep.subr.bf16.mxu1 %v9143_v34  ;;  %v9138_v34 = vld [vmem:[#allocation18 + $0x200] ss:$28 sps:$4 sm:$0xff]  }
 0x60e   :  { %6757 = vmatpush2.bf16.msra.mxu1 %v9141_v36  ;;  %v9146_v36 = vld [vmem:[#allocation18 + $0x1cc] ss:$28 sps:$4 sm:$0xff]  }
 0x60f   :  { %6808 = vmatprep.subr.bf16.mxu1 %v9149_v37 }
 0x611   :  { %v5098_v31 = vpop.f32.mrf.mxu0 }
 0x612   :  { %v5099_v41 = vadd.f32 %v5098_v31, %v4407_v39  ;;  %v9140_v31 = vld [vmem:[#allocation18 + $0x204] ss:$28 sps:$4 sm:$0xff]  }
 0x613   :  { %v5100_v32 = vpop.f32.mrf.mxu0 }
 0x614   :  { %v5101_v44 = vadd.f32 %v5100_v32, %v4411_v40 }
 0x615   :  { %v5102_v33 = vpop.f32.mrf.mxu0 }
 0x617   :  { %v5103_v35 = vpop.f32.mrf.mxu0 }
 0x651   :  { %v5139_v42 = vpop.f32.mrf.mxu1  ;;  %v9861_v43 = vpop.f32.mrf.mxu0 }
 0x652   :  { %v5140_v45 = vadd.f32 %v5139_v42, %v5099_v41  ;;  %v5181_v15 = vadd.f32 %v9861_v43, %v4415_v23  ;;  %v9206_v23 = vld [vmem:[#allocation18 + $0x324] ss:$28 sps:$4 sm:$0xff]  }
 0x653   :  { %v5141_v47 = vpop.f32.mrf.mxu1  ;;  %v9863_v48 = vpop.f32.mrf.mxu0 }
 0x654   :  { %v5228_v49 = vmul.f32 0.2, %v5140_v45  ;;  %v5142_v46 = vadd.f32 %v5141_v47, %v5101_v44  ;;  %v5183_v28 = vadd.f32 %v9863_v48, %v4419_v29  ;;  %v9147_v48 = vld [vmem:[#allocation18 + $0x510] ss:$28 sps:$4 sm:$0xff]   ;;  %v9201_v29 = vld [vmem:[#allocation18 + $0x698] ss:$28 sps:$4 sm:$0xff]  }
 0x655   :  { %v5143_v50 = vpop.f32.mrf.mxu1  ;;  %v5184_v52 = vpop.f32.mrf.mxu0 }
 0x656   :  { %v5229_v53 = vmul.f32 0.2, %v5142_v46  ;;  %v5232_v51 = vmax.f32 %v5140_v45, %v5228_v49  ;;  %v9152_v45 = vld [vmem:[#allocation18 + $0x19c] ss:$28 sps:$4 sm:$0xff]   ;;  %v9158_v52 = vld [vmem:[#allocation18 + $0x164] ss:$28 sps:$4 sm:$0xff]  }
 0x657   :  { %v5144_v55 = vpop.f32.mrf.mxu1  ;;  %v5185_v57 = vpop.f32.mrf.mxu0  ;;  %v9155_v50 = vld [vmem:[#allocation18 + $0x4dc] ss:$28 sps:$4 sm:$0xff]  }
 0x658   :  { %v5233_v54 = vmax.f32 %v5142_v46, %v5229_v53  ;;  %v9867_v63 = vpack.c.bf16 %v5232_v51, %v5232_v51  ;;  %v9150_v46 = vld [vmem:[#allocation18 + $0x198] ss:$28 sps:$4 sm:$0xff]   ;;  %v9156_v51 = vld [vmem:[#allocation18 + $0x160] ss:$28 sps:$4 sm:$0xff]   ;;  %v9164_v57 = vld [vmem:[#allocation18 + $0x12c] ss:$28 sps:$4 sm:$0xff]  }
 0x659   :  { %v9153_v53 = vld [vmem:[#allocation18 + $0x4d8] ss:$28 sps:$4 sm:$0xff]   ;;  %v9161_v55 = vld [vmem:[#allocation18 + $0x4a4] ss:$28 sps:$4 sm:$0xff]  }
 0x65a   :  { %v9865_v60 = vpack.c.bf16 %v5233_v54, %v5233_v54  ;;  %v9159_v54 = vld [vmem:[#allocation18 + $0x4a0] ss:$28 sps:$4 sm:$0xff]  }
 0x65c   :  { %6717 = vmatprep.mubr.bf16.mxu0 %v9865_v60 }
 0x65d   :  { %6718 = vmatmul.mubr.bf16.vlgmr.msra.gmra.mxu0 %v9867_v63 }
 0x65e   :  { %6768 = vmatpush1.bf16.msra.mxu0 %v9054_v62  ;;  %6799 = vmatprep.mubr.bf16.mxu0 %v9865_v60  ;;  %v9162_v62 = vld [vmem:[#allocation18 + $0x128] ss:$28 sps:$4 sm:$0xff]  }
 0x65f   :  { %6769 = vmatprep.subr.bf16.mxu0 %v9062_v61  ;;  %v9167_v61 = vld [vmem:[#allocation18 + $0x46c] ss:$28 sps:$4 sm:$0xff]  }
 0x662   :  { %6770 = vmatpush1.bf16.msra.mxu0 %v9060_v1  ;;  %v9170_v1 = vld [vmem:[#allocation18 + $0xf4] ss:$28 sps:$4 sm:$0xff]  }
 0x663   :  { %6771 = vmatprep.subr.bf16.mxu0 %v9068_v3  ;;  %v9165_v3 = vld [vmem:[#allocation18 + $0x468] ss:$28 sps:$4 sm:$0xff]  }
 0x666   :  { %6772 = vmatpush1.bf16.msra.mxu0 %v9066_v0  ;;  %v9168_v0 = vld [vmem:[#allocation18 + $0xf0] ss:$28 sps:$4 sm:$0xff]  }
 0x667   :  { %6773 = vmatprep.subr.bf16.mxu0 %v9074_v5  ;;  %v9173_v5 = vld [vmem:[#allocation18 + $0x434] ss:$28 sps:$4 sm:$0xff]  }
 0x66a   :  { %6774 = vmatpush1.bf16.msra.mxu0 %v9072_v56  ;;  %v9176_v56 = vld [vmem:[#allocation18 + $0xbc] ss:$28 sps:$4 sm:$0xff]  }
 0x66b   :  { %6775 = vmatprep.subr.bf16.mxu0 %v9080_v7  ;;  %v9171_v7 = vld [vmem:[#allocation18 + $0x430] ss:$28 sps:$4 sm:$0xff]  }
 0x66e   :  { %6776 = vmatpush1.bf16.msra.mxu0 %v9078_v8  ;;  %v9174_v8 = vld [vmem:[#allocation18 + $0xb8] ss:$28 sps:$4 sm:$0xff]  }
 0x66f   :  { %6777 = vmatprep.subr.bf16.mxu0 %v9086_v6  ;;  %v9179_v6 = vld [vmem:[#allocation18 + $0x3fc] ss:$28 sps:$4 sm:$0xff]  }
 0x672   :  { %6778 = vmatpush1.bf16.msra.mxu0 %v9084_v9  ;;  %v9182_v9 = vld [vmem:[#allocation18 + $0x84] ss:$28 sps:$4 sm:$0xff]  }
 0x673   :  { %6779 = vmatprep.subr.bf16.mxu0 %v9092_v4  ;;  %v9177_v4 = vld [vmem:[#allocation18 + $0x3f8] ss:$28 sps:$4 sm:$0xff]  }
 0x676   :  { %6780 = vmatpush1.bf16.msra.mxu0 %v9090_v59  ;;  %v9180_v59 = vld [vmem:[#allocation18 + $0x80] ss:$28 sps:$4 sm:$0xff]  }
 0x677   :  { %6781 = vmatprep.subr.bf16.mxu0 %v9098_v10  ;;  %v9185_v10 = vld [vmem:[#allocation18 + $0x3c4] ss:$28 sps:$4 sm:$0xff]  }
 0x67a   :  { %6782 = vmatpush1.bf16.msra.mxu0 %v9096_v2  ;;  %v9188_v2 = vld [vmem:[#allocation18 + $0x4c] ss:$28 sps:$4 sm:$0xff]  }
 0x67b   :  { %6783 = vmatprep.subr.bf16.mxu0 %v9104_v11  ;;  %v9183_v11 = vld [vmem:[#allocation18 + $0x3c0] ss:$28 sps:$4 sm:$0xff]  }
 0x67e   :  { %6784 = vmatpush2.bf16.msra.mxu0 %v9102_v12  ;;  %v9186_v12 = vld [vmem:[#allocation18 + $0x48] ss:$28 sps:$4 sm:$0xff]  }
 0x67f   :  { %6785 = vmatprep.subr.bf16.mxu0 %v9110_v13  ;;  %v9191_v13 = vld [vmem:[#allocation18 + $0x38c] ss:$28 sps:$4 sm:$0xff]  }
 0x682   :  { %6786 = vmatpush2.bf16.msra.mxu0 %v9108_v14  ;;  %v9194_v14 = vld [vmem:[#allocation18 + $0x14] ss:$28 sps:$4 sm:$0xff]  }
 0x683   :  { %6787 = vmatprep.subr.bf16.mxu0 %v9116_v16  ;;  %v9189_v16 = vld [vmem:[#allocation18 + $0x388] ss:$28 sps:$4 sm:$0xff]  }
 0x686   :  { %6788 = vmatpush2.bf16.msra.mxu0 %v9114_v17  ;;  %v9192_v17 = vld [vmem:[#allocation18 + $0x10] ss:$28 sps:$4 sm:$0xff]  }
 0x687   :  { %6789 = vmatprep.subr.bf16.mxu0 %v9122_v18  ;;  %v9197_v18 = vld [vmem:[#allocation18 + $0x6d4] ss:$28 sps:$4 sm:$0xff]  }
 0x68a   :  { %6790 = vmatpush2.bf16.msra.mxu0 %v9120_v58  ;;  %v9200_v58 = vld [vmem:[#allocation18 + $0x35c] ss:$28 sps:$4 sm:$0xff]  }
 0x68b   :  { %6791 = vmatprep.subr.bf16.mxu0 %v9128_v19  ;;  %v9195_v19 = vld [vmem:[#allocation18 + $0x6d0] ss:$28 sps:$4 sm:$0xff]  }
 0x68e   :  { %6792 = vmatpush2.bf16.msra.mxu0 %v9126_v20  ;;  %v9198_v20 = vld [vmem:[#allocation18 + $0x358] ss:$28 sps:$4 sm:$0xff]  }
 0x68f   :  { %6793 = vmatprep.subr.bf16.mxu0 %v9134_v21  ;;  %v9203_v21 = vld [vmem:[#allocation18 + $0x69c] ss:$28 sps:$4 sm:$0xff]  }
 0x691   :  { %v5221_v32 = vpop.f32.mrf.mxu1 }
 0x692   :  { %v5222_v33 = vadd.f32 %v5221_v32, %v5181_v15  ;;  %6794 = vmatpush2.bf16.msra.mxu0 %v9132_v30  ;;  %v9204_v30 = vld [vmem:[#allocation18 + $0x320] ss:$28 sps:$4 sm:$0xff]   ;;  %v9212_v15 = vld [vmem:[#allocation18 + $0x2ec] ss:$28 sps:$4 sm:$0xff]  }
 0x693   :  { %v5223_v35 = vpop.f32.mrf.mxu1  ;;  %6795 = vmatprep.subr.bf16.mxu0 %v9140_v31  ;;  %v9209_v31 = vld [vmem:[#allocation18 + $0x664] ss:$28 sps:$4 sm:$0xff]  }
 0x694   :  { %v5230_v37 = vmul.f32 0.2, %v5222_v33  ;;  %v5224_v39 = vadd.f32 %v5223_v35, %v5183_v28  ;;  %v9207_v32 = vld [vmem:[#allocation18 + $0x660] ss:$28 sps:$4 sm:$0xff]   ;;  %v9210_v28 = vld [vmem:[#allocation18 + $0x2e8] ss:$28 sps:$4 sm:$0xff]  }
 0x695   :  { %v5225_v40 = vpop.f32.mrf.mxu1  ;;  %v9213_v35 = vld [vmem:[#allocation18 + $0x628] ss:$28 sps:$4 sm:$0xff]  }
 0x696   :  { %v5231_v41 = vmul.f32 0.2, %v5224_v39  ;;  %6796 = vmatpush2.bf16.msra.mxu0 %v9138_v34  ;;  %v5234_v42 = vmax.f32 %v5222_v33, %v5230_v37  ;;  %v9215_v33 = vld [vmem:[#allocation18 + $0x62c] ss:$28 sps:$4 sm:$0xff]   ;;  %v9218_v34 = vld [vmem:[#allocation18 + $0x2b4] ss:$28 sps:$4 sm:$0xff]  }
 0x697   :  { %v5226_v44 = vpop.f32.mrf.mxu1  ;;  %6797 = vmatprep.subr.bf16.mxu0 %v9146_v36  ;;  %v9216_v36 = vld [vmem:[#allocation18 + $0x2b0] ss:$28 sps:$4 sm:$0xff]  }
 0x698   :  { %v5235_v43 = vmax.f32 %v5224_v39, %v5231_v41  ;;  %v9880_v49 = vpack.c.bf16 %v5234_v42, %v5234_v42  ;;  %v9221_v37 = vld [vmem:[#allocation18 + $0x5f4] ss:$28 sps:$4 sm:$0xff]   ;;  %v9224_v39 = vld [vmem:[#allocation18 + $0x27c] ss:$28 sps:$4 sm:$0xff]   ;;  %v9230_v42 = vld [vmem:[#allocation18 + $0x244] ss:$28 sps:$4 sm:$0xff]  }
 0x699   :  { %v9219_v40 = vld [vmem:[#allocation18 + $0x5f0] ss:$28 sps:$4 sm:$0xff]   ;;  %v9222_v41 = vld [vmem:[#allocation18 + $0x278] ss:$28 sps:$4 sm:$0xff]  }
 0x69a   :  { %v9878_v47 = vpack.c.bf16 %v5235_v43, %v5235_v43  ;;  %6798 = vmatpush2.bf16.msra.mxu0 %v9144_v38  ;;  %v9227_v38 = vld [vmem:[#allocation18 + $0x5bc] ss:$28 sps:$4 sm:$0xff]   ;;  %v9233_v43 = vld [vmem:[#allocation18 + $0x584] ss:$28 sps:$4 sm:$0xff]  }
 0x69b   :  { %6849 = vmatprep.subr.bf16.mxu0 %v9152_v45  ;;  %v9225_v44 = vld [vmem:[#allocation18 + $0x5b8] ss:$28 sps:$4 sm:$0xff]   ;;  %v9228_v45 = vld [vmem:[#allocation18 + $0x240] ss:$28 sps:$4 sm:$0xff]  }
 0x69c   :  { %6758 = vmatprep.mubr.bf16.mxu1 %v9878_v47 }
 0x69d   :  { %6759 = vmatmul.mubr.bf16.vlgmr.msra.gmra.mxu1 %v9880_v49  ;;  %6800 = vmatmul.mubr.bf16.vlgmr.msra.gmra.mxu0 %v9867_v63 }
 0x69e   :  { %6809 = vmatpush1.bf16.msra.mxu1 %v9147_v48  ;;  %6840 = vmatprep.mubr.bf16.mxu1 %v9878_v47  ;;  %v9236_v48 = vld [vmem:[#allocation18 + $0x20c] ss:$28 sps:$4 sm:$0xff]  }
 0x69f   :  { %6850 = vmatpush1.bf16.msra.mxu0 %v9150_v46  ;;  %6881 = vmatprep.mubr.bf16.mxu0 %v9865_v60  ;;  %v9231_v46 = vld [vmem:[#allocation18 + $0x580] ss:$28 sps:$4 sm:$0xff]  }
 0x6a0   :  { %6810 = vmatprep.subr.bf16.mxu1 %v9155_v50  ;;  %6851 = vmatprep.subr.bf16.mxu0 %v9158_v52  ;;  %v9234_v50 = vld [vmem:[#allocation18 + $0x208] ss:$28 sps:$4 sm:$0xff]  }
 0x6a1   :  { %v9239_v52 = vld [vmem:[#allocation18 + $0x54c] ss:$28 sps:$4 sm:$0xff]  }
 0x6a2   :  { %6811 = vmatpush1.bf16.msra.mxu1 %v9153_v53  ;;  %v9242_v53 = vld [vmem:[#allocation18 + $0x1d4] ss:$28 sps:$4 sm:$0xff]  }
 0x6a3   :  { %6852 = vmatpush1.bf16.msra.mxu0 %v9156_v51  ;;  %6812 = vmatprep.subr.bf16.mxu1 %v9161_v55  ;;  %v9237_v51 = vld [vmem:[#allocation18 + $0x548] ss:$28 sps:$4 sm:$0xff]   ;;  %v9240_v55 = vld [vmem:[#allocation18 + $0x1d0] ss:$28 sps:$4 sm:$0xff]  }
 0x6a4   :  { %6853 = vmatprep.subr.bf16.mxu0 %v9164_v57  ;;  %v9245_v57 = vld [vmem:[#allocation18 + $0x51c] ss:$28 sps:$4 sm:$0xff]  }
 0x6a6   :  { %6813 = vmatpush1.bf16.msra.mxu1 %v9159_v54  ;;  %v9246_v54 = vld [vmem:[#allocation18 + $0x360] ss:$28 sps:$4 sm:$0xff]  }
 0x6a7   :  { %6854 = vmatpush1.bf16.msra.mxu0 %v9162_v62  ;;  %6814 = vmatprep.subr.bf16.mxu1 %v9167_v61  ;;  %v9243_v62 = vld [vmem:[#allocation18 + $0x518] ss:$28 sps:$4 sm:$0xff]   ;;  %v9247_v61 = vld [vmem:[#allocation18 + $0x1a0] ss:$28 sps:$4 sm:$0xff]  }
 0x6a8   :  { %6855 = vmatprep.subr.bf16.mxu0 %v9170_v1  ;;  %v9250_v1 = vld [vmem:[#allocation18 + $0x4e4] ss:$28 sps:$4 sm:$0xff]  }
 0x6aa   :  { %6815 = vmatpush1.bf16.msra.mxu1 %v9165_v3  ;;  %v9251_v3 = vld [vmem:[#allocation18 + $0x328] ss:$28 sps:$4 sm:$0xff]  }
 0x6ab   :  { %6856 = vmatpush1.bf16.msra.mxu0 %v9168_v0  ;;  %6816 = vmatprep.subr.bf16.mxu1 %v9173_v5  ;;  %v9248_v0 = vld [vmem:[#allocation18 + $0x4e0] ss:$28 sps:$4 sm:$0xff]   ;;  %v9252_v5 = vld [vmem:[#allocation18 + $0x168] ss:$28 sps:$4 sm:$0xff]  }
 0x6ac   :  { %6857 = vmatprep.subr.bf16.mxu0 %v9176_v56  ;;  %v9255_v56 = vld [vmem:[#allocation18 + $0x4ac] ss:$28 sps:$4 sm:$0xff]  }
 0x6ae   :  { %6817 = vmatpush1.bf16.msra.mxu1 %v9171_v7  ;;  %v9256_v7 = vld [vmem:[#allocation18 + $0x2f0] ss:$28 sps:$4 sm:$0xff]  }
 0x6af   :  { %6858 = vmatpush1.bf16.msra.mxu0 %v9174_v8  ;;  %6818 = vmatprep.subr.bf16.mxu1 %v9179_v6  ;;  %v9253_v8 = vld [vmem:[#allocation18 + $0x4a8] ss:$28 sps:$4 sm:$0xff]   ;;  %v9257_v6 = vld [vmem:[#allocation18 + $0x130] ss:$28 sps:$4 sm:$0xff]  }
 0x6b0   :  { %6859 = vmatprep.subr.bf16.mxu0 %v9182_v9  ;;  %v9260_v9 = vld [vmem:[#allocation18 + $0x474] ss:$28 sps:$4 sm:$0xff]  }
 0x6b2   :  { %6819 = vmatpush1.bf16.msra.mxu1 %v9177_v4  ;;  %v9261_v4 = vld [vmem:[#allocation18 + $0x2b8] ss:$28 sps:$4 sm:$0xff]  }
 0x6b3   :  { %6860 = vmatpush1.bf16.msra.mxu0 %v9180_v59  ;;  %6820 = vmatprep.subr.bf16.mxu1 %v9185_v10  ;;  %v9258_v59 = vld [vmem:[#allocation18 + $0x470] ss:$28 sps:$4 sm:$0xff]   ;;  %v9262_v10 = vld [vmem:[#allocation18 + $0xf8] ss:$28 sps:$4 sm:$0xff]  }
 0x6b4   :  { %6861 = vmatprep.subr.bf16.mxu0 %v9188_v2  ;;  %v9265_v2 = vld [vmem:[#allocation18 + $0x43c] ss:$28 sps:$4 sm:$0xff]  }
 0x6b6   :  { %6821 = vmatpush1.bf16.msra.mxu1 %v9183_v11  ;;  %v9266_v11 = vld [vmem:[#allocation18 + $0x280] ss:$28 sps:$4 sm:$0xff]  }
 0x6b7   :  { %6862 = vmatpush1.bf16.msra.mxu0 %v9186_v12  ;;  %6822 = vmatprep.subr.bf16.mxu1 %v9191_v13  ;;  %v9267_v12 = vld [vmem:[#allocation18 + $0xc0] ss:$28 sps:$4 sm:$0xff]  }
 0x6b8   :  { %6863 = vmatprep.subr.bf16.mxu0 %v9194_v14  ;;  %v9270_v13 = vld [vmem:[#allocation18 + $0x404] ss:$28 sps:$4 sm:$0xff]  }
 0x6b9   :  { %v9271_v14 = vld [vmem:[#allocation18 + $0x248] ss:$28 sps:$4 sm:$0xff]  }
 0x6ba   :  { %6823 = vmatpush1.bf16.msra.mxu1 %v9189_v16  ;;  %v9268_v16 = vld [vmem:[#allocation18 + $0x400] ss:$28 sps:$4 sm:$0xff]  }
 0x6bb   :  { %6864 = vmatpush1.bf16.msra.mxu0 %v9192_v17  ;;  %6824 = vmatprep.subr.bf16.mxu1 %v9197_v18  ;;  %v9272_v17 = vld [vmem:[#allocation18 + $0x88] ss:$28 sps:$4 sm:$0xff]  }
 0x6bc   :  { %6865 = vmatprep.subr.bf16.mxu0 %v9200_v58  ;;  %v9275_v18 = vld [vmem:[#allocation18 + $0x3cc] ss:$28 sps:$4 sm:$0xff]  }
 0x6bd   :  { %v9276_v58 = vld [vmem:[#allocation18 + $0x210] ss:$28 sps:$4 sm:$0xff]  }
 0x6be   :  { %6825 = vmatpush2.bf16.msra.mxu1 %v9195_v19  ;;  %v9273_v19 = vld [vmem:[#allocation18 + $0x3c8] ss:$28 sps:$4 sm:$0xff]  }
 0x6bf   :  { %6866 = vmatpush2.bf16.msra.mxu0 %v9198_v20  ;;  %6826 = vmatprep.subr.bf16.mxu1 %v9203_v21  ;;  %v9277_v20 = vld [vmem:[#allocation18 + $0x50] ss:$28 sps:$4 sm:$0xff]  }
 0x6c0   :  { %6867 = vmatprep.subr.bf16.mxu0 %v9206_v23  ;;  %v9280_v21 = vld [vmem:[#allocation18 + $0x394] ss:$28 sps:$4 sm:$0xff]  }
 0x6c1   :  { %v9281_v23 = vld [vmem:[#allocation18 + $0x1d8] ss:$28 sps:$4 sm:$0xff]  }
 0x6c2   :  { %6827 = vmatpush2.bf16.msra.mxu1 %v9201_v29  ;;  %v9278_v29 = vld [vmem:[#allocation18 + $0x390] ss:$28 sps:$4 sm:$0xff]  }
 0x6c3   :  { %6868 = vmatpush2.bf16.msra.mxu0 %v9204_v30  ;;  %6828 = vmatprep.subr.bf16.mxu1 %v9209_v31  ;;  %v9282_v30 = vld [vmem:[#allocation18 + $0x18] ss:$28 sps:$4 sm:$0xff]  }
 0x6c4   :  { %6869 = vmatprep.subr.bf16.mxu0 %v9212_v15  ;;  %v9285_v31 = vld [vmem:[#allocation18 + $0x6dc] ss:$28 sps:$4 sm:$0xff]  }
 0x6c5   :  { %v9283_v15 = vld [vmem:[#allocation18 + $0x6d8] ss:$28 sps:$4 sm:$0xff]  }
 0x6c6   :  { %6829 = vmatpush2.bf16.msra.mxu1 %v9207_v32  ;;  %v9288_v32 = vld [vmem:[#allocation18 + $0x6a4] ss:$28 sps:$4 sm:$0xff]  }
 0x6c7   :  { %6870 = vmatpush2.bf16.msra.mxu0 %v9210_v28  ;;  %6830 = vmatprep.subr.bf16.mxu1 %v9215_v33  ;;  %v9286_v28 = vld [vmem:[#allocation18 + $0x6a0] ss:$28 sps:$4 sm:$0xff]   ;;  %v9291_v33 = vld [vmem:[#allocation18 + $0x66c] ss:$28 sps:$4 sm:$0xff]  }
 0x6c8   :  { %6871 = vmatprep.subr.bf16.mxu0 %v9218_v34  ;;  %v9289_v34 = vld [vmem:[#allocation18 + $0x668] ss:$28 sps:$4 sm:$0xff]  }
 0x6ca   :  { %6831 = vmatpush2.bf16.msra.mxu1 %v9213_v35  ;;  %v9294_v35 = vld [vmem:[#allocation18 + $0x634] ss:$28 sps:$4 sm:$0xff]  }
 0x6cb   :  { %6872 = vmatpush2.bf16.msra.mxu0 %v9216_v36  ;;  %6832 = vmatprep.subr.bf16.mxu1 %v9221_v37  ;;  %v9292_v36 = vld [vmem:[#allocation18 + $0x630] ss:$28 sps:$4 sm:$0xff]   ;;  %v9297_v37 = vld [vmem:[#allocation18 + $0x5fc] ss:$28 sps:$4 sm:$0xff]  }
 0x6cc   :  { %6873 = vmatprep.subr.bf16.mxu0 %v9224_v39  ;;  %v9295_v39 = vld [vmem:[#allocation18 + $0x5f8] ss:$28 sps:$4 sm:$0xff]  }
 0x6ce   :  { %6833 = vmatpush2.bf16.msra.mxu1 %v9219_v40  ;;  %v9300_v40 = vld [vmem:[#allocation18 + $0x5c4] ss:$28 sps:$4 sm:$0xff]  }
 0x6cf   :  { %6874 = vmatpush2.bf16.msra.mxu0 %v9222_v41  ;;  %6834 = vmatprep.subr.bf16.mxu1 %v9227_v38  ;;  %v9298_v41 = vld [vmem:[#allocation18 + $0x5c0] ss:$28 sps:$4 sm:$0xff]   ;;  %v9303_v38 = vld [vmem:[#allocation18 + $0x58c] ss:$28 sps:$4 sm:$0xff]  }
 0x6d0   :  { %6875 = vmatprep.subr.bf16.mxu0 %v9230_v42  ;;  %v9306_v42 = vld [vmem:[#allocation18 + $0x554] ss:$28 sps:$4 sm:$0xff]  }
 0x6d2   :  { %6835 = vmatpush2.bf16.msra.mxu1 %v9225_v44  ;;  %v9304_v44 = vld [vmem:[#allocation18 + $0x550] ss:$28 sps:$4 sm:$0xff]  }
 0x6d3   :  { %6876 = vmatpush2.bf16.msra.mxu0 %v9228_v45  ;;  %6836 = vmatprep.subr.bf16.mxu1 %v9233_v43  ;;  %v9307_v45 = vld [vmem:[#allocation18 + $0x6e0] ss:$28 sps:$4 sm:$0xff]  }
 0x6d4   :  { %6877 = vmatprep.subr.bf16.mxu0 %v9236_v48  ;;  %v9308_v43 = vld [vmem:[#allocation18 + $0x520] ss:$28 sps:$4 sm:$0xff]   ;;  %v9309_v48 = vld [vmem:[#allocation18 + $0x6a8] ss:$28 sps:$4 sm:$0xff]  }
 0x6d6   :  { %6837 = vmatpush2.bf16.msra.mxu1 %v9231_v46 }
 0x6d7   :  { %6878 = vmatpush2.bf16.msra.mxu0 %v9234_v50  ;;  %6838 = vmatprep.subr.bf16.mxu1 %v9239_v52  ;;  %v9310_v50 = vld [vmem:[#allocation18 + $0x4e8] ss:$28 sps:$4 sm:$0xff]  }
 0x6d8   :  { %6879 = vmatprep.subr.bf16.mxu0 %v9242_v53  ;;  %v9311_v53 = vld [vmem:[#allocation18 + $0x670] ss:$28 sps:$4 sm:$0xff]  }
 0x6da   :  { %6839 = vmatpush2.bf16.msra.mxu1 %v9237_v51 }
 0x6db   :  { %6880 = vmatpush2.bf16.msra.mxu0 %v9240_v55  ;;  %6890 = vmatprep.subr.bf16.mxu1 %v9245_v57  ;;  %v9312_v55 = vld [vmem:[#allocation18 + $0x4b0] ss:$28 sps:$4 sm:$0xff]  }
 0x6dc   :  { %7959 = vmatprep.subr.bf16.mxu0 %v9246_v54  ;;  %v9313_v54 = vld [vmem:[#allocation18 + $0x638] ss:$28 sps:$4 sm:$0xff]  }
 0x6dd   :  { %6841 = vmatmul.mubr.bf16.vlgmr.msra.gmra.mxu1 %v9880_v49 }
 0x6de   :  { %6882 = vmatmul.mubr.bf16.vlgmr.msra.gmra.mxu0 %v9867_v63  ;;  %6891 = vmatpush1.bf16.msra.mxu1 %v9243_v62  ;;  %v9314_v62 = vld [vmem:[#allocation18 + $0x478] ss:$28 sps:$4 sm:$0xff]  }
 0x6df   :  { %6922 = vmatprep.mubr.bf16.mxu1 %v9878_v47  ;;  %7960 = vmatpush3.bf16.msra.mxu0 %v9247_v61  ;;  %v9315_v61 = vld [vmem:[#allocation18 + $0x600] ss:$28 sps:$4 sm:$0xff]  }
 0x6e0   :  { %6963 = vmatprep.mubr.bf16.mxu0 %v9865_v60  ;;  %6892 = vmatprep.subr.bf16.mxu1 %v9250_v1  ;;  %v9263_v60 = vld [vmem:[#allocation18 + $0x438] ss:$28 sps:$4 sm:$0xff]   ;;  %v9316_v1 = vld [vmem:[#allocation18 + $0x440] ss:$28 sps:$4 sm:$0xff]  }
 0x6e1   :  { %7961 = vmatprep.subr.bf16.mxu0 %v9251_v3  ;;  %v9317_v3 = vld [vmem:[#allocation18 + $0x5c8] ss:$28 sps:$4 sm:$0xff]  }
 0x6e2   :  { %6893 = vmatpush1.bf16.msra.mxu1 %v9248_v0  ;;  %v9319_v0 = vld [vmem:[#allocation18 + $0x590] ss:$28 sps:$4 sm:$0xff]  }
 0x6e3   :  { %7962 = vmatpush3.bf16.msra.mxu0 %v9252_v5  ;;  %6894 = vmatprep.subr.bf16.mxu1 %v9255_v56  ;;  %v9320_v5 = vld [vmem:[#allocation18 + $0x3d0] ss:$28 sps:$4 sm:$0xff]   ;;  %v9321_v56 = vld [vmem:[#allocation18 + $0x558] ss:$28 sps:$4 sm:$0xff]  }
 0x6e4   :  { %7963 = vmatprep.subr.bf16.mxu0 %v9256_v7  ;;  %v9322_v7 = vld [vmem:[#allocation18 + $0x398] ss:$28 sps:$4 sm:$0xff]  }
 0x6e6   :  { %6895 = vmatpush1.bf16.msra.mxu1 %v9253_v8  ;;  %v9898_v8 = vld [vmem:[%s9949_s14] sm:$0xff] }
 0x6e7   :  { %7964 = vmatpush3.bf16.msra.mxu0 %v9257_v6  ;;  %6896 = vmatprep.subr.bf16.mxu1 %v9260_v9  ;;  %v5501_v6 = vrot.slane %v9898_v8, %v9733_v24  ;;  %v5505_v9 = vrot.slane %v9898_v8, %v9739_v26 }
 0x6e8   :  { %7965 = vmatprep.subr.bf16.mxu0 %v9261_v4 }
 0x6ea   :  { %6897 = vmatpush1.bf16.msra.mxu1 %v9258_v59 }
 0x6eb   :  { %7966 = vmatpush3.bf16.msra.mxu0 %v9262_v10  ;;  %6898 = vmatprep.subr.bf16.mxu1 %v9265_v2 }
 0x6ec   :  { %7967 = vmatprep.subr.bf16.mxu0 %v9266_v11 }
 0x6ee   :  { %6899 = vmatpush1.bf16.msra.mxu1 %v9263_v60 }
 0x6ef   :  { %7968 = vmatpush3.bf16.msra.mxu0 %v9267_v12  ;;  %6900 = vmatprep.subr.bf16.mxu1 %v9270_v13 }
 0x6f0   :  { %7969 = vmatprep.subr.bf16.mxu0 %v9271_v14 }
 0x6f2   :  { %6901 = vmatpush1.bf16.msra.mxu1 %v9268_v16 }
 0x6f3   :  { %7970 = vmatpush3.bf16.msra.mxu0 %v9272_v17  ;;  %6902 = vmatprep.subr.bf16.mxu1 %v9275_v18 }
 0x6f4   :  { %7971 = vmatprep.subr.bf16.mxu0 %v9276_v58 }
 0x6f6   :  { %6903 = vmatpush1.bf16.msra.mxu1 %v9273_v19 }
 0x6f7   :  { %7972 = vmatpush3.bf16.msra.mxu0 %v9277_v20  ;;  %6904 = vmatprep.subr.bf16.mxu1 %v9280_v21 }
 0x6f8   :  { %7973 = vmatprep.subr.bf16.mxu0 %v9281_v23 }
 0x6fa   :  { %6905 = vmatpush1.bf16.msra.mxu1 %v9278_v29  ;;  %v5509_v29 = vrot.slane %v9898_v8, %v9736_v25 }
 0x6fb   :  { %7974 = vmatpush3.bf16.msra.mxu0 %v9282_v30  ;;  %6906 = vmatprep.subr.bf16.mxu1 %v9285_v31  ;;  %v5513_v30 = vrot.slane %v9898_v8, %v9742_v27 }
 0x6fe   :  { %6907 = vmatpush2.bf16.msra.mxu1 %v9283_v15  ;;  %6964 = vmatmul.mubr.bf16.vlgmr.msra.gmra.mxu0 %v9867_v63  ;;  %v9301_v63 = vld [vmem:[#allocation18 + $0x588] ss:$28 sps:$4 sm:$0xff]  }
 0x6ff   :  { %6908 = vmatprep.subr.bf16.mxu1 %v9288_v32 }
 0x702   :  { %6909 = vmatpush2.bf16.msra.mxu1 %v9286_v28 }
 0x703   :  { %6910 = vmatprep.subr.bf16.mxu1 %v9291_v33 }
 0x706   :  { %6911 = vmatpush2.bf16.msra.mxu1 %v9289_v34 }
 0x707   :  { %6912 = vmatprep.subr.bf16.mxu1 %v9294_v35 }
 0x70a   :  { %6913 = vmatpush2.bf16.msra.mxu1 %v9292_v36 }
 0x70b   :  { %6914 = vmatprep.subr.bf16.mxu1 %v9297_v37 }
 0x70e   :  { %6915 = vmatpush2.bf16.msra.mxu1 %v9295_v39 }
 0x70f   :  { %6916 = vmatprep.subr.bf16.mxu1 %v9300_v40 }
 0x712   :  { %6917 = vmatpush2.bf16.msra.mxu1 %v9298_v41 }
 0x713   :  { %6918 = vmatprep.subr.bf16.mxu1 %v9303_v38 }
 0x716   :  { %6919 = vmatpush2.bf16.msra.mxu1 %v9301_v63 }
 0x717   :  { %6920 = vmatprep.subr.bf16.mxu1 %v9306_v42 }
 0x71a   :  { %6921 = vmatpush2.bf16.msra.mxu1 %v9304_v44 }
 0x71b   :  { %7981 = vmatprep.subr.bf16.mxu1 %v9307_v45 }
 0x71d   :  { %6923 = vmatmul.mubr.bf16.vlgmr.msra.gmra.mxu1 %v9880_v49  ;;  %v6719_v46 = vpop.f32.mrf.mxu0 }
 0x71e   :  { %7982 = vmatpush3.bf16.msra.mxu1 %v9308_v43  ;;  %7003 = vmatprep.mubr.bf16.mxu1 %v9878_v47  ;;  %v9318_v47 = vld [vmem:[#allocation18 + $0x408] ss:$28 sps:$4 sm:$0xff]   ;;  %v6720_v4 = vadd.f32 %v6719_v46, %v5501_v6 }
 0x71f   :  { %v6721_v52 = vpop.f32.mrf.mxu0  ;;  %7983 = vmatprep.subr.bf16.mxu1 %v9309_v48 }
 0x720   :  { %v6722_v2 = vadd.f32 %v6721_v52, %v5505_v9 }
 0x721   :  { %v6723_v51 = vpop.f32.mrf.mxu0 }
 0x722   :  { %7984 = vmatpush3.bf16.msra.mxu1 %v9310_v50  ;;  %v5520_v51 = vsub.s32 5, %v9730_v22 }
 0x723   :  { %v6724_v57 = vpop.f32.mrf.mxu0  ;;  %7985 = vmatprep.subr.bf16.mxu1 %v9311_v53  ;;  %v5516_v53 = vsub.s32 4, %v9730_v22 }
 0x724   :  { %v5521_v57 = vrot.slane %v9898_v8, %v5520_v51 }
 0x726   :  { %7986 = vmatpush3.bf16.msra.mxu1 %v9312_v55  ;;  %v5517_v55 = vrot.slane %v9898_v8, %v5516_v53 }
 0x727   :  { %7987 = vmatprep.subr.bf16.mxu1 %v9313_v54 }
 0x72a   :  { %7988 = vmatpush3.bf16.msra.mxu1 %v9314_v62 }
 0x72b   :  { %7989 = vmatprep.subr.bf16.mxu1 %v9315_v61 }
 0x72e   :  { %7990 = vmatpush3.bf16.msra.mxu1 %v9316_v1 }
 0x72f   :  { %7991 = vmatprep.subr.bf16.mxu1 %v9317_v3 }
 0x732   :  { %7992 = vmatpush3.bf16.msra.mxu1 %v9318_v47 }
 0x733   :  { %7993 = vmatprep.subr.bf16.mxu1 %v9319_v0 }
 0x736   :  { %7994 = vmatpush3.bf16.msra.mxu1 %v9320_v5 }
 0x737   :  { %7995 = vmatprep.subr.bf16.mxu1 %v9321_v56 }
 0x73a   :  { %7996 = vmatpush3.bf16.msra.mxu1 %v9322_v7 }
 0x73d   :  { %7004 = vmatmul.mubr.bf16.vlgmr.msra.gmra.mxu1 %v9880_v49 }
 0x75d   :  { %v6760_v59 = vpop.f32.mrf.mxu1  ;;  %v6801_v10 = vpop.f32.mrf.mxu0 }
 0x75e   :  { %v6761_v11 = vadd.f32 %v6760_v59, %v6720_v4  ;;  %v6802_v31 = vadd.f32 %v6801_v10, %v5509_v29  ;;  %v5524_v10 = vsub.s32 6, %v9730_v22 }
 0x75f   :  { %v6762_v60 = vpop.f32.mrf.mxu1  ;;  %v6803_v12 = vpop.f32.mrf.mxu0 }
 0x760   :  { %v7952_v13 = vmul.f32 -1.442695, %v6761_v11  ;;  %v6763_v49 = vadd.f32 %v6762_v60, %v6722_v2  ;;  %v6804_v32 = vadd.f32 %v6803_v12, %v5513_v30  ;;  %v5525_v2 = vrot.slane %v9898_v8, %v5524_v10 }
 0x761   :  { %v6764_v14 = vpop.f32.mrf.mxu1  ;;  %v6805_v16 = vpop.f32.mrf.mxu0 }
 0x762   :  { %9323 = vpow2.f32 %v7952_v13  ;;  %v7953_v17 = vmul.f32 -1.442695, %v6763_v49 }
 0x763   :  { %v6765_v18 = vpop.f32.mrf.mxu1  ;;  %v6806_v58 = vpop.f32.mrf.mxu0 }
 0x764   :  { %9325 = vpow2.f32 %v7953_v17 }
 0x76f   :  { %v9324_v24 = vpop.eup %9323 }
 0x770   :  { %v7032_v19 = vadd.f32 1.0, %v9324_v24 }
 0x771   :  { %v9326_v20 = vpop.eup %9325 }
 0x772   :  { %9327 = vrcp.f32 %v7032_v19  ;;  %v7033_v26 = vadd.f32 1.0, %v9326_v20 }
 0x774   :  { %9329 = vrcp.f32 %v7033_v26 }
 0x77f   :  { %v9328_v21 = vpop.eup %9327 }
 0x780   :  { %7053 = vst [vmem:[%s9950_s15] sm:$0xff] %v9328_v21 }
 0x781   :  { %v9330_v23 = vpop.eup %9329 }
 0x782   :  { %7054 = vst [vmem:[%s9950_s15 + $0x8] sm:$0xff] %v9330_v23 }
 0x79d   :  { %v6842_v15 = vpop.f32.mrf.mxu1 }
 0x79e   :  { %v6843_v28 = vadd.f32 %v6842_v15, %v6802_v31  ;;  %v6883_v33 = vpop.f32.mrf.mxu0 }
 0x79f   :  { %v6844_v34 = vpop.f32.mrf.mxu1  ;;  %v6884_v54 = vadd.f32 %v6883_v33, %v5517_v55 }
 0x7a0   :  { %v7954_v35 = vmul.f32 -1.442695, %v6843_v28  ;;  %v6845_v36 = vadd.f32 %v6844_v34, %v6804_v32  ;;  %v6885_v37 = vpop.f32.mrf.mxu0 }
 0x7a1   :  { %v6846_v39 = vpop.f32.mrf.mxu1  ;;  %v6886_v61 = vadd.f32 %v6885_v37, %v5521_v57 }
 0x7a2   :  { %9331 = vpow2.f32 %v7954_v35  ;;  %v7955_v40 = vmul.f32 -1.442695, %v6845_v36  ;;  %v6887_v41 = vpop.f32.mrf.mxu0 }
 0x7a3   :  { %v6847_v38 = vpop.f32.mrf.mxu1 }
 0x7a4   :  { %9333 = vpow2.f32 %v7955_v40  ;;  %v6888_v63 = vpop.f32.mrf.mxu0 }
 0x7af   :  { %v9332_v25 = vpop.eup %9331 }
 0x7b0   :  { %v7034_v42 = vadd.f32 1.0, %v9332_v25 }
 0x7b1   :  { %v9334_v44 = vpop.eup %9333 }
 0x7b2   :  { %9335 = vrcp.f32 %v7034_v42  ;;  %v7035_v27 = vadd.f32 1.0, %v9334_v44 }
 0x7b4   :  { %9337 = vrcp.f32 %v7035_v27 }
 0x7be   :  { %v7975_v45 = vpop.f32.mrf.mxu0 }
 0x7bf   :  { %v9336_v43 = vpop.eup %9335 }
 0x7c0   :  { %7055 = vst [vmem:[%s9950_s15 + $0x10] sm:$0xff] %v9336_v43  ;;  %v7976_v48 = vpop.f32.mrf.mxu0 }
 0x7c1   :  { %v9338_v46 = vpop.eup %9337  ;;  %v7977_v11 = vadd.f32 %v7976_v48, %v7975_v45 }
 0x7c2   :  { %7056 = vst [vmem:[%s9950_s15 + $0x18] sm:$0xff] %v9338_v46  ;;  %v7978_v50 = vpop.f32.mrf.mxu0 }
 0x7c3   :  { %v6966_v49 = vadd.f32 %v7977_v11, %v5525_v2 }
 0x7c4   :  { %v7979_v52 = vpop.f32.mrf.mxu0 }
 0x7dd   :  { %v6924_v62 = vpop.f32.mrf.mxu1 }
 0x7de   :  { %v6925_v1 = vadd.f32 %v6924_v62, %v6884_v54 }
 0x7df   :  { %v6926_v3 = vpop.f32.mrf.mxu1 }
 0x7e0   :  { %v7956_v47 = vmul.f32 -1.442695, %v6925_v1  ;;  %v6927_v0 = vadd.f32 %v6926_v3, %v6886_v61 }
 0x7e1   :  { %v6928_v5 = vpop.f32.mrf.mxu1 }
 0x7e2   :  { %9339 = vpow2.f32 %v7956_v47  ;;  %v7957_v56 = vmul.f32 -1.442695, %v6927_v0 }
 0x7e3   :  { %v6929_v7 = vpop.f32.mrf.mxu1 }
 0x7e4   :  { %9341 = vpow2.f32 %v7957_v56 }
 0x7ef   :  { %v9340_v6 = vpop.eup %9339 }
 0x7f0   :  { %v7036_v9 = vadd.f32 1.0, %v9340_v6 }
 0x7f1   :  { %v9342_v4 = vpop.eup %9341 }
 0x7f2   :  { %9343 = vrcp.f32 %v7036_v9  ;;  %v7037_v59 = vadd.f32 1.0, %v9342_v4 }
 0x7f4   :  { %9345 = vrcp.f32 %v7037_v59 }
 0x7fd   :  { %v7997_v60 = vpop.f32.mrf.mxu1 }
 0x7ff   :  { %v9344_v12 = vpop.eup %9343  ;;  %v7998_v13 = vpop.f32.mrf.mxu1 }
 0x800   :  { %7057 = vst [vmem:[%s9950_s15 + $0x20] sm:$0xff] %v9344_v12  ;;  %v7999_v14 = vadd.f32 %v7998_v13, %v7997_v60 }
 0x801   :  { %v9346_v16 = vpop.eup %9345  ;;  %v8000_v17 = vpop.f32.mrf.mxu1 }
 0x802   :  { %7058 = vst [vmem:[%s9950_s15 + $0x28] sm:$0xff] %v9346_v16  ;;  %v7006_v18 = vadd.f32 %v7999_v14, %v6966_v49 }
 0x803   :  { %v8001_v22 = vpop.f32.mrf.mxu1 }
 0x804   :  { %v7958_v58 = vmul.f32 -1.442695, %v7006_v18 }
 0x806   :  { %9347 = vpow2.f32 %v7958_v58 }
 0x813   :  { %v9348_v8 = vpop.eup %9347 }
 0x814   :  { %v7038_v24 = vadd.f32 1.0, %v9348_v8 }
 0x816   :  { %9349 = vrcp.f32 %v7038_v24 }
 0x823   :  { %v9350_v19 = vpop.eup %9349 }
 0x824   :  { %7059 = vst [vmem:[%s9950_s15 + $0x30] sm:$0xff] %v9350_v19 }
 0x825   :  { %7064 = vsyncpa [#allocation3], 1 }
 0x826   :  { %7065 = vsyncpa [#allocation5], 1 }
 0x827   :  { %7066 = vsyncpa [#allocation8], 1 }
 0x828   :  { %7067 = vsyncpa [#allocation11], 1 }
 0x829   :  { %7068 = vsyncpa [#allocation14], 1 }
 0x82a   :  { %7069 = vsyncpa [#allocation17], 1 }

</bundles_post_ra>
